<compile_context>
chip_gen: v7x
topology: tpu7x:2x2x1
jax: 0.10.0
libtpu: 0.0.40
codegen_flags: <defaults>
</compile_context>

<pallas_src>
import functools
import math

import jax
import jax.numpy as jnp
from jax.experimental import pallas as pl
from jax.experimental.pallas import tpu as pltpu

LEAKY_SLOPE = 0.01
BN_EPS = 1e-5
LN_EPS = 1e-5

# Row/contraction tile sizes. 128 works on all chips (v5e MXU native);
# bump to 256 on v6e/v7x for full 2x256x256 MXU utilization when N allows.
TILE_Q = 128
TILE_K = 128


# ---------------------------------------------------------------------------
# Stage A: SAGE1 (BN1 folded) + leaky_relu + fused QKV projection
#          (attention scale folded into Wq, Wo/bo folded into Wv/bv).
# ---------------------------------------------------------------------------
def _sage1_qkv_kernel(adj_ref, xk_ref, xs_ref,
                      w1s_ref, w1n_ref, b1_ref,
                      wq_ref, bq_ref, wk_ref, bk_ref, wv_ref, bv_ref,
                      q_ref, k_ref, v_ref, acc_ref):
    f32 = jnp.float32
    kk = pl.program_id(1)

    @pl.when(kk == 0)
    def _():
        acc_ref[...] = jnp.zeros_like(acc_ref)

    # mean-aggregation: accumulate (A tile) @ (x tile) in f32 scratch.
    acc_ref[...] += jnp.dot(adj_ref[...], xk_ref[...],
                            preferred_element_type=f32)

    @pl.when(kk == pl.num_programs(1) - 1)
    def _():
        neigh = acc_ref[...].astype(jnp.bfloat16)
        h = (jnp.dot(xs_ref[...], w1s_ref[...], preferred_element_type=f32)
             + jnp.dot(neigh, w1n_ref[...], preferred_element_type=f32)
             + b1_ref[...])
        h = jnp.where(h > 0, h, LEAKY_SLOPE * h).astype(jnp.bfloat16)
        q_ref[...] = (jnp.dot(h, wq_ref[...], preferred_element_type=f32)
                      + bq_ref[...]).astype(q_ref.dtype)
        k_ref[...] = (jnp.dot(h, wk_ref[...], preferred_element_type=f32)
                      + bk_ref[...]).astype(k_ref.dtype)
        v_ref[...] = (jnp.dot(h, wv_ref[...], preferred_element_type=f32)
                      + bv_ref[...]).astype(v_ref.dtype)


# ---------------------------------------------------------------------------
# Stage B: flash-style single-head attention (Wo already folded into V)
#          + LayerNorm + leaky_relu (dropout = identity in eval).
# ---------------------------------------------------------------------------
def _flash_attn_ln_kernel(q_ref, k_ref, v_ref, lng_ref, lnb_ref,
                          o_ref, m_sc, l_sc, acc_sc):
    f32 = jnp.float32
    kk = pl.program_id(1)

    @pl.when(kk == 0)
    def _():
        m_sc[...] = jnp.full_like(m_sc, -jnp.inf)
        l_sc[...] = jnp.zeros_like(l_sc)
        acc_sc[...] = jnp.zeros_like(acc_sc)

    # scores for this KV tile; contract last axes (no explicit transpose).
    s = jax.lax.dot_general(q_ref[...], k_ref[...], (((1,), (1,)), ((), ())),
                            preferred_element_type=f32)
    m_new = jnp.maximum(m_sc[...], jnp.max(s, axis=-1, keepdims=True))
    alpha = jnp.exp(m_sc[...] - m_new)
    p = jnp.exp(s - m_new)
    l_sc[...] = alpha * l_sc[...] + jnp.sum(p, axis=-1, keepdims=True)
    acc_sc[...] = alpha * acc_sc[...] + jnp.dot(
        p.astype(v_ref.dtype), v_ref[...], preferred_element_type=f32)
    m_sc[...] = m_new

    @pl.when(kk == pl.num_programs(1) - 1)
    def _():
        a = acc_sc[...] * pl.reciprocal(l_sc[...], approx=True)
        mu = jnp.mean(a, axis=-1, keepdims=True)
        var = jnp.mean((a - mu) * (a - mu), axis=-1, keepdims=True)
        h = (a - mu) * jax.lax.rsqrt(var + LN_EPS) * lng_ref[...] + lnb_ref[...]
        h = jnp.where(h > 0, h, LEAKY_SLOPE * h)
        o_ref[...] = h.astype(o_ref.dtype)


# ---------------------------------------------------------------------------
# Stage C: SAGE2 (BN2 folded) + leaky_relu -> Linear + relu
#          -> merged lane-dense [bce | ce | pad] head slab.
# ---------------------------------------------------------------------------
def _sage2_heads_kernel(adj_ref, hk_ref, hs_ref,
                        w2s_ref, w2n_ref, b2_ref,
                        wl_ref, bl_ref, wh_ref, bh_ref,
                        xo_ref, head_ref, acc_ref):
    f32 = jnp.float32
    kk = pl.program_id(1)

    @pl.when(kk == 0)
    def _():
        acc_ref[...] = jnp.zeros_like(acc_ref)

    acc_ref[...] += jnp.dot(adj_ref[...], hk_ref[...],
                            preferred_element_type=f32)

    @pl.when(kk == pl.num_programs(1) - 1)
    def _():
        neigh = acc_ref[...].astype(jnp.bfloat16)
        xo = (jnp.dot(hs_ref[...], w2s_ref[...], preferred_element_type=f32)
              + jnp.dot(neigh, w2n_ref[...], preferred_element_type=f32)
              + b2_ref[...])
        xo = jnp.where(xo > 0, xo, LEAKY_SLOPE * xo)
        xo_ref[...] = xo.astype(xo_ref.dtype)
        h2 = (jnp.dot(xo.astype(jnp.bfloat16), wl_ref[...],
                      preferred_element_type=f32) + bl_ref[...])
        h2 = jnp.maximum(h2, 0.0).astype(jnp.bfloat16)
        head_ref[...] = (jnp.dot(h2, wh_ref[...], preferred_element_type=f32)
                         + bh_ref[...]).astype(head_ref.dtype)


# ---------------------------------------------------------------------------
# JAX wrapper: three tiled pallas_calls.
# ---------------------------------------------------------------------------
@functools.partial(jax.jit,
                   static_argnames=("num_bin", "num_classes", "tq", "tk"))
def word_sage_forward(x, adj, fp, *, num_bin, num_classes,
                      tq=TILE_Q, tk=TILE_K):
    n, in_c = x.shape
    hid = fp["wq"].shape[1]
    out_c = fp["w2_self"].shape[1]
    head_w = fp["w_heads"].shape[1]
    assert n % tq == 0 and n % tk == 0, "node count must be tile-divisible"

    f32 = jnp.float32
    bf16 = jnp.bfloat16
    x_bf = x.astype(bf16)
    adj_bf = adj.astype(bf16)
    grid = (n // tq, n // tk)

    # Row axis parallel (v7x megacore), reduction axis arbitrary.
    # VMEM cap sized with headroom under v7x's 64 MiB physical budget.
    cparams = pltpu.CompilerParams(
        dimension_semantics=("parallel", "arbitrary"),
        vmem_limit_bytes=48 * 1024 * 1024)

    def const_spec(arr):  # whole-array weight/bias, resident across the grid
        return pl.BlockSpec(arr.shape, lambda i, k: (0, 0))

    # ---- Stage A: SAGE1 + BN1 + leaky + QKV projection -------------------
    q, kmat, v = pl.pallas_call(
        _sage1_qkv_kernel,
        out_shape=(jax.ShapeDtypeStruct((n, hid), bf16),) * 3,
        grid=grid,
        in_specs=[
            pl.BlockSpec((tq, tk), lambda i, k: (i, k)),       # adj tile
            pl.BlockSpec((tk, in_c), lambda i, k: (k, 0)),     # x (neighbor)
            pl.BlockSpec((tq, in_c), lambda i, k: (i, 0)),     # x (self)
            const_spec(fp["w1_self"]), const_spec(fp["w1_neigh"]),
            const_spec(fp["b_sage1"]),
            const_spec(fp["wq"]), const_spec(fp["bq"]),
            const_spec(fp["wk"]), const_spec(fp["bk"]),
            const_spec(fp["wv"]), const_spec(fp["bv"]),
        ],
        out_specs=(pl.BlockSpec((tq, hid), lambda i, k: (i, 0)),) * 3,
        scratch_shapes=[pltpu.VMEM((tq, in_c), f32)],
        compiler_params=cparams,
    )(adj_bf, x_bf, x_bf,
      fp["w1_self"], fp["w1_neigh"], fp["b_sage1"],
      fp["wq"], fp["bq"], fp["wk"], fp["bk"], fp["wv"], fp["bv"])

    # ---- Stage B: flash attention + LayerNorm + leaky ---------------------
    h_attn = pl.pallas_call(
        _flash_attn_ln_kernel,
        out_shape=jax.ShapeDtypeStruct((n, hid), bf16),
        grid=grid,
        in_specs=[
            pl.BlockSpec((tq, hid), lambda i, k: (i, 0)),      # q tile
            pl.BlockSpec((tk, hid), lambda i, k: (k, 0)),      # k tile
            pl.BlockSpec((tk, hid), lambda i, k: (k, 0)),      # v tile
            const_spec(fp["ln_g"]), const_spec(fp["ln_b"]),
        ],
        out_specs=pl.BlockSpec((tq, hid), lambda i, k: (i, 0)),
        scratch_shapes=[pltpu.VMEM((tq, 1), f32),              # running max
                        pltpu.VMEM((tq, 1), f32),              # running sum
                        pltpu.VMEM((tq, hid), f32)],           # accumulator
        compiler_params=cparams,
    )(q, kmat, v, fp["ln_g"], fp["ln_b"])

    # ---- Stage C: SAGE2 + BN2 + leaky + Linear/relu + merged heads --------
    x_out, head = pl.pallas_call(
        _sage2_heads_kernel,
        out_shape=(jax.ShapeDtypeStruct((n, out_c), f32),
                   jax.ShapeDtypeStruct((n, head_w), f32)),
        grid=grid,
        in_specs=[
            pl.BlockSpec((tq, tk), lambda i, k: (i, k)),       # adj tile
            pl.BlockSpec((tk, hid), lambda i, k: (k, 0)),      # h (neighbor)
            pl.BlockSpec((tq, hid), lambda i, k: (i, 0)),      # h (self)
            const_spec(fp["w2_self"]), const_spec(fp["w2_neigh"]),
            const_spec(fp["b_sage2"]),
            const_spec(fp["w_lin"]), const_spec(fp["b_lin"]),
            const_spec(fp["w_heads"]), const_spec(fp["b_heads"]),
        ],
        out_specs=(pl.BlockSpec((tq, out_c), lambda i, k: (i, 0)),
                   pl.BlockSpec((tq, head_w), lambda i, k: (i, 0))),
        scratch_shapes=[pltpu.VMEM((tq, hid), f32)],
        compiler_params=cparams,
    )(adj_bf, h_attn, h_attn,
      fp["w2_self"], fp["w2_neigh"], fp["b_sage2"],
      fp["w_lin"], fp["b_lin"], fp["w_heads"], fp["b_heads"])

    # slice the lane-dense head slab back into the two logits tensors
    b = head[:, :num_bin]
    y = head[:, num_bin:num_bin + num_classes]
    return x_out, b, y


# ---------------------------------------------------------------------------
# Graph / parameter construction + folding (BN, attention scale, Wo, heads).
# ---------------------------------------------------------------------------
def build_norm_adj(edge_index, num_nodes):
    """Dense row-normalized adjacency for mean aggregation: A[i, j] = 1/deg_in(i)."""
    src, dst = edge_index[0], edge_index[1]
    adj = jnp.zeros((num_nodes, num_nodes), jnp.float32)
    adj = adj.at[dst, src].add(1.0)
    deg = jnp.sum(adj, axis=1, keepdims=True)
    return adj / jnp.maximum(deg, 1.0)


def init_params(key, in_c, hid_c, out_c, num_classes, num_bin):
    ks = list(jax.random.split(key, 16))

    def dense(k, i, o):
        return jax.random.normal(k, (i, o), jnp.float32) * 0.05

    p = {}
    # SAGE layer 1
    p["w1_self"] = dense(ks[0], in_c, hid_c)
    p["w1_neigh"] = dense(ks[1], in_c, hid_c)
    p["b1"] = jnp.zeros((1, hid_c), jnp.float32)
    # BatchNorm 1 (eval: running stats)
    p["bn1_g"] = jnp.ones((1, hid_c), jnp.float32)
    p["bn1_b"] = jnp.zeros((1, hid_c), jnp.float32)
    p["bn1_rm"] = jnp.zeros((1, hid_c), jnp.float32)
    p["bn1_rv"] = jnp.ones((1, hid_c), jnp.float32)
    # MultiheadAttention (1 head)
    p["wq"] = dense(ks[2], hid_c, hid_c)
    p["wk"] = dense(ks[3], hid_c, hid_c)
    p["wv"] = dense(ks[4], hid_c, hid_c)
    p["bq"] = jnp.zeros((1, hid_c), jnp.float32)
    p["bk"] = jnp.zeros((1, hid_c), jnp.float32)
    p["bv"] = jnp.zeros((1, hid_c), jnp.float32)
    p["wo"] = dense(ks[5], hid_c, hid_c)
    p["bo"] = jnp.zeros((1, hid_c), jnp.float32)
    # LayerNorm
    p["ln_g"] = jnp.ones((1, hid_c), jnp.float32)
    p["ln_b"] = jnp.zeros((1, hid_c), jnp.float32)
    # SAGE layer 2
    p["w2_self"] = dense(ks[6], hid_c, out_c)
    p["w2_neigh"] = dense(ks[7], hid_c, out_c)
    p["b2"] = jnp.zeros((1, out_c), jnp.float32)
    # BatchNorm 2
    p["bn2_g"] = jnp.ones((1, out_c), jnp.float32)
    p["bn2_b"] = jnp.zeros((1, out_c), jnp.float32)
    p["bn2_rm"] = jnp.zeros((1, out_c), jnp.float32)
    p["bn2_rv"] = jnp.ones((1, out_c), jnp.float32)
    # Heads
    p["w_lin"] = dense(ks[8], out_c, out_c)
    p["b_lin"] = jnp.zeros((1, out_c), jnp.float32)
    p["w_bce"] = dense(ks[9], out_c, num_bin)
    p["b_bce"] = jnp.zeros((1, num_bin), jnp.float32)
    p["w_ce"] = dense(ks[10], out_c, num_classes)
    p["b_ce"] = jnp.zeros((1, num_classes), jnp.float32)
    return p


def fold_params(p):
    """Fold BN(eval)/attention scale/out-proj into weights; bf16 weights, f32 biases."""
    bf16 = jnp.bfloat16
    fp = {}

    def bn_scale(g, rv):
        return g * jax.lax.rsqrt(rv + BN_EPS)

    # SAGE1 + BN1 (self/neighbor weights kept separate: two dots, no concat).
    s1 = bn_scale(p["bn1_g"], p["bn1_rv"])
    fp["w1_self"] = (p["w1_self"] * s1).astype(bf16)
    fp["w1_neigh"] = (p["w1_neigh"] * s1).astype(bf16)
    fp["b_sage1"] = (p["b1"] - p["bn1_rm"]) * s1 + p["bn1_b"]

    # Attention: fold 1/sqrt(hid) into Wq/bq; fold Wo/bo into Wv/bv
    # (valid for 1 head since softmax rows sum to 1).
    hid = p["wq"].shape[0]
    attn_scale = 1.0 / math.sqrt(hid)
    fp["wq"] = (p["wq"] * attn_scale).astype(bf16)
    fp["bq"] = p["bq"] * attn_scale
    fp["wk"] = p["wk"].astype(bf16)
    fp["bk"] = p["bk"]
    fp["wv"] = (p["wv"] @ p["wo"]).astype(bf16)
    fp["bv"] = p["bv"] @ p["wo"] + p["bo"]
    fp["ln_g"] = p["ln_g"]
    fp["ln_b"] = p["ln_b"]

    # SAGE2 + BN2
    s2 = bn_scale(p["bn2_g"], p["bn2_rv"])
    fp["w2_self"] = (p["w2_self"] * s2).astype(bf16)
    fp["w2_neigh"] = (p["w2_neigh"] * s2).astype(bf16)
    fp["b_sage2"] = (p["b2"] - p["bn2_rm"]) * s2 + p["bn2_b"]

    fp["w_lin"] = p["w_lin"].astype(bf16)
    fp["b_lin"] = p["b_lin"]

    # Merged, lane-dense (multiple of 128) head slab: [bce | ce | zero-pad].
    num_bin = p["w_bce"].shape[1]
    num_classes = p["w_ce"].shape[1]
    out_c = p["w_lin"].shape[1]
    head_w = max(128, ((num_bin + num_classes + 127) // 128) * 128)
    w_heads = jnp.zeros((out_c, head_w), jnp.float32)
    w_heads = w_heads.at[:, :num_bin].set(p["w_bce"])
    w_heads = w_heads.at[:, num_bin:num_bin + num_classes].set(p["w_ce"])
    b_heads = jnp.zeros((1, head_w), jnp.float32)
    b_heads = b_heads.at[:, :num_bin].set(p["b_bce"])
    b_heads = b_heads.at[:, num_bin:num_bin + num_classes].set(p["b_ce"])
    fp["w_heads"] = w_heads.astype(bf16)
    fp["b_heads"] = b_heads
    return fp


def reference_forward(x, adj, fp, num_bin, num_classes):
    """Pure-JAX f32 reference using the same folded params (sanity check)."""
    f = lambda a: a.astype(jnp.float32)
    neigh = adj @ x
    h = x @ f(fp["w1_self"]) + neigh @ f(fp["w1_neigh"]) + fp["b_sage1"]
    h = jnp.where(h > 0, h, LEAKY_SLOPE * h)
    q = h @ f(fp["wq"]) + fp["bq"]
    k = h @ f(fp["wk"]) + fp["bk"]
    v = h @ f(fp["wv"]) + fp["bv"]
    p = jax.nn.softmax(q @ k.T, axis=-1)
    a = p @ v
    mu = a.mean(-1, keepdims=True)
    var = ((a - mu) ** 2).mean(-1, keepdims=True)
    h = (a - mu) * jax.lax.rsqrt(var + LN_EPS) * fp["ln_g"] + fp["ln_b"]
    h = jnp.where(h > 0, h, LEAKY_SLOPE * h)
    neigh2 = adj @ h
    xo = h @ f(fp["w2_self"]) + neigh2 @ f(fp["w2_neigh"]) + fp["b_sage2"]
    xo = jnp.where(xo > 0, xo, LEAKY_SLOPE * xo)
    h2 = jnp.maximum(xo @ f(fp["w_lin"]) + fp["b_lin"], 0.0)
    head = h2 @ f(fp["w_heads"]) + fp["b_heads"]
    return xo, head[:, :num_bin], head[:, num_bin:num_bin + num_classes]


if __name__ == "__main__":
    # Small shapes consistent with the module (2500-dim channels scaled to 128),
    # N chosen as a multiple of the tile size so the grid is exercised (2x2).
    NUM_NODES = 256
    IN_C = HID_C = OUT_C = 128
    NUM_CLASSES = 16
    NUM_BIN = 8
    NUM_EDGES = 1024

    key = jax.random.PRNGKey(0)
    kx, ks, kd, _ = jax.random.split(key, 4)
    x = jax.random.normal(kx, (NUM_NODES, IN_C), jnp.float32)
    src = jax.random.randint(ks, (NUM_EDGES,), 0, NUM_NODES)
    dst = jax.random.randint(kd, (NUM_EDGES,), 0, NUM_NODES)
    edge_index = jnp.stack([src, dst], axis=0)  # (2, E), row0=src, row1=dst

    adj = build_norm_adj(edge_index, NUM_NODES)
    raw_params = init_params(jax.random.PRNGKey(42), IN_C, HID_C, OUT_C,
                             NUM_CLASSES, NUM_BIN)
    fused_params = fold_params(raw_params)

    x_out, b, y = word_sage_forward(x, adj, fused_params,
                                    num_bin=NUM_BIN, num_classes=NUM_CLASSES)
    jax.block_until_ready((x_out, b, y))

    assert x_out.shape == (NUM_NODES, OUT_C)
    assert b.shape == (NUM_NODES, NUM_BIN)
    assert y.shape == (NUM_NODES, NUM_CLASSES)
    assert (jnp.all(jnp.isfinite(x_out)) and jnp.all(jnp.isfinite(b))
            and jnp.all(jnp.isfinite(y)))

    # Loose tolerance vs. f32 reference (kernel uses bf16 MXU operands).
    xr, br, yr = reference_forward(x, adj, fused_params, NUM_BIN, NUM_CLASSES)
    max_err = max(float(jnp.max(jnp.abs(x_out - xr))),
                  float(jnp.max(jnp.abs(b - br))),
                  float(jnp.max(jnp.abs(y - yr))))
    assert max_err < 0.15, f"max abs error vs reference: {max_err}"
    print("KERNEL_OK")
</pallas_src>

<mosaic_0001>
module attributes {stable_mosaic.version = 11 : i64} {
  func.func @_flash_attn_ln_kernel(%arg0: i32, %arg1: i32, %arg2: memref<128x128xbf16, #tpu.memory_space<vmem>>, %arg3: memref<128x128xbf16, #tpu.memory_space<vmem>>, %arg4: memref<128x128xbf16, #tpu.memory_space<vmem>>, %arg5: memref<1x128xf32, #tpu.memory_space<vmem>>, %arg6: memref<1x128xf32, #tpu.memory_space<vmem>>, %arg7: memref<128x128xbf16, #tpu.memory_space<vmem>>, %arg8: memref<128x1xf32, #tpu.memory_space<vmem>>, %arg9: memref<128x1xf32, #tpu.memory_space<vmem>>, %arg10: memref<128x128xf32, #tpu.memory_space<vmem>>) attributes {dimension_semantics = [#tpu.dimension_semantics<parallel>, #tpu.dimension_semantics<arbitrary>], iteration_bounds = array<i64: 2, 2>, scalar_prefetch = 0 : i64, scratch_operands = 3 : i64, tpu.core_type = #tpu.core_type<tc>, window_params = [{transform_indices = @transform_0, window_bounds = array<i64: 128, 128>}, {transform_indices = @transform_1, window_bounds = array<i64: 128, 128>}, {transform_indices = @transform_2, window_bounds = array<i64: 128, 128>}, {pipeline_mode = #tpu.pipeline_mode<synchronous>, transform_indices = @transform_3, window_bounds = array<i64: 1, 128>}, {pipeline_mode = #tpu.pipeline_mode<synchronous>, transform_indices = @transform_4, window_bounds = array<i64: 1, 128>}, {transform_indices = @transform_5, window_bounds = array<i64: 128, 128>}]} {
    %c0_i32 = arith.constant 0 : i32
    %0 = arith.cmpi eq, %arg1, %c0_i32 : i32
    %1 = arith.extui %0 : i1 to i32
    %c0_i32_0 = arith.constant 0 : i32
    %2 = arith.cmpi ne, %1, %c0_i32_0 : i32
    scf.if %2 {
      %cst_24 = arith.constant 0xFF800000 : f32
      %34 = vector.broadcast %cst_24 : f32 to vector<128x1xf32>
      %c0_25 = arith.constant 0 : index
      %c0_26 = arith.constant 0 : index
      %35 = vector.load %arg8[%c0_25, %c0_26] : memref<128x1xf32, #tpu.memory_space<vmem>>, vector<128x1xf32>
      tpu.vector_store %arg8[%c0_25, %c0_26], %34 {strides = array<i32>} : memref<128x1xf32, #tpu.memory_space<vmem>>, vector<128x1xf32>,
      %cst_27 = arith.constant 0.000000e+00 : f32
      %36 = vector.broadcast %cst_27 : f32 to vector<128x1xf32>
      %c0_28 = arith.constant 0 : index
      %c0_29 = arith.constant 0 : index
      %37 = vector.load %arg9[%c0_28, %c0_29] : memref<128x1xf32, #tpu.memory_space<vmem>>, vector<128x1xf32>
      tpu.vector_store %arg9[%c0_28, %c0_29], %36 {strides = array<i32>} : memref<128x1xf32, #tpu.memory_space<vmem>>, vector<128x1xf32>,
      %cst_30 = arith.constant 0.000000e+00 : f32
      %38 = vector.broadcast %cst_30 : f32 to vector<128x128xf32>
      %c0_31 = arith.constant 0 : index
      %c0_32 = arith.constant 0 : index
      %39 = vector.load %arg10[%c0_31, %c0_32] : memref<128x128xf32, #tpu.memory_space<vmem>>, vector<128x128xf32>
      tpu.vector_store %arg10[%c0_31, %c0_32], %38 {strides = array<i32>} : memref<128x128xf32, #tpu.memory_space<vmem>>, vector<128x128xf32>,
    } else {
    }
    %c0 = arith.constant 0 : index
    %c0_1 = arith.constant 0 : index
    %3 = vector.load %arg2[%c0, %c0_1] : memref<128x128xbf16, #tpu.memory_space<vmem>>, vector<128x128xbf16>
    %c0_2 = arith.constant 0 : index
    %c0_3 = arith.constant 0 : index
    %4 = vector.load %arg3[%c0_2, %c0_3] : memref<128x128xbf16, #tpu.memory_space<vmem>>, vector<128x128xbf16>
    %cst = arith.constant dense<0.000000e+00> : vector<128x128xf32>
    %5 = tpu.matmul %3, %4, %cst {dimension_numbers = #tpu.dot_dimension_numbers<[1], [1], [0], [0], [0, 0, 1, 0], [], []>} : vector<128x128xbf16>, vector<128x128xbf16>, vector<128x128xf32> -> vector<128x128xf32>
    %c0_4 = arith.constant 0 : index
    %c0_5 = arith.constant 0 : index
    %6 = vector.load %arg8[%c0_4, %c0_5] : memref<128x1xf32, #tpu.memory_space<vmem>>, vector<128x1xf32>
    %cst_6 = arith.constant dense<0xFF800000> : vector<128xf32>
    %7 = vector.multi_reduction <maximumf>, %5, %cst_6 [1] : vector<128x128xf32> to vector<128xf32>
    %8 = vector.shape_cast %7 : vector<128xf32> to vector<128x1xf32>
    %9 = arith.maximumf %6, %8 : vector<128x1xf32>
    %c0_7 = arith.constant 0 : index
    %c0_8 = arith.constant 0 : index
    %10 = vector.load %arg8[%c0_7, %c0_8] : memref<128x1xf32, #tpu.memory_space<vmem>>, vector<128x1xf32>
    %11 = arith.subf %10, %9 : vector<128x1xf32>
    %12 = math.exp %11 : vector<128x1xf32>
    %13 = vector.broadcast %9 : vector<128x1xf32> to vector<128x128xf32>
    %14 = arith.subf %5, %13 : vector<128x128xf32>
    %15 = math.exp %14 : vector<128x128xf32>
    %c0_9 = arith.constant 0 : index
    %c0_10 = arith.constant 0 : index
    %16 = vector.load %arg9[%c0_9, %c0_10] : memref<128x1xf32, #tpu.memory_space<vmem>>, vector<128x1xf32>
    %17 = arith.mulf %12, %16 : vector<128x1xf32>
    %cst_11 = arith.constant dense<0.000000e+00> : vector<128xf32>
    %18 = vector.multi_reduction <add>, %15, %cst_11 [1] : vector<128x128xf32> to vector<128xf32>
    %19 = vector.shape_cast %18 : vector<128xf32> to vector<128x1xf32>
    %20 = arith.addf %17, %19 : vector<128x1xf32>
    %c0_12 = arith.constant 0 : index
    %c0_13 = arith.constant 0 : index
    %21 = vector.load %arg9[%c0_12, %c0_13] : memref<128x1xf32, #tpu.memory_space<vmem>>, vector<128x1xf32>
    tpu.vector_store %arg9[%c0_12, %c0_13], %20 {strides = array<i32>} : memref<128x1xf32, #tpu.memory_space<vmem>>, vector<128x1xf32>,
    %c0_14 = arith.constant 0 : index
    %c0_15 = arith.constant 0 : index
    %22 = vector.load %arg10[%c0_14, %c0_15] : memref<128x128xf32, #tpu.memory_space<vmem>>, vector<128x128xf32>
    %23 = vector.broadcast %12 : vector<128x1xf32> to vector<128x128xf32>
    %24 = arith.mulf %23, %22 : vector<128x128xf32>
    %25 = arith.truncf %15 : vector<128x128xf32> to vector<128x128xbf16>
    %c0_16 = arith.constant 0 : index
    %c0_17 = arith.constant 0 : index
    %26 = vector.load %arg4[%c0_16, %c0_17] : memref<128x128xbf16, #tpu.memory_space<vmem>>, vector<128x128xbf16>
    %cst_18 = arith.constant dense<0.000000e+00> : vector<128x128xf32>
    %27 = tpu.matmul %25, %26, %cst_18 {dimension_numbers = #tpu.dot_dimension_numbers<[1], [0], [0], [1], [0, 0, 1, 1], [], []>} : vector<128x128xbf16>, vector<128x128xbf16>, vector<128x128xf32> -> vector<128x128xf32>
    %28 = arith.addf %24, %27 : vector<128x128xf32>
    %c0_19 = arith.constant 0 : index
    %c0_20 = arith.constant 0 : index
    %29 = vector.load %arg10[%c0_19, %c0_20] : memref<128x128xf32, #tpu.memory_space<vmem>>, vector<128x128xf32>
    tpu.vector_store %arg10[%c0_19, %c0_20], %28 {strides = array<i32>} : memref<128x128xf32, #tpu.memory_space<vmem>>, vector<128x128xf32>,
    %c0_21 = arith.constant 0 : index
    %c0_22 = arith.constant 0 : index
    %30 = vector.load %arg8[%c0_21, %c0_22] : memref<128x1xf32, #tpu.memory_space<vmem>>, vector<128x1xf32>
    tpu.vector_store %arg8[%c0_21, %c0_22], %9 {strides = array<i32>} : memref<128x1xf32, #tpu.memory_space<vmem>>, vector<128x1xf32>,
    %c1_i32 = arith.constant 1 : i32
    %31 = arith.cmpi eq, %arg1, %c1_i32 : i32
    %32 = arith.extui %31 : i1 to i32
    %c0_i32_23 = arith.constant 0 : i32
    %33 = arith.cmpi ne, %32, %c0_i32_23 : i32
    scf.if %33 {
      %c0_24 = arith.constant 0 : index
      %c0_25 = arith.constant 0 : index
      %34 = vector.load %arg10[%c0_24, %c0_25] : memref<128x128xf32, #tpu.memory_space<vmem>>, vector<128x128xf32>
      %c0_26 = arith.constant 0 : index
      %c0_27 = arith.constant 0 : index
      %35 = vector.load %arg9[%c0_26, %c0_27] : memref<128x1xf32, #tpu.memory_space<vmem>>, vector<128x1xf32>
      %36 = tpu.reciprocal %35 {approx = true} : vector<128x1xf32> -> vector<128x1xf32>
      %37 = vector.broadcast %36 : vector<128x1xf32> to vector<128x128xf32>
      %38 = arith.mulf %34, %37 : vector<128x128xf32>
      %cst_28 = arith.constant dense<0.000000e+00> : vector<128xf32>
      %39 = vector.multi_reduction <add>, %38, %cst_28 [1] : vector<128x128xf32> to vector<128xf32>
      %40 = vector.shape_cast %39 : vector<128xf32> to vector<128x1xf32>
      %cst_29 = arith.constant 1.280000e+02 : f32
      %41 = vector.broadcast %cst_29 : f32 to vector<128x1xf32>
      %42 = arith.divf %40, %41 : vector<128x1xf32>
      %43 = vector.broadcast %42 : vector<128x1xf32> to vector<128x128xf32>
      %44 = arith.subf %38, %43 : vector<128x128xf32>
      %45 = vector.broadcast %42 : vector<128x1xf32> to vector<128x128xf32>
      %46 = arith.subf %38, %45 : vector<128x128xf32>
      %47 = arith.mulf %44, %46 : vector<128x128xf32>
      %cst_30 = arith.constant dense<0.000000e+00> : vector<128xf32>
      %48 = vector.multi_reduction <add>, %47, %cst_30 [1] : vector<128x128xf32> to vector<128xf32>
      %49 = vector.shape_cast %48 : vector<128xf32> to vector<128x1xf32>
      %cst_31 = arith.constant 1.280000e+02 : f32
      %50 = vector.broadcast %cst_31 : f32 to vector<128x1xf32>
      %51 = arith.divf %49, %50 : vector<128x1xf32>
      %52 = vector.broadcast %42 : vector<128x1xf32> to vector<128x128xf32>
      %53 = arith.subf %38, %52 : vector<128x128xf32>
      %cst_32 = arith.constant 9.99999974E-6 : f32
      %54 = vector.broadcast %cst_32 : f32 to vector<128x1xf32>
      %55 = arith.addf %51, %54 : vector<128x1xf32>
      %56 = math.rsqrt %55 : vector<128x1xf32>
      %57 = vector.broadcast %56 : vector<128x1xf32> to vector<128x128xf32>
      %58 = arith.mulf %53, %57 : vector<128x128xf32>
      %c0_33 = arith.constant 0 : index
      %c0_34 = arith.constant 0 : index
      %59 = vector.load %arg5[%c0_33, %c0_34] : memref<1x128xf32, #tpu.memory_space<vmem>>, vector<1x128xf32>
      %60 = vector.broadcast %59 : vector<1x128xf32> to vector<128x128xf32>
      %61 = arith.mulf %58, %60 : vector<128x128xf32>
      %c0_35 = arith.constant 0 : index
      %c0_36 = arith.constant 0 : index
      %62 = vector.load %arg6[%c0_35, %c0_36] : memref<1x128xf32, #tpu.memory_space<vmem>>, vector<1x128xf32>
      %63 = vector.broadcast %62 : vector<1x128xf32> to vector<128x128xf32>
      %64 = arith.addf %61, %63 : vector<128x128xf32>
      %cst_37 = arith.constant 0.000000e+00 : f32
      %65 = vector.broadcast %cst_37 : f32 to vector<128x128xf32>
      %66 = arith.cmpf ogt, %64, %65 : vector<128x128xf32>
      %cst_38 = arith.constant 0.00999999977 : f32
      %67 = vector.broadcast %cst_38 : f32 to vector<128x128xf32>
      %68 = arith.mulf %67, %64 : vector<128x128xf32>
      %69 = arith.select %66, %64, %68 : vector<128x128xi1>, vector<128x128xf32>
      %70 = arith.truncf %69 : vector<128x128xf32> to vector<128x128xbf16>
      %c0_39 = arith.constant 0 : index
      %c0_40 = arith.constant 0 : index
      %71 = vector.load %arg7[%c0_39, %c0_40] : memref<128x128xbf16, #tpu.memory_space<vmem>>, vector<128x128xbf16>
      tpu.vector_store %arg7[%c0_39, %c0_40], %70 {strides = array<i32>} : memref<128x128xbf16, #tpu.memory_space<vmem>>, vector<128x128xbf16>,
    } else {
    }
    return
  }
  func.func @transform_0(%arg0: i32, %arg1: i32) -> (i32, i32) {
    %c0_i32 = arith.constant 0 : i32
    %c0_i32_0 = arith.constant 0 : i32
    return %arg0, %c0_i32 : i32, i32
  }
  func.func @transform_1(%arg0: i32, %arg1: i32) -> (i32, i32) {
    %c0_i32 = arith.constant 0 : i32
    %c0_i32_0 = arith.constant 0 : i32
    return %arg1, %c0_i32 : i32, i32
  }
  func.func @transform_2(%arg0: i32, %arg1: i32) -> (i32, i32) {
    %c0_i32 = arith.constant 0 : i32
    %c0_i32_0 = arith.constant 0 : i32
    return %arg1, %c0_i32 : i32, i32
  }
  func.func @transform_3(%arg0: i32, %arg1: i32) -> (i32, i32) {
    %c0_i32 = arith.constant 0 : i32
    %c0_i32_0 = arith.constant 0 : i32
    %c0_i32_1 = arith.constant 0 : i32
    return %c0_i32, %c0_i32_0 : i32, i32
  }
  func.func @transform_4(%arg0: i32, %arg1: i32) -> (i32, i32) {
    %c0_i32 = arith.constant 0 : i32
    %c0_i32_0 = arith.constant 0 : i32
    %c0_i32_1 = arith.constant 0 : i32
    return %c0_i32, %c0_i32_0 : i32, i32
  }
  func.func @transform_5(%arg0: i32, %arg1: i32) -> (i32, i32) {
    %c0_i32 = arith.constant 0 : i32
    %c0_i32_0 = arith.constant 0 : i32
    return %arg0, %c0_i32 : i32, i32
  }
}

module attributes {stable_mosaic.version = 11 : i64} {
  func.func @_sage1_qkv_kernel(%arg0: i32, %arg1: i32, %arg2: memref<128x128xbf16, #tpu.memory_space<vmem>>, %arg3: memref<128x128xbf16, #tpu.memory_space<vmem>>, %arg4: memref<128x128xbf16, #tpu.memory_space<vmem>>, %arg5: memref<128x128xbf16, #tpu.memory_space<vmem>>, %arg6: memref<128x128xbf16, #tpu.memory_space<vmem>>, %arg7: memref<1x128xf32, #tpu.memory_space<vmem>>, %arg8: memref<128x128xbf16, #tpu.memory_space<vmem>>, %arg9: memref<1x128xf32, #tpu.memory_space<vmem>>, %arg10: memref<128x128xbf16, #tpu.memory_space<vmem>>, %arg11: memref<1x128xf32, #tpu.memory_space<vmem>>, %arg12: memref<128x128xbf16, #tpu.memory_space<vmem>>, %arg13: memref<1x128xf32, #tpu.memory_space<vmem>>, %arg14: memref<128x128xbf16, #tpu.memory_space<vmem>>, %arg15: memref<128x128xbf16, #tpu.memory_space<vmem>>, %arg16: memref<128x128xbf16, #tpu.memory_space<vmem>>, %arg17: memref<128x128xf32, #tpu.memory_space<vmem>>) attributes {dimension_semantics = [#tpu.dimension_semantics<parallel>, #tpu.dimension_semantics<arbitrary>], iteration_bounds = array<i64: 2, 2>, scalar_prefetch = 0 : i64, scratch_operands = 1 : i64, tpu.core_type = #tpu.core_type<tc>, window_params = [{transform_indices = @transform_0, window_bounds = array<i64: 128, 128>}, {transform_indices = @transform_1, window_bounds = array<i64: 128, 128>}, {transform_indices = @transform_2, window_bounds = array<i64: 128, 128>}, {pipeline_mode = #tpu.pipeline_mode<synchronous>, transform_indices = @transform_3, window_bounds = array<i64: 128, 128>}, {pipeline_mode = #tpu.pipeline_mode<synchronous>, transform_indices = @transform_4, window_bounds = array<i64: 128, 128>}, {pipeline_mode = #tpu.pipeline_mode<synchronous>, transform_indices = @transform_5, window_bounds = array<i64: 1, 128>}, {pipeline_mode = #tpu.pipeline_mode<synchronous>, transform_indices = @transform_6, window_bounds = array<i64: 128, 128>}, {pipeline_mode = #tpu.pipeline_mode<synchronous>, transform_indices = @transform_7, window_bounds = array<i64: 1, 128>}, {pipeline_mode = #tpu.pipeline_mode<synchronous>, transform_indices = @transform_8, window_bounds = array<i64: 128, 128>}, {pipeline_mode = #tpu.pipeline_mode<synchronous>, transform_indices = @transform_9, window_bounds = array<i64: 1, 128>}, {pipeline_mode = #tpu.pipeline_mode<synchronous>, transform_indices = @transform_10, window_bounds = array<i64: 128, 128>}, {pipeline_mode = #tpu.pipeline_mode<synchronous>, transform_indices = @transform_11, window_bounds = array<i64: 1, 128>}, {transform_indices = @transform_12, window_bounds = array<i64: 128, 128>}, {transform_indices = @transform_13, window_bounds = array<i64: 128, 128>}, {transform_indices = @transform_14, window_bounds = array<i64: 128, 128>}]} {
    %c0_i32 = arith.constant 0 : i32
    %0 = arith.cmpi eq, %arg1, %c0_i32 : i32
    %1 = arith.extui %0 : i1 to i32
    %c0_i32_0 = arith.constant 0 : i32
    %2 = arith.cmpi ne, %1, %c0_i32_0 : i32
    scf.if %2 {
      %cst_9 = arith.constant 0.000000e+00 : f32
      %12 = vector.broadcast %cst_9 : f32 to vector<128x128xf32>
      %c0_10 = arith.constant 0 : index
      %c0_11 = arith.constant 0 : index
      %13 = vector.load %arg17[%c0_10, %c0_11] : memref<128x128xf32, #tpu.memory_space<vmem>>, vector<128x128xf32>
      tpu.vector_store %arg17[%c0_10, %c0_11], %12 {strides = array<i32>} : memref<128x128xf32, #tpu.memory_space<vmem>>, vector<128x128xf32>,
    } else {
    }
    %c0 = arith.constant 0 : index
    %c0_1 = arith.constant 0 : index
    %3 = vector.load %arg17[%c0, %c0_1] : memref<128x128xf32, #tpu.memory_space<vmem>>, vector<128x128xf32>
    %c0_2 = arith.constant 0 : index
    %c0_3 = arith.constant 0 : index
    %4 = vector.load %arg2[%c0_2, %c0_3] : memref<128x128xbf16, #tpu.memory_space<vmem>>, vector<128x128xbf16>
    %c0_4 = arith.constant 0 : index
    %c0_5 = arith.constant 0 : index
    %5 = vector.load %arg3[%c0_4, %c0_5] : memref<128x128xbf16, #tpu.memory_space<vmem>>, vector<128x128xbf16>
    %cst = arith.constant dense<0.000000e+00> : vector<128x128xf32>
    %6 = tpu.matmul %4, %5, %cst {dimension_numbers = #tpu.dot_dimension_numbers<[1], [0], [0], [1], [0, 0, 1, 1], [], []>} : vector<128x128xbf16>, vector<128x128xbf16>, vector<128x128xf32> -> vector<128x128xf32>
    %7 = arith.addf %3, %6 : vector<128x128xf32>
    %c0_6 = arith.constant 0 : index
    %c0_7 = arith.constant 0 : index
    %8 = vector.load %arg17[%c0_6, %c0_7] : memref<128x128xf32, #tpu.memory_space<vmem>>, vector<128x128xf32>
    tpu.vector_store %arg17[%c0_6, %c0_7], %7 {strides = array<i32>} : memref<128x128xf32, #tpu.memory_space<vmem>>, vector<128x128xf32>,
    %c1_i32 = arith.constant 1 : i32
    %9 = arith.cmpi eq, %arg1, %c1_i32 : i32
    %10 = arith.extui %9 : i1 to i32
    %c0_i32_8 = arith.constant 0 : i32
    %11 = arith.cmpi ne, %10, %c0_i32_8 : i32
    scf.if %11 {
      %c0_9 = arith.constant 0 : index
      %c0_10 = arith.constant 0 : index
      %12 = vector.load %arg17[%c0_9, %c0_10] : memref<128x128xf32, #tpu.memory_space<vmem>>, vector<128x128xf32>
      %13 = arith.truncf %12 : vector<128x128xf32> to vector<128x128xbf16>
      %c0_11 = arith.constant 0 : index
      %c0_12 = arith.constant 0 : index
      %14 = vector.load %arg4[%c0_11, %c0_12] : memref<128x128xbf16, #tpu.memory_space<vmem>>, vector<128x128xbf16>
      %c0_13 = arith.constant 0 : index
      %c0_14 = arith.constant 0 : index
      %15 = vector.load %arg5[%c0_13, %c0_14] : memref<128x128xbf16, #tpu.memory_space<vmem>>, vector<128x128xbf16>
      %cst_15 = arith.constant dense<0.000000e+00> : vector<128x128xf32>
      %16 = tpu.matmul %14, %15, %cst_15 {dimension_numbers = #tpu.dot_dimension_numbers<[1], [0], [0], [1], [0, 0, 1, 1], [], []>} : vector<128x128xbf16>, vector<128x128xbf16>, vector<128x128xf32> -> vector<128x128xf32>
      %c0_16 = arith.constant 0 : index
      %c0_17 = arith.constant 0 : index
      %17 = vector.load %arg6[%c0_16, %c0_17] : memref<128x128xbf16, #tpu.memory_space<vmem>>, vector<128x128xbf16>
      %cst_18 = arith.constant dense<0.000000e+00> : vector<128x128xf32>
      %18 = tpu.matmul %13, %17, %cst_18 {dimension_numbers = #tpu.dot_dimension_numbers<[1], [0], [0], [1], [0, 0, 1, 1], [], []>} : vector<128x128xbf16>, vector<128x128xbf16>, vector<128x128xf32> -> vector<128x128xf32>
      %19 = arith.addf %16, %18 : vector<128x128xf32>
      %c0_19 = arith.constant 0 : index
      %c0_20 = arith.constant 0 : index
      %20 = vector.load %arg7[%c0_19, %c0_20] : memref<1x128xf32, #tpu.memory_space<vmem>>, vector<1x128xf32>
      %21 = vector.broadcast %20 : vector<1x128xf32> to vector<128x128xf32>
      %22 = arith.addf %19, %21 : vector<128x128xf32>
      %cst_21 = arith.constant 0.000000e+00 : f32
      %23 = vector.broadcast %cst_21 : f32 to vector<128x128xf32>
      %24 = arith.cmpf ogt, %22, %23 : vector<128x128xf32>
      %cst_22 = arith.constant 0.00999999977 : f32
      %25 = vector.broadcast %cst_22 : f32 to vector<128x128xf32>
      %26 = arith.mulf %25, %22 : vector<128x128xf32>
      %27 = arith.select %24, %22, %26 : vector<128x128xi1>, vector<128x128xf32>
      %28 = arith.truncf %27 : vector<128x128xf32> to vector<128x128xbf16>
      %c0_23 = arith.constant 0 : index
      %c0_24 = arith.constant 0 : index
      %29 = vector.load %arg8[%c0_23, %c0_24] : memref<128x128xbf16, #tpu.memory_space<vmem>>, vector<128x128xbf16>
      %cst_25 = arith.constant dense<0.000000e+00> : vector<128x128xf32>
      %30 = tpu.matmul %28, %29, %cst_25 {dimension_numbers = #tpu.dot_dimension_numbers<[1], [0], [0], [1], [0, 0, 1, 1], [], []>} : vector<128x128xbf16>, vector<128x128xbf16>, vector<128x128xf32> -> vector<128x128xf32>
      %c0_26 = arith.constant 0 : index
      %c0_27 = arith.constant 0 : index
      %31 = vector.load %arg9[%c0_26, %c0_27] : memref<1x128xf32, #tpu.memory_space<vmem>>, vector<1x128xf32>
      %32 = vector.broadcast %31 : vector<1x128xf32> to vector<128x128xf32>
      %33 = arith.addf %30, %32 : vector<128x128xf32>
      %34 = arith.truncf %33 : vector<128x128xf32> to vector<128x128xbf16>
      %c0_28 = arith.constant 0 : index
      %c0_29 = arith.constant 0 : index
      %35 = vector.load %arg14[%c0_28, %c0_29] : memref<128x128xbf16, #tpu.memory_space<vmem>>, vector<128x128xbf16>
      tpu.vector_store %arg14[%c0_28, %c0_29], %34 {strides = array<i32>} : memref<128x128xbf16, #tpu.memory_space<vmem>>, vector<128x128xbf16>,
      %c0_30 = arith.constant 0 : index
      %c0_31 = arith.constant 0 : index
      %36 = vector.load %arg10[%c0_30, %c0_31] : memref<128x128xbf16, #tpu.memory_space<vmem>>, vector<128x128xbf16>
      %cst_32 = arith.constant dense<0.000000e+00> : vector<128x128xf32>
      %37 = tpu.matmul %28, %36, %cst_32 {dimension_numbers = #tpu.dot_dimension_numbers<[1], [0], [0], [1], [0, 0, 1, 1], [], []>} : vector<128x128xbf16>, vector<128x128xbf16>, vector<128x128xf32> -> vector<128x128xf32>
      %c0_33 = arith.constant 0 : index
      %c0_34 = arith.constant 0 : index
      %38 = vector.load %arg11[%c0_33, %c0_34] : memref<1x128xf32, #tpu.memory_space<vmem>>, vector<1x128xf32>
      %39 = vector.broadcast %38 : vector<1x128xf32> to vector<128x128xf32>
      %40 = arith.addf %37, %39 : vector<128x128xf32>
      %41 = arith.truncf %40 : vector<128x128xf32> to vector<128x128xbf16>
      %c0_35 = arith.constant 0 : index
      %c0_36 = arith.constant 0 : index
      %42 = vector.load %arg15[%c0_35, %c0_36] : memref<128x128xbf16, #tpu.memory_space<vmem>>, vector<128x128xbf16>
      tpu.vector_store %arg15[%c0_35, %c0_36], %41 {strides = array<i32>} : memref<128x128xbf16, #tpu.memory_space<vmem>>, vector<128x128xbf16>,
      %c0_37 = arith.constant 0 : index
      %c0_38 = arith.constant 0 : index
      %43 = vector.load %arg12[%c0_37, %c0_38] : memref<128x128xbf16, #tpu.memory_space<vmem>>, vector<128x128xbf16>
      %cst_39 = arith.constant dense<0.000000e+00> : vector<128x128xf32>
      %44 = tpu.matmul %28, %43, %cst_39 {dimension_numbers = #tpu.dot_dimension_numbers<[1], [0], [0], [1], [0, 0, 1, 1], [], []>} : vector<128x128xbf16>, vector<128x128xbf16>, vector<128x128xf32> -> vector<128x128xf32>
      %c0_40 = arith.constant 0 : index
      %c0_41 = arith.constant 0 : index
      %45 = vector.load %arg13[%c0_40, %c0_41] : memref<1x128xf32, #tpu.memory_space<vmem>>, vector<1x128xf32>
      %46 = vector.broadcast %45 : vector<1x128xf32> to vector<128x128xf32>
      %47 = arith.addf %44, %46 : vector<128x128xf32>
      %48 = arith.truncf %47 : vector<128x128xf32> to vector<128x128xbf16>
      %c0_42 = arith.constant 0 : index
      %c0_43 = arith.constant 0 : index
      %49 = vector.load %arg16[%c0_42, %c0_43] : memref<128x128xbf16, #tpu.memory_space<vmem>>, vector<128x128xbf16>
      tpu.vector_store %arg16[%c0_42, %c0_43], %48 {strides = array<i32>} : memref<128x128xbf16, #tpu.memory_space<vmem>>, vector<128x128xbf16>,
    } else {
    }
    return
  }
  func.func @transform_0(%arg0: i32, %arg1: i32) -> (i32, i32) {
    %c0_i32 = arith.constant 0 : i32
    return %arg0, %arg1 : i32, i32
  }
  func.func @transform_1(%arg0: i32, %arg1: i32) -> (i32, i32) {
    %c0_i32 = arith.constant 0 : i32
    %c0_i32_0 = arith.constant 0 : i32
    return %arg1, %c0_i32 : i32, i32
  }
  func.func @transform_2(%arg0: i32, %arg1: i32) -> (i32, i32) {
    %c0_i32 = arith.constant 0 : i32
    %c0_i32_0 = arith.constant 0 : i32
    return %arg0, %c0_i32 : i32, i32
  }
  func.func @transform_3(%arg0: i32, %arg1: i32) -> (i32, i32) {
    %c0_i32 = arith.constant 0 : i32
    %c0_i32_0 = arith.constant 0 : i32
    %c0_i32_1 = arith.constant 0 : i32
    return %c0_i32, %c0_i32_0 : i32, i32
  }
  func.func @transform_4(%arg0: i32, %arg1: i32) -> (i32, i32) {
    %c0_i32 = arith.constant 0 : i32
    %c0_i32_0 = arith.constant 0 : i32
    %c0_i32_1 = arith.constant 0 : i32
    return %c0_i32, %c0_i32_0 : i32, i32
  }
  func.func @transform_5(%arg0: i32, %arg1: i32) -> (i32, i32) {
    %c0_i32 = arith.constant 0 : i32
    %c0_i32_0 = arith.constant 0 : i32
    %c0_i32_1 = arith.constant 0 : i32
    return %c0_i32, %c0_i32_0 : i32, i32
  }
  func.func @transform_6(%arg0: i32, %arg1: i32) -> (i32, i32) {
    %c0_i32 = arith.constant 0 : i32
    %c0_i32_0 = arith.constant 0 : i32
    %c0_i32_1 = arith.constant 0 : i32
    return %c0_i32, %c0_i32_0 : i32, i32
  }
  func.func @transform_7(%arg0: i32, %arg1: i32) -> (i32, i32) {
    %c0_i32 = arith.constant 0 : i32
    %c0_i32_0 = arith.constant 0 : i32
    %c0_i32_1 = arith.constant 0 : i32
    return %c0_i32, %c0_i32_0 : i32, i32
  }
  func.func @transform_8(%arg0: i32, %arg1: i32) -> (i32, i32) {
    %c0_i32 = arith.constant 0 : i32
    %c0_i32_0 = arith.constant 0 : i32
    %c0_i32_1 = arith.constant 0 : i32
    return %c0_i32, %c0_i32_0 : i32, i32
  }
  func.func @transform_9(%arg0: i32, %arg1: i32) -> (i32, i32) {
    %c0_i32 = arith.constant 0 : i32
    %c0_i32_0 = arith.constant 0 : i32
    %c0_i32_1 = arith.constant 0 : i32
    return %c0_i32, %c0_i32_0 : i32, i32
  }
  func.func @transform_10(%arg0: i32, %arg1: i32) -> (i32, i32) {
    %c0_i32 = arith.constant 0 : i32
    %c0_i32_0 = arith.constant 0 : i32
    %c0_i32_1 = arith.constant 0 : i32
    return %c0_i32, %c0_i32_0 : i32, i32
  }
  func.func @transform_11(%arg0: i32, %arg1: i32) -> (i32, i32) {
    %c0_i32 = arith.constant 0 : i32
    %c0_i32_0 = arith.constant 0 : i32
    %c0_i32_1 = arith.constant 0 : i32
    return %c0_i32, %c0_i32_0 : i32, i32
  }
  func.func @transform_12(%arg0: i32, %arg1: i32) -> (i32, i32) {
    %c0_i32 = arith.constant 0 : i32
    %c0_i32_0 = arith.constant 0 : i32
    return %arg0, %c0_i32 : i32, i32
  }
  func.func @transform_13(%arg0: i32, %arg1: i32) -> (i32, i32) {
    %c0_i32 = arith.constant 0 : i32
    %c0_i32_0 = arith.constant 0 : i32
    return %arg0, %c0_i32 : i32, i32
  }
  func.func @transform_14(%arg0: i32, %arg1: i32) -> (i32, i32) {
    %c0_i32 = arith.constant 0 : i32
    %c0_i32_0 = arith.constant 0 : i32
    return %arg0, %c0_i32 : i32, i32
  }
}

module attributes {stable_mosaic.version = 11 : i64} {
  func.func @_sage2_heads_kernel(%arg0: i32, %arg1: i32, %arg2: memref<128x128xbf16, #tpu.memory_space<vmem>>, %arg3: memref<128x128xbf16, #tpu.memory_space<vmem>>, %arg4: memref<128x128xbf16, #tpu.memory_space<vmem>>, %arg5: memref<128x128xbf16, #tpu.memory_space<vmem>>, %arg6: memref<128x128xbf16, #tpu.memory_space<vmem>>, %arg7: memref<1x128xf32, #tpu.memory_space<vmem>>, %arg8: memref<128x128xbf16, #tpu.memory_space<vmem>>, %arg9: memref<1x128xf32, #tpu.memory_space<vmem>>, %arg10: memref<128x128xbf16, #tpu.memory_space<vmem>>, %arg11: memref<1x128xf32, #tpu.memory_space<vmem>>, %arg12: memref<128x128xf32, #tpu.memory_space<vmem>>, %arg13: memref<128x128xf32, #tpu.memory_space<vmem>>, %arg14: memref<128x128xf32, #tpu.memory_space<vmem>>) attributes {dimension_semantics = [#tpu.dimension_semantics<parallel>, #tpu.dimension_semantics<arbitrary>], iteration_bounds = array<i64: 2, 2>, scalar_prefetch = 0 : i64, scratch_operands = 1 : i64, tpu.core_type = #tpu.core_type<tc>, window_params = [{transform_indices = @transform_0, window_bounds = array<i64: 128, 128>}, {transform_indices = @transform_1, window_bounds = array<i64: 128, 128>}, {transform_indices = @transform_2, window_bounds = array<i64: 128, 128>}, {pipeline_mode = #tpu.pipeline_mode<synchronous>, transform_indices = @transform_3, window_bounds = array<i64: 128, 128>}, {pipeline_mode = #tpu.pipeline_mode<synchronous>, transform_indices = @transform_4, window_bounds = array<i64: 128, 128>}, {pipeline_mode = #tpu.pipeline_mode<synchronous>, transform_indices = @transform_5, window_bounds = array<i64: 1, 128>}, {pipeline_mode = #tpu.pipeline_mode<synchronous>, transform_indices = @transform_6, window_bounds = array<i64: 128, 128>}, {pipeline_mode = #tpu.pipeline_mode<synchronous>, transform_indices = @transform_7, window_bounds = array<i64: 1, 128>}, {pipeline_mode = #tpu.pipeline_mode<synchronous>, transform_indices = @transform_8, window_bounds = array<i64: 128, 128>}, {pipeline_mode = #tpu.pipeline_mode<synchronous>, transform_indices = @transform_9, window_bounds = array<i64: 1, 128>}, {transform_indices = @transform_10, window_bounds = array<i64: 128, 128>}, {transform_indices = @transform_11, window_bounds = array<i64: 128, 128>}]} {
    %c0_i32 = arith.constant 0 : i32
    %0 = arith.cmpi eq, %arg1, %c0_i32 : i32
    %1 = arith.extui %0 : i1 to i32
    %c0_i32_0 = arith.constant 0 : i32
    %2 = arith.cmpi ne, %1, %c0_i32_0 : i32
    scf.if %2 {
      %cst_9 = arith.constant 0.000000e+00 : f32
      %12 = vector.broadcast %cst_9 : f32 to vector<128x128xf32>
      %c0_10 = arith.constant 0 : index
      %c0_11 = arith.constant 0 : index
      %13 = vector.load %arg14[%c0_10, %c0_11] : memref<128x128xf32, #tpu.memory_space<vmem>>, vector<128x128xf32>
      tpu.vector_store %arg14[%c0_10, %c0_11], %12 {strides = array<i32>} : memref<128x128xf32, #tpu.memory_space<vmem>>, vector<128x128xf32>,
    } else {
    }
    %c0 = arith.constant 0 : index
    %c0_1 = arith.constant 0 : index
    %3 = vector.load %arg14[%c0, %c0_1] : memref<128x128xf32, #tpu.memory_space<vmem>>, vector<128x128xf32>
    %c0_2 = arith.constant 0 : index
    %c0_3 = arith.constant 0 : index
    %4 = vector.load %arg2[%c0_2, %c0_3] : memref<128x128xbf16, #tpu.memory_space<vmem>>, vector<128x128xbf16>
    %c0_4 = arith.constant 0 : index
    %c0_5 = arith.constant 0 : index
    %5 = vector.load %arg3[%c0_4, %c0_5] : memref<128x128xbf16, #tpu.memory_space<vmem>>, vector<128x128xbf16>
    %cst = arith.constant dense<0.000000e+00> : vector<128x128xf32>
    %6 = tpu.matmul %4, %5, %cst {dimension_numbers = #tpu.dot_dimension_numbers<[1], [0], [0], [1], [0, 0, 1, 1], [], []>} : vector<128x128xbf16>, vector<128x128xbf16>, vector<128x128xf32> -> vector<128x128xf32>
    %7 = arith.addf %3, %6 : vector<128x128xf32>
    %c0_6 = arith.constant 0 : index
    %c0_7 = arith.constant 0 : index
    %8 = vector.load %arg14[%c0_6, %c0_7] : memref<128x128xf32, #tpu.memory_space<vmem>>, vector<128x128xf32>
    tpu.vector_store %arg14[%c0_6, %c0_7], %7 {strides = array<i32>} : memref<128x128xf32, #tpu.memory_space<vmem>>, vector<128x128xf32>,
    %c1_i32 = arith.constant 1 : i32
    %9 = arith.cmpi eq, %arg1, %c1_i32 : i32
    %10 = arith.extui %9 : i1 to i32
    %c0_i32_8 = arith.constant 0 : i32
    %11 = arith.cmpi ne, %10, %c0_i32_8 : i32
    scf.if %11 {
      %c0_9 = arith.constant 0 : index
      %c0_10 = arith.constant 0 : index
      %12 = vector.load %arg14[%c0_9, %c0_10] : memref<128x128xf32, #tpu.memory_space<vmem>>, vector<128x128xf32>
      %13 = arith.truncf %12 : vector<128x128xf32> to vector<128x128xbf16>
      %c0_11 = arith.constant 0 : index
      %c0_12 = arith.constant 0 : index
      %14 = vector.load %arg4[%c0_11, %c0_12] : memref<128x128xbf16, #tpu.memory_space<vmem>>, vector<128x128xbf16>
      %c0_13 = arith.constant 0 : index
      %c0_14 = arith.constant 0 : index
      %15 = vector.load %arg5[%c0_13, %c0_14] : memref<128x128xbf16, #tpu.memory_space<vmem>>, vector<128x128xbf16>
      %cst_15 = arith.constant dense<0.000000e+00> : vector<128x128xf32>
      %16 = tpu.matmul %14, %15, %cst_15 {dimension_numbers = #tpu.dot_dimension_numbers<[1], [0], [0], [1], [0, 0, 1, 1], [], []>} : vector<128x128xbf16>, vector<128x128xbf16>, vector<128x128xf32> -> vector<128x128xf32>
      %c0_16 = arith.constant 0 : index
      %c0_17 = arith.constant 0 : index
      %17 = vector.load %arg6[%c0_16, %c0_17] : memref<128x128xbf16, #tpu.memory_space<vmem>>, vector<128x128xbf16>
      %cst_18 = arith.constant dense<0.000000e+00> : vector<128x128xf32>
      %18 = tpu.matmul %13, %17, %cst_18 {dimension_numbers = #tpu.dot_dimension_numbers<[1], [0], [0], [1], [0, 0, 1, 1], [], []>} : vector<128x128xbf16>, vector<128x128xbf16>, vector<128x128xf32> -> vector<128x128xf32>
      %19 = arith.addf %16, %18 : vector<128x128xf32>
      %c0_19 = arith.constant 0 : index
      %c0_20 = arith.constant 0 : index
      %20 = vector.load %arg7[%c0_19, %c0_20] : memref<1x128xf32, #tpu.memory_space<vmem>>, vector<1x128xf32>
      %21 = vector.broadcast %20 : vector<1x128xf32> to vector<128x128xf32>
      %22 = arith.addf %19, %21 : vector<128x128xf32>
      %cst_21 = arith.constant 0.000000e+00 : f32
      %23 = vector.broadcast %cst_21 : f32 to vector<128x128xf32>
      %24 = arith.cmpf ogt, %22, %23 : vector<128x128xf32>
      %cst_22 = arith.constant 0.00999999977 : f32
      %25 = vector.broadcast %cst_22 : f32 to vector<128x128xf32>
      %26 = arith.mulf %25, %22 : vector<128x128xf32>
      %27 = arith.select %24, %22, %26 : vector<128x128xi1>, vector<128x128xf32>
      %c0_23 = arith.constant 0 : index
      %c0_24 = arith.constant 0 : index
      %28 = vector.load %arg12[%c0_23, %c0_24] : memref<128x128xf32, #tpu.memory_space<vmem>>, vector<128x128xf32>
      tpu.vector_store %arg12[%c0_23, %c0_24], %27 {strides = array<i32>} : memref<128x128xf32, #tpu.memory_space<vmem>>, vector<128x128xf32>,
      %29 = arith.truncf %27 : vector<128x128xf32> to vector<128x128xbf16>
      %c0_25 = arith.constant 0 : index
      %c0_26 = arith.constant 0 : index
      %30 = vector.load %arg8[%c0_25, %c0_26] : memref<128x128xbf16, #tpu.memory_space<vmem>>, vector<128x128xbf16>
      %cst_27 = arith.constant dense<0.000000e+00> : vector<128x128xf32>
      %31 = tpu.matmul %29, %30, %cst_27 {dimension_numbers = #tpu.dot_dimension_numbers<[1], [0], [0], [1], [0, 0, 1, 1], [], []>} : vector<128x128xbf16>, vector<128x128xbf16>, vector<128x128xf32> -> vector<128x128xf32>
      %c0_28 = arith.constant 0 : index
      %c0_29 = arith.constant 0 : index
      %32 = vector.load %arg9[%c0_28, %c0_29] : memref<1x128xf32, #tpu.memory_space<vmem>>, vector<1x128xf32>
      %33 = vector.broadcast %32 : vector<1x128xf32> to vector<128x128xf32>
      %34 = arith.addf %31, %33 : vector<128x128xf32>
      %cst_30 = arith.constant 0.000000e+00 : f32
      %35 = vector.broadcast %cst_30 : f32 to vector<128x128xf32>
      %36 = arith.maximumf %34, %35 : vector<128x128xf32>
      %37 = arith.truncf %36 : vector<128x128xf32> to vector<128x128xbf16>
      %c0_31 = arith.constant 0 : index
      %c0_32 = arith.constant 0 : index
      %38 = vector.load %arg10[%c0_31, %c0_32] : memref<128x128xbf16, #tpu.memory_space<vmem>>, vector<128x128xbf16>
      %cst_33 = arith.constant dense<0.000000e+00> : vector<128x128xf32>
      %39 = tpu.matmul %37, %38, %cst_33 {dimension_numbers = #tpu.dot_dimension_numbers<[1], [0], [0], [1], [0, 0, 1, 1], [], []>} : vector<128x128xbf16>, vector<128x128xbf16>, vector<128x128xf32> -> vector<128x128xf32>
      %c0_34 = arith.constant 0 : index
      %c0_35 = arith.constant 0 : index
      %40 = vector.load %arg11[%c0_34, %c0_35] : memref<1x128xf32, #tpu.memory_space<vmem>>, vector<1x128xf32>
      %41 = vector.broadcast %40 : vector<1x128xf32> to vector<128x128xf32>
      %42 = arith.addf %39, %41 : vector<128x128xf32>
      %c0_36 = arith.constant 0 : index
      %c0_37 = arith.constant 0 : index
      %43 = vector.load %arg13[%c0_36, %c0_37] : memref<128x128xf32, #tpu.memory_space<vmem>>, vector<128x128xf32>
      tpu.vector_store %arg13[%c0_36, %c0_37], %42 {strides = array<i32>} : memref<128x128xf32, #tpu.memory_space<vmem>>, vector<128x128xf32>,
    } else {
    }
    return
  }
  func.func @transform_0(%arg0: i32, %arg1: i32) -> (i32, i32) {
    %c0_i32 = arith.constant 0 : i32
    return %arg0, %arg1 : i32, i32
  }
  func.func @transform_1(%arg0: i32, %arg1: i32) -> (i32, i32) {
    %c0_i32 = arith.constant 0 : i32
    %c0_i32_0 = arith.constant 0 : i32
    return %arg1, %c0_i32 : i32, i32
  }
  func.func @transform_2(%arg0: i32, %arg1: i32) -> (i32, i32) {
    %c0_i32 = arith.constant 0 : i32
    %c0_i32_0 = arith.constant 0 : i32
    return %arg0, %c0_i32 : i32, i32
  }
  func.func @transform_3(%arg0: i32, %arg1: i32) -> (i32, i32) {
    %c0_i32 = arith.constant 0 : i32
    %c0_i32_0 = arith.constant 0 : i32
    %c0_i32_1 = arith.constant 0 : i32
    return %c0_i32, %c0_i32_0 : i32, i32
  }
  func.func @transform_4(%arg0: i32, %arg1: i32) -> (i32, i32) {
    %c0_i32 = arith.constant 0 : i32
    %c0_i32_0 = arith.constant 0 : i32
    %c0_i32_1 = arith.constant 0 : i32
    return %c0_i32, %c0_i32_0 : i32, i32
  }
  func.func @transform_5(%arg0: i32, %arg1: i32) -> (i32, i32) {
    %c0_i32 = arith.constant 0 : i32
    %c0_i32_0 = arith.constant 0 : i32
    %c0_i32_1 = arith.constant 0 : i32
    return %c0_i32, %c0_i32_0 : i32, i32
  }
  func.func @transform_6(%arg0: i32, %arg1: i32) -> (i32, i32) {
    %c0_i32 = arith.constant 0 : i32
    %c0_i32_0 = arith.constant 0 : i32
    %c0_i32_1 = arith.constant 0 : i32
    return %c0_i32, %c0_i32_0 : i32, i32
  }
  func.func @transform_7(%arg0: i32, %arg1: i32) -> (i32, i32) {
    %c0_i32 = arith.constant 0 : i32
    %c0_i32_0 = arith.constant 0 : i32
    %c0_i32_1 = arith.constant 0 : i32
    return %c0_i32, %c0_i32_0 : i32, i32
  }
  func.func @transform_8(%arg0: i32, %arg1: i32) -> (i32, i32) {
    %c0_i32 = arith.constant 0 : i32
    %c0_i32_0 = arith.constant 0 : i32
    %c0_i32_1 = arith.constant 0 : i32
    return %c0_i32, %c0_i32_0 : i32, i32
  }
  func.func @transform_9(%arg0: i32, %arg1: i32) -> (i32, i32) {
    %c0_i32 = arith.constant 0 : i32
    %c0_i32_0 = arith.constant 0 : i32
    %c0_i32_1 = arith.constant 0 : i32
    return %c0_i32, %c0_i32_0 : i32, i32
  }
  func.func @transform_10(%arg0: i32, %arg1: i32) -> (i32, i32) {
    %c0_i32 = arith.constant 0 : i32
    %c0_i32_0 = arith.constant 0 : i32
    return %arg0, %c0_i32 : i32, i32
  }
  func.func @transform_11(%arg0: i32, %arg1: i32) -> (i32, i32) {
    %c0_i32 = arith.constant 0 : i32
    %c0_i32_0 = arith.constant 0 : i32
    return %arg0, %c0_i32 : i32, i32
  }
}

</mosaic_0001>

<bundles_post_ra>
// kernel: word_sage_forward.3
= control target key start
LH: loop header
LB: loop body
LE: loop exit
PB: predicated region body
PF: predicated region fallthrough
CT: control target
= control target key end

     0   :  { %s3717_s0 = inlined_call_operand.vmem [shape: bf16[256,256], index: 0, kind: input, shape index: {}]   ;;  %s3718_s1 = inlined_call_operand.vmem [shape: bf16[256,128], index: 1, kind: input, shape index: {}, may-alias: {1,2}]   ;;  %s3719_s2 = inlined_call_operand.vmem [shape: bf16[256,128], index: 2, kind: input, shape index: {}, may-alias: {1,2}]   ;;  %s3720_s3 = inlined_call_operand.vmem [shape: bf16[128,128], index: 3, kind: input, shape index: {}]   ;;  %s3721_s4 = inlined_call_operand.vmem [shape: bf16[128,128], index: 4, kind: input, shape index: {}]   ;;  %s3722_s5 = inlined_call_operand.vmem [shape: f32[1,128], index: 5, kind: input, shape index: {}]   ;;  %s3723_s6 = inlined_call_operand.vmem [shape: bf16[128,128], index: 6, kind: input, shape index: {}]   ;;  %s3724_s7 = inlined_call_operand.vmem [shape: f32[1,128], index: 7, kind: input, shape index: {}]   ;;  %s3725_s8 = inlined_call_operand.vmem [shape: bf16[128,128], index: 8, kind: input, shape index: {}]   ;;  %s3726_s9 = inlined_call_operand.vmem [shape: f32[1,128], index: 9, kind: input, shape index: {}]   ;;  %s3727_s10 = inlined_call_operand.vmem [shape: bf16[128,128], index: 10, kind: input, shape index: {}]   ;;  %s3728_s11 = inlined_call_operand.vmem [shape: f32[1,128], index: 11, kind: input, shape index: {}]   ;;  %s3729_s12 = inlined_call_operand.vmem [shape: bf16[256,128], index: 12, kind: output, shape index: {0}]   ;;  %s3730_s13 = inlined_call_operand.vmem [shape: bf16[256,128], index: 13, kind: output, shape index: {1}]   ;;  %s3731_s14 = inlined_call_operand.vmem [shape: bf16[256,128], index: 14, kind: output, shape index: {2}]  }
   0x1   :  { %3735 = sst [smem:[#allocation7_spill]] %s3717_s0 }
   0x2   :  { %3736 = sst [smem:[#allocation8_spill]] %s3722_s5 }
   0x3   :  { %3737 = sst [smem:[#allocation9_spill]] %s3724_s7 }
   0x4   :  { %3738 = sst [smem:[#allocation10_spill]] %s3726_s9 }
   0x5   :  { %3739 = sst [smem:[#allocation11_spill]] %s3728_s11 }
   0x6   :  { %s3277_s29 = smov 0   ;;  %s3279_s30 = smov 0  }
   0x7   :  { %s3281_s15 = smov 0   ;;  %s3283_s16 = smov 0  }
   0x8   :  { %s3285_s17 = smov 0   ;;  %s3287_s18 = smov 0  }
   0x9   :  { %s3289_s19 = smov 0  }
   0xa LB: > { %3740 = sst [smem:[#allocation4_spill]] %s3195_s18  ;;  %s34_s20 = sadd.s32 1, %s3191_s17  ;;  %s3199_s19 = sphi %s3289_s19, %s25_s19   ;;  %s3195_s18 = sphi %s3287_s18, %s3750_s18   ;;  %s3191_s17 = sphi %s3285_s17, %s3754_s17   ;;  %s3187_s16 = sphi %s3283_s16, %s3748_s16   ;;  %s3183_s15 = sphi %s3281_s15, %s3753_s15   ;;  %s3179_s30 = sphi %s3279_s30, %s3752_s30   ;;  %s3175_s29 = sphi %s3277_s29, %s3751_s29  }
   0xb   : > { %p35_p0 = scmp.ge.s32.totalorder %s34_s20, 2  ;;  %s37_s21 = sadd.s32 1, %s3195_s18 }
   0xc   : > { %p53_p1 = scmp.ne.s32.totalorder %s3179_s30, %s3175_s29  ;;  %p54_p2 = scmp.eq.s32.totalorder %s3199_s19, 0 }
   0xd   : > { %s3756_s20 = smov (%p35_p0, %s34_s20), 0  ;;  %s3758_s21 = smov (!%p35_p0, %s37_s21), %s3195_s18 }
   0xe   : > { %3741 = sst [smem:[#allocation5_spill]] %s3756_s20  ;;  %p55_p3 = por %p54_p2, %p53_p1 }
   0xf   : > { %p39_p4 = scmp.ge.s32.totalorder %s3758_s21, 2  ;;  %s42_s22 = ssub.s32 %s3191_s17, %s3756_s20 }
  0x10   : > { %s46_s25 = sadd.s32 1, %s3179_s30  ;;  %p2361_p6 = scmp.ge.s32.totalorder %s3199_s19, 4 }
  0x11   : > { %s3760_s21 = smov (%p39_p4, %s3758_s21), 0 }
  0x12   : > { %3742 = sst [smem:[#allocation6_spill]] %s3760_s21  ;;  %s41_s23 = ssub.s32 %s3195_s18, %s3760_s21 }
  0x13   : > { %s43_s24 = sor.u32 %s42_s22, %s41_s23  ;;  %425 = sbr.rel (%p2361_p6) target bundleno = 46 (0x2e), region = 52 }
  0x14   : > { %p44_p5 = scmp.eq.s32.totalorder %s43_s24, 0 }
  0x16   : > { %s3328_s26 = scalar_select %p44_p5, %s3179_s30, %s46_s25  }
  0x1a   : > { %428 = sbr.rel (!%p55_p3) target bundleno = 46 (0x2e), region = 56  ;;  %s430_s27 = sand.u32 (%p55_p3), 1, %s3179_s30  }
  0x1b   : > { %s2498_s28 = sshll.u32 (%p55_p3), %s3195_s18, 5  ;;  %s2362_s9 = sshll.u32 (%p55_p3), %s430_s27, 6 }
  0x1c   : > { %s435_s20 = sadd.s32 (%p55_p3), %s3191_s17, %s2498_s28  ;;  %s3743_s0 = sld [smem:[#allocation7_spill]] (%p55_p3) }
  0x1d   : > { %s2365_s11 = sshll.u32 (%p55_p3), %s435_s20, 2  ;;  %s432_s23 = scalar_lea.vmem (%p55_p3), [#allocation3], %s2362_s9 }
  0x22   : > { %s3337_s22 = scalar_lea.vmem %s3743_s0, %s2365_s11 }
  0x23   : > { %v453_v0 = vld [vmem:[%s3337_s22] sm:$0xf]  ;;  %v455_v1 = vld [vmem:[%s3337_s22 + $0x8] sm:$0xf]  ;;  %v457_v2 = vld [vmem:[%s3337_s22 + $0x10] sm:$0xf] }
  0x24   : > { %454 = vst [vmem:[%s432_s23] sm:$0xf] %v453_v0  ;;  %456 = vst [vmem:[%s432_s23 + $0x4] sm:$0xf] %v455_v1  ;;  %v459_v3 = vld [vmem:[%s3337_s22 + $0x18] sm:$0xf] }
  0x25   : > { %458 = vst [vmem:[%s432_s23 + $0x8] sm:$0xf] %v457_v2  ;;  %v461_v4 = vld [vmem:[%s3337_s22 + $0x20] sm:$0xf]  ;;  %v463_v5 = vld [vmem:[%s3337_s22 + $0x28] sm:$0xf] }
  0x26   : > { %460 = vst [vmem:[%s432_s23 + $0xc] sm:$0xf] %v459_v3  ;;  %462 = vst [vmem:[%s432_s23 + $0x10] sm:$0xf] %v461_v4  ;;  %v465_v6 = vld [vmem:[%s3337_s22 + $0x30] sm:$0xf] }
  0x27   : > { %464 = vst [vmem:[%s432_s23 + $0x14] sm:$0xf] %v463_v5  ;;  %v467_v7 = vld [vmem:[%s3337_s22 + $0x38] sm:$0xf]  ;;  %v469_v8 = vld [vmem:[%s3337_s22 + $0x40] sm:$0xf] }
  0x28   : > { %466 = vst [vmem:[%s432_s23 + $0x18] sm:$0xf] %v465_v6  ;;  %468 = vst [vmem:[%s432_s23 + $0x1c] sm:$0xf] %v467_v7  ;;  %v471_v9 = vld [vmem:[%s3337_s22 + $0x48] sm:$0xf] }
  0x29   : > { %470 = vst [vmem:[%s432_s23 + $0x20] sm:$0xf] %v469_v8  ;;  %v473_v10 = vld [vmem:[%s3337_s22 + $0x50] sm:$0xf]  ;;  %v475_v11 = vld [vmem:[%s3337_s22 + $0x58] sm:$0xf] }
  0x2a   : > { %472 = vst [vmem:[%s432_s23 + $0x24] sm:$0xf] %v471_v9  ;;  %474 = vst [vmem:[%s432_s23 + $0x28] sm:$0xf] %v473_v10  ;;  %v477_v12 = vld [vmem:[%s3337_s22 + $0x60] sm:$0xf] }
  0x2b   : > { %476 = vst [vmem:[%s432_s23 + $0x2c] sm:$0xf] %v475_v11  ;;  %v479_v13 = vld [vmem:[%s3337_s22 + $0x68] sm:$0xf]  ;;  %v481_v14 = vld [vmem:[%s3337_s22 + $0x70] sm:$0xf] }
  0x2c   : > { %478 = vst [vmem:[%s432_s23 + $0x30] sm:$0xf] %v477_v12  ;;  %480 = vst [vmem:[%s432_s23 + $0x34] sm:$0xf] %v479_v13  ;;  %v483_v15 = vld [vmem:[%s3337_s22 + $0x78] sm:$0xf] }
  0x2d   : > { %482 = vst [vmem:[%s432_s23 + $0x38] sm:$0xf] %v481_v14  ;;  %484 = vst [vmem:[%s432_s23 + $0x3c] sm:$0xf] %v483_v15 }
  0x2e PF: > { %p2366_p7 = scmp.ge.s32.totalorder %s3199_s19, 1  ;;  %p556_p8 = scmp.lt.s32.totalorder %s3199_s19, 5 }
  0x30   : > { %p557_p9 = pnand %p2366_p7, %p556_p8 }
  0x31   : > { %s563_s5 = sand.u32 (!%p557_p9), 1, %s3175_s29   ;;  %s2368_s7 = sshll.u32 (!%p557_p9), %s3183_s15, 4 }
  0x32   : > { %560 = sbr.rel (%p557_p9) target bundleno = 877 (0x36d), region = 105  ;;  %s2367_s9 = sshll.u32 (!%p557_p9), %s563_s5, 6 }
  0x33   : > { %p630_p10 = scmp.lt.s32.totalorder (!%p557_p9), %s2368_s7, 31  ;;  %s2370_s11 = sshll.u32 (!%p557_p9), %s3187_s16, 4 }
  0x34   : > { %p636_p11 = scmp.lt.s32.totalorder (!%p557_p9), %s2370_s11, 31  ;;  %p2378_p12 = scmp.ne.s32.totalorder (!%p557_p9), %s3183_s15, 0 }
  0x39   : > { %s3762_s7 = smov (!%p630_p10, %s2368_s7), 31  ;;  %s3764_s11 = smov (!%p636_p11, %s2370_s11), 31 }
  0x3a   : > { %s2369_s20 = sshll.u32 %s3762_s7, 2  ;;  %s2371_s28 = sshll.u32 %s3764_s11, 2  ;;  %v3201_v16 = vmov (!%p2378_p12), 0.0  }
  0x3b   : > { %s3363_s27 = scalar_lea.vmem %s3718_s1, %s2369_s20  ;;  %s3368_s0 = scalar_lea.vmem %s3719_s2, %s2371_s28  ;;  %664 = vst [vmem:[#allocation2] sm:$0xff] (!%p2378_p12), %v3201_v16  ;;  %665 = vst [vmem:[#allocation2 + $0x8] sm:$0xff] (!%p2378_p12), %v3201_v16 }
  0x3c   : > { %s3373_s5 = scalar_lea.vmem %s3729_s12, %s2371_s28  ;;  %s3378_s7 = scalar_lea.vmem %s3730_s13, %s2371_s28  ;;  %666 = vst [vmem:[#allocation2 + $0x10] sm:$0xff] (!%p2378_p12), %v3201_v16  ;;  %667 = vst [vmem:[#allocation2 + $0x18] sm:$0xff] (!%p2378_p12), %v3201_v16 }
  0x3d   : > { %s3383_s25 = scalar_lea.vmem %s3731_s14, %s2371_s28  ;;  %s3385_s11 = scalar_lea.vmem [#allocation3], %s2367_s9  ;;  %668 = vst [vmem:[#allocation2 + $0x20] sm:$0xff] (!%p2378_p12), %v3201_v16  ;;  %669 = vst [vmem:[#allocation2 + $0x28] sm:$0xff] (!%p2378_p12), %v3201_v16 }
  0x3e   : > { %663 = sbr.rel (%p2378_p12) target bundleno = 69 (0x45), region = 113  ;;  %670 = vst [vmem:[#allocation2 + $0x30] sm:$0xff] (!%p2378_p12), %v3201_v16  ;;  %671 = vst [vmem:[#allocation2 + $0x38] sm:$0xff] (!%p2378_p12), %v3201_v16 }
  0x3f   : > { %672 = vst [vmem:[#allocation2 + $0x40] sm:$0xff] (!%p2378_p12), %v3201_v16  ;;  %673 = vst [vmem:[#allocation2 + $0x48] sm:$0xff] (!%p2378_p12), %v3201_v16 }
  0x40   : > { %674 = vst [vmem:[#allocation2 + $0x50] sm:$0xff] (!%p2378_p12), %v3201_v16  ;;  %675 = vst [vmem:[#allocation2 + $0x58] sm:$0xff] (!%p2378_p12), %v3201_v16 }
  0x41   : > { %676 = vst [vmem:[#allocation2 + $0x60] sm:$0xff] (!%p2378_p12), %v3201_v16  ;;  %677 = vst [vmem:[#allocation2 + $0x68] sm:$0xff] (!%p2378_p12), %v3201_v16 }
  0x42   : > { %678 = vst [vmem:[#allocation2 + $0x70] sm:$0xff] (!%p2378_p12), %v3201_v16  ;;  %679 = vst [vmem:[#allocation2 + $0x78] sm:$0xff] (!%p2378_p12), %v3201_v16 }
  0x45 PF: > { %v3081_v17 = vld [vmem:[%s3363_s27] sm:$0xff]   ;;  %v3082_v18 = vld [vmem:[%s3363_s27 + $0x8] sm:$0xff]   ;;  %v3083_v19 = vld [vmem:[%s3363_s27 + $0x10] sm:$0xff]   ;;  %p2395_p13 = scmp.ne.s32.totalorder %s3183_s15, 1 }
  0x46   : > { %2784 = vmatprep.subr.bf16.mxu0 %v3081_v17  ;;  %2976 = vmatprep.subr.bf16.mxu1 %v3081_v17  ;;  %v3084_v20 = vld [vmem:[%s3363_s27 + $0x18] sm:$0xff]   ;;  %v3089_v21 = vld [vmem:[%s3385_s11] sm:$0xff]   ;;  %v3086_v24 = vld [vmem:[%s3363_s27 + $0x28] sm:$0xff]   ;;  %s3744_s9 = sld [smem:[#allocation8_spill]] (!%p2395_p13)  ;;  %s3745_s22 = sld [smem:[#allocation9_spill]] (!%p2395_p13) }
  0x47   : > { %2785 = vmatpush3.bf16.msra.mxu0 %v3081_v17  ;;  %2984 = vmatpush3.bf16.msra.mxu1 %v3081_v17  ;;  %v3090_v22 = vld [vmem:[%s3385_s11 + $0x20] sm:$0xff]   ;;  %v3087_v25 = vld [vmem:[%s3363_s27 + $0x30] sm:$0xff]   ;;  %v3088_v26 = vld [vmem:[%s3363_s27 + $0x38] sm:$0xff]   ;;  %s3746_s15 = sld [smem:[#allocation11_spill]] (!%p2395_p13)  ;;  %s3747_s24 = sld [smem:[#allocation10_spill]] (!%p2395_p13) }
  0x48   : > { %2786 = vmatprep.subr.bf16.mxu0 %v3082_v18  ;;  %2977 = vmatprep.subr.bf16.mxu1 %v3082_v18  ;;  %v3085_v23 = vld [vmem:[%s3363_s27 + $0x20] sm:$0xff]   ;;  %v3091_v27 = vld [vmem:[%s3385_s11 + $0x8] sm:$0xff]   ;;  %v3093_v29 = vld [vmem:[%s3385_s11 + $0x10] sm:$0xff]  }
  0x49   : > { %2800 = vmatprep.mubr.bf16.mxu0 %v3089_v21  ;;  %2808 = vmatprep.mubr.bf16.mxu1 %v3090_v22  ;;  %v3092_v28 = vld [vmem:[%s3385_s11 + $0x28] sm:$0xff]   ;;  %v3094_v30 = vld [vmem:[%s3385_s11 + $0x30] sm:$0xff]   ;;  %v3095_v31 = vld [vmem:[%s3385_s11 + $0x18] sm:$0xff]  }
  0x4a   : > { %v3096_v32 = vld [vmem:[%s3385_s11 + $0x38] sm:$0xff]   ;;  %v682_v33 = vld [vmem:[#allocation2 + $0x10] sm:$0xff]  ;;  %v680_v35 = vld [vmem:[#allocation2] sm:$0xff] }
  0x4b   : > { %2787 = vmatpush3.bf16.msra.mxu0 %v3082_v18  ;;  %2985 = vmatpush3.bf16.msra.mxu1 %v3082_v18  ;;  %v690_v34 = vld [vmem:[#allocation2 + $0x50] sm:$0xff]  ;;  %v688_v36 = vld [vmem:[#allocation2 + $0x40] sm:$0xff]  ;;  %v683_v39 = vld [vmem:[#allocation2 + $0x18] sm:$0xff] }
  0x4c   : > { %2788 = vmatprep.subr.bf16.mxu0 %v3083_v19  ;;  %2978 = vmatprep.subr.bf16.mxu1 %v3083_v19  ;;  %v691_v40 = vld [vmem:[#allocation2 + $0x58] sm:$0xff]  ;;  %v681_v45 = vld [vmem:[#allocation2 + $0x8] sm:$0xff]  ;;  %v686_v57 = vld [vmem:[#allocation2 + $0x30] sm:$0xff] }
  0x4d   : > { %v689_v46 = vld [vmem:[#allocation2 + $0x48] sm:$0xff]  ;;  %v694_v58 = vld [vmem:[#allocation2 + $0x70] sm:$0xff]  ;;  %v684_v59 = vld [vmem:[#allocation2 + $0x20] sm:$0xff] }
  0x4e   : > { %v692_v60 = vld [vmem:[#allocation2 + $0x60] sm:$0xff]  ;;  %v687_v63 = vld [vmem:[#allocation2 + $0x38] sm:$0xff]  ;;  %v685_v5 = vld [vmem:[#allocation2 + $0x28] sm:$0xff] }
  0x4f   : > { %2789 = vmatpush3.bf16.msra.mxu0 %v3083_v19  ;;  %2986 = vmatpush3.bf16.msra.mxu1 %v3083_v19  ;;  %v695_v0 = vld [vmem:[#allocation2 + $0x78] sm:$0xff]  ;;  %v693_v6 = vld [vmem:[#allocation2 + $0x68] sm:$0xff]  ;;  %v3097_v17 = vld [vmem:[%s3721_s4] sm:$0xff] (!%p2395_p13)  }
  0x50   : > { %2790 = vmatprep.subr.bf16.mxu0 %v3084_v20  ;;  %2979 = vmatprep.subr.bf16.mxu1 %v3084_v20  ;;  %v3098_v18 = vld [vmem:[%s3721_s4 + $0x8] sm:$0xff] (!%p2395_p13)   ;;  %v3099_v19 = vld [vmem:[%s3721_s4 + $0x10] sm:$0xff] (!%p2395_p13)  }
  0x53   : > { %2791 = vmatpush3.bf16.msra.mxu0 %v3084_v20  ;;  %2987 = vmatpush3.bf16.msra.mxu1 %v3084_v20  ;;  %v3100_v20 = vld [vmem:[%s3721_s4 + $0x18] sm:$0xff] (!%p2395_p13)  }
  0x54   : > { %2792 = vmatprep.subr.bf16.mxu0 %v3085_v23  ;;  %2980 = vmatprep.subr.bf16.mxu1 %v3085_v23 }
  0x57   : > { %2793 = vmatpush3.bf16.msra.mxu0 %v3085_v23  ;;  %2988 = vmatpush3.bf16.msra.mxu1 %v3085_v23 }
  0x58   : > { %2794 = vmatprep.subr.bf16.mxu0 %v3086_v24  ;;  %2981 = vmatprep.subr.bf16.mxu1 %v3086_v24 }
  0x5b   : > { %2795 = vmatpush3.bf16.msra.mxu0 %v3086_v24  ;;  %2989 = vmatpush3.bf16.msra.mxu1 %v3086_v24  ;;  %v3101_v24 = vld [vmem:[%s3721_s4 + $0x20] sm:$0xff] (!%p2395_p13)  }
  0x5c   : > { %2796 = vmatprep.subr.bf16.mxu0 %v3087_v25  ;;  %2982 = vmatprep.subr.bf16.mxu1 %v3087_v25 }
  0x5f   : > { %2797 = vmatpush3.bf16.msra.mxu0 %v3087_v25  ;;  %2990 = vmatpush3.bf16.msra.mxu1 %v3087_v25  ;;  %v3102_v25 = vld [vmem:[%s3721_s4 + $0x28] sm:$0xff] (!%p2395_p13)  }
  0x60   : > { %2798 = vmatprep.subr.bf16.mxu0 %v3088_v26  ;;  %2983 = vmatprep.subr.bf16.mxu1 %v3088_v26 }
  0x63   : > { %2799 = vmatpush3.bf16.msra.mxu0 %v3088_v26  ;;  %2991 = vmatpush3.bf16.msra.mxu1 %v3088_v26  ;;  %v3103_v26 = vld [vmem:[%s3721_s4 + $0x30] sm:$0xff] (!%p2395_p13)  }
  0x64   : > { %2816 = vmatprep.subr.bf16.mxu0 (!%p2395_p13), %v3097_v17 }
  0x66   : > { %2801 = vmatmul.mubr.bf16.vlgmr.msra.gmra.mrb[0].mxu0 %v3091_v27  ;;  %2809 = vmatmul.mubr.bf16.vlgmr.msra.gmra.mrb[0].mxu1 %v3092_v28  ;;  %v3104_v27 = vld [vmem:[%s3721_s4 + $0x38] sm:$0xff] (!%p2395_p13)  }
  0x67   : > { %2804 = vmatprep.mubr.bf16.mxu0 %v3093_v29  ;;  %2812 = vmatprep.mubr.bf16.mxu1 %v3094_v30  ;;  %v3105_v30 = vld [vmem:[%s3720_s3] sm:$0xff] (!%p2395_p13)  }
  0x68   : > { %2817 = vmatpush3.bf16.msra.mxu0 (!%p2395_p13), %v3097_v17  ;;  %v3137_v17 = vld [vmem:[%s3725_s8] sm:$0xff] (!%p2395_p13)  }
  0x69   : > { %2818 = vmatprep.subr.bf16.mxu0 (!%p2395_p13), %v3098_v18 }
  0x6c   : > { %2819 = vmatpush3.bf16.msra.mxu0 (!%p2395_p13), %v3098_v18  ;;  %v3547_v18 = vld [vmem:[%s3744_s9] ss:$0 sm:$0xff] (!%p2395_p13) }
  0x6d   : > { %2820 = vmatprep.subr.bf16.mxu0 (!%p2395_p13), %v3099_v19 }
  0x6e   : > { %2805 = vmatmul.mubr.bf16.gmra.mrb[4].mxu0 %v3095_v31  ;;  %2813 = vmatmul.mubr.bf16.gmra.mrb[4].mxu1 %v3096_v32 }
  0x70   : > { %2821 = vmatpush3.bf16.msra.mxu0 (!%p2395_p13), %v3099_v19 }
  0x71   : > { %2822 = vmatprep.subr.bf16.mxu0 (!%p2395_p13), %v3100_v20 }
  0x74   : > { %2823 = vmatpush3.bf16.msra.mxu0 (!%p2395_p13), %v3100_v20 }
  0x75   : > { %2824 = vmatprep.subr.bf16.mxu0 (!%p2395_p13), %v3101_v24 }
  0x78   : > { %2825 = vmatpush3.bf16.msra.mxu0 (!%p2395_p13), %v3101_v24 }
  0x79   : > { %2826 = vmatprep.subr.bf16.mxu0 (!%p2395_p13), %v3102_v25 }
  0x7c   : > { %2827 = vmatpush3.bf16.msra.mxu0 (!%p2395_p13), %v3102_v25 }
  0x7d   : > { %2828 = vmatprep.subr.bf16.mxu0 (!%p2395_p13), %v3103_v26 }
  0x80   : > { %2829 = vmatpush3.bf16.msra.mxu0 (!%p2395_p13), %v3103_v26 }
  0x81   : > { %2830 = vmatprep.subr.bf16.mxu0 (!%p2395_p13), %v3104_v27 }
  0x84   : > { %2831 = vmatpush3.bf16.msra.mxu0 (!%p2395_p13), %v3104_v27 }
  0x85   : > { %2848 = vmatprep.subr.bf16.mxu0 (!%p2395_p13), %v3105_v30 }
 0x139   : > { %v2802_v37 = vpop.f32.mrb[0].mxu0  ;;  %v2810_v38 = vpop.f32.mrb[0].mxu1 }
 0x13a   : > { %v923_v41 = vadd.f32 %v2802_v37, %v682_v33  ;;  %v931_v42 = vadd.f32 %v2810_v38, %v690_v34  ;;  %v858_v43 = vpop.f32.mrb[1].mxu0  ;;  %v890_v44 = vpop.f32.mrb[1].mxu1  ;;  %v3121_v34 = vld [vmem:[%s3723_s6] sm:$0xff] (!%p2395_p13)   ;;  %v3123_v37 = vld [vmem:[%s3723_s6 + $0x8] sm:$0xff] (!%p2395_p13)  }
 0x13b   : > { %v921_v47 = vadd.f32 %v858_v43, %v680_v35  ;;  %v929_v48 = vadd.f32 %v890_v44, %v688_v36  ;;  %v2803_v49 = vpop.f32.mrb[2].mxu0  ;;  %v2811_v50 = vpop.f32.mrb[2].mxu1  ;;  %v3106_v35 = vld [vmem:[%s3720_s3 + $0x8] sm:$0xff] (!%p2395_p13)   ;;  %2880 = vmatprep.subr.bf16.mxu1 (!%p2395_p13), %v3121_v34 }
 0x13c   : > { %939 = vst [vmem:[#allocation2 + $0x10] sm:$0xff] %v923_v41  ;;  %947 = vst [vmem:[#allocation2 + $0x50] sm:$0xff] %v931_v42  ;;  %v924_v51 = vadd.f32 %v2803_v49, %v683_v39  ;;  %v932_v52 = vadd.f32 %v2811_v50, %v691_v40  ;;  %v861_v53 = vpop.f32.mrb[3].mxu0  ;;  %v893_v54 = vpop.f32.mrb[3].mxu1  ;;  %2881 = vmatpush3.bf16.msra.mxu1 (!%p2395_p13), %v3121_v34  ;;  %v3107_v40 = vld [vmem:[%s3720_s3 + $0x10] sm:$0xff] (!%p2395_p13)  }
 0x13d   : > { %937 = vst [vmem:[#allocation2] sm:$0xff] %v921_v47  ;;  %945 = vst [vmem:[#allocation2 + $0x40] sm:$0xff] %v929_v48  ;;  %v922_v55 = vadd.f32 %v861_v53, %v681_v45  ;;  %v930_v56 = vadd.f32 %v893_v54, %v689_v46  ;;  %2882 = vmatprep.subr.bf16.mxu1 (!%p2395_p13), %v3123_v37  ;;  %v3125_v41 = vld [vmem:[%s3723_s6 + $0x10] sm:$0xff] (!%p2395_p13)   ;;  %v3127_v45 = vld [vmem:[%s3723_s6 + $0x18] sm:$0xff] (!%p2395_p13)  }
 0x13e   : > { %940 = vst [vmem:[#allocation2 + $0x18] sm:$0xff] %v924_v51  ;;  %948 = vst [vmem:[#allocation2 + $0x58] sm:$0xff] %v932_v52  ;;  %v3108_v46 = vld [vmem:[%s3720_s3 + $0x18] sm:$0xff] (!%p2395_p13)   ;;  %v3129_v48 = vld [vmem:[%s3723_s6 + $0x20] sm:$0xff] (!%p2395_p13)  }
 0x13f   : > { %938 = vst [vmem:[#allocation2 + $0x8] sm:$0xff] %v922_v55  ;;  %946 = vst [vmem:[#allocation2 + $0x48] sm:$0xff] %v930_v56  ;;  %v3109_v51 = vld [vmem:[%s3720_s3 + $0x20] sm:$0xff] (!%p2395_p13)   ;;  %v3110_v56 = vld [vmem:[%s3720_s3 + $0x28] sm:$0xff] (!%p2395_p13)  }
 0x140   : > { %2883 = vmatpush3.bf16.msra.mxu1 (!%p2395_p13), %v3123_v37 }
 0x141   : > { %v2806_v61 = vpop.f32.mrb[4].mxu0  ;;  %v2814_v62 = vpop.f32.mrb[4].mxu1  ;;  %956 = sbr.rel (%p2395_p13) target bundleno = 877 (0x36d), region = 117  ;;  %2884 = vmatprep.subr.bf16.mxu1 (!%p2395_p13), %v3125_v41 }
 0x142   : > { %v927_v1 = vadd.f32 %v2806_v61, %v686_v57  ;;  %v935_v2 = vadd.f32 %v2814_v62, %v694_v58  ;;  %v874_v3 = vpop.f32.mrb[5].mxu0  ;;  %v906_v4 = vpop.f32.mrb[5].mxu1  ;;  %v3113_v61 = vld [vmem:[%s3368_s0] sm:$0xff] (!%p2395_p13)   ;;  %v3112_v62 = vld [vmem:[%s3720_s3 + $0x38] sm:$0xff] (!%p2395_p13)  }
 0x143   : > { %v925_v7 = vadd.f32 %v874_v3, %v684_v59  ;;  %v933_v8 = vadd.f32 %v906_v4, %v692_v60  ;;  %v2807_v9 = vpop.f32.mrb[6].mxu0  ;;  %v2815_v10 = vpop.f32.mrb[6].mxu1  ;;  %v959_v28 = vld [vmem:[#allocation2 + $0x10] sm:$0xff] (!%p2395_p13)  ;;  %v3116_v4 = vld [vmem:[%s3368_s0 + $0x18] sm:$0xff] (!%p2395_p13)  }
 0x144   : > { %943 = vst [vmem:[#allocation2 + $0x30] sm:$0xff] %v927_v1  ;;  %951 = vst [vmem:[#allocation2 + $0x70] sm:$0xff] %v935_v2  ;;  %v928_v11 = vadd.f32 %v2807_v9, %v687_v63  ;;  %v936_v12 = vadd.f32 %v2815_v10, %v695_v0  ;;  %v877_v13 = vpop.f32.mrb[7].mxu0  ;;  %v909_v14 = vpop.f32.mrb[7].mxu1  ;;  %v957_v21 = vld [vmem:[#allocation2] sm:$0xff] (!%p2395_p13)  ;;  %v967_v49 = vld [vmem:[#allocation2 + $0x50] sm:$0xff] (!%p2395_p13)  ;;  %2885 = vmatpush3.bf16.msra.mxu1 (!%p2395_p13), %v3125_v41 }
 0x145   : > { %941 = vst [vmem:[#allocation2 + $0x20] sm:$0xff] %v925_v7  ;;  %949 = vst [vmem:[#allocation2 + $0x60] sm:$0xff] %v933_v8  ;;  %v926_v15 = vadd.f32 %v877_v13, %v685_v5  ;;  %v934_v16 = vadd.f32 %v909_v14, %v693_v6  ;;  %v960_v29 = vld [vmem:[#allocation2 + $0x18] sm:$0xff] (!%p2395_p13)  ;;  %v965_v42 = vld [vmem:[#allocation2 + $0x40] sm:$0xff] (!%p2395_p13)  ;;  %2886 = vmatprep.subr.bf16.mxu1 (!%p2395_p13), %v3127_v45 }
 0x146   : > { %944 = vst [vmem:[#allocation2 + $0x38] sm:$0xff] %v928_v11  ;;  %952 = vst [vmem:[#allocation2 + $0x78] sm:$0xff] %v936_v12  ;;  %v958_v22 = vld [vmem:[#allocation2 + $0x8] sm:$0xff] (!%p2395_p13)  ;;  %v974_v33 = vpack.c.bf16 (!%p2395_p13), %v960_v29, %v959_v28  ;;  %v968_v50 = vld [vmem:[#allocation2 + $0x58] sm:$0xff] (!%p2395_p13) }
 0x147   : > { %942 = vst [vmem:[#allocation2 + $0x28] sm:$0xff] %v926_v15  ;;  %950 = vst [vmem:[#allocation2 + $0x68] sm:$0xff] %v934_v16  ;;  %v973_v23 = vpack.c.bf16 (!%p2395_p13), %v958_v22, %v957_v21  ;;  %v966_v43 = vld [vmem:[#allocation2 + $0x48] sm:$0xff] (!%p2395_p13)  ;;  %v978_v54 = vpack.c.bf16 (!%p2395_p13), %v968_v50, %v967_v49  ;;  %v3111_v59 = vld [vmem:[%s3720_s3 + $0x30] sm:$0xff] (!%p2395_p13)  }
 0x148   : > { %v977_v47 = vpack.c.bf16 %v966_v43, %v965_v42  ;;  %2887 = vmatpush3.bf16.msra.mxu1 %v3127_v45  ;;  %v3472_v63 = vld [vmem:[%s3727_s10] sm:$0xff]   ;;  %v3114_v0 = vld [vmem:[%s3368_s0 + $0x8] sm:$0xff]   ;;  %v3115_v1 = vld [vmem:[%s3368_s0 + $0x10] sm:$0xff]  }
 0x149   : > { %2832 = vmatprep.mubr.bf16.mxu0 %v973_v23  ;;  %2888 = vmatprep.subr.bf16.mxu1 %v3129_v48  ;;  %v3480_v2 = vld [vmem:[%s3727_s10 + $0x8] sm:$0xff]   ;;  %v3487_v3 = vld [vmem:[%s3727_s10 + $0x10] sm:$0xff]   ;;  %v3117_v5 = vld [vmem:[%s3368_s0 + $0x20] sm:$0xff]  }
 0x14a   : > { %2833 = vmatmul.mubr.bf16.vlgmr.msra.gmra.mrb[0].mxu0 %v974_v33  ;;  %v3496_v6 = vld [vmem:[%s3727_s10 + $0x18] sm:$0xff]   ;;  %v3503_v7 = vld [vmem:[%s3727_s10 + $0x20] sm:$0xff]   ;;  %v3118_v8 = vld [vmem:[%s3368_s0 + $0x28] sm:$0xff]  }
 0x14b   : > { %v963_v38 = vld [vmem:[#allocation2 + $0x30] sm:$0xff]  ;;  %2849 = vmatpush3.bf16.msra.mxu0 %v3105_v30  ;;  %v3120_v10 = vld [vmem:[%s3368_s0 + $0x38] sm:$0xff]   ;;  %v3131_v11 = vld [vmem:[%s3723_s6 + $0x28] sm:$0xff]  }
 0x14c   : > { %v961_v31 = vld [vmem:[#allocation2 + $0x20] sm:$0xff]  ;;  %2850 = vmatprep.subr.bf16.mxu0 %v3106_v35  ;;  %2889 = vmatpush3.bf16.msra.mxu1 %v3129_v48  ;;  %v971_v57 = vld [vmem:[#allocation2 + $0x70] sm:$0xff]  ;;  %v3517_v12 = vld [vmem:[%s3727_s10 + $0x28] sm:$0xff]  }
 0x14d   : > { %v964_v39 = vld [vmem:[#allocation2 + $0x38] sm:$0xff]  ;;  %v969_v52 = vld [vmem:[#allocation2 + $0x60] sm:$0xff]  ;;  %v3119_v9 = vld [vmem:[%s3368_s0 + $0x30] sm:$0xff]   ;;  %2890 = vmatprep.subr.bf16.mxu1 %v3131_v11 }
 0x14e   : > { %v962_v32 = vld [vmem:[#allocation2 + $0x28] sm:$0xff]  ;;  %v976_v44 = vpack.c.bf16 %v964_v39, %v963_v38  ;;  %v972_v58 = vld [vmem:[#allocation2 + $0x78] sm:$0xff]  ;;  %v3133_v13 = vld [vmem:[%s3723_s6 + $0x30] sm:$0xff]  }
 0x14f   : > { %v975_v36 = vpack.c.bf16 %v962_v32, %v961_v31  ;;  %2851 = vmatpush3.bf16.msra.mxu0 %v3106_v35  ;;  %v970_v53 = vld [vmem:[#allocation2 + $0x68] sm:$0xff]  ;;  %v980_v60 = vpack.c.bf16 %v972_v58, %v971_v57  ;;  %v3527_v14 = vld [vmem:[%s3727_s10 + $0x30] sm:$0xff]   ;;  %v3135_v15 = vld [vmem:[%s3723_s6 + $0x38] sm:$0xff]  }
 0x150   : > { %2852 = vmatprep.subr.bf16.mxu0 %v3107_v40  ;;  %v979_v55 = vpack.c.bf16 %v970_v53, %v969_v52  ;;  %2891 = vmatpush3.bf16.msra.mxu1 %v3131_v11  ;;  %v3537_v16 = vld [vmem:[%s3727_s10 + $0x38] sm:$0xff]   ;;  %v3138_v42 = vld [vmem:[%s3725_s8 + $0x8] sm:$0xff]   ;;  %v3139_v50 = vld [vmem:[%s3725_s8 + $0x10] sm:$0xff]  }
 0x151   : > { %2836 = vmatprep.mubr.bf16.mxu0 %v975_v36  ;;  %2892 = vmatprep.subr.bf16.mxu1 %v3133_v13  ;;  %v3141_v11 = vld [vmem:[%s3725_s8 + $0x20] sm:$0xff]  }
 0x152   : > { %2837 = vmatmul.mubr.bf16.gmra.mrb[4].mxu0 %v976_v44 }
 0x153   : > { %2853 = vmatpush3.bf16.msra.mxu0 %v3107_v40  ;;  %2840 = vmatprep.mubr.bf16.mxu0 %v977_v47 }
 0x154   : > { %2854 = vmatprep.subr.bf16.mxu0 %v3108_v46  ;;  %2893 = vmatpush3.bf16.msra.mxu1 %v3133_v13 }
 0x155   : > { %2894 = vmatprep.subr.bf16.mxu1 %v3135_v15 }
 0x157   : > { %2855 = vmatpush3.bf16.msra.mxu0 %v3108_v46 }
 0x158   : > { %2856 = vmatprep.subr.bf16.mxu0 %v3109_v51  ;;  %2895 = vmatpush3.bf16.msra.mxu1 %v3135_v15 }
 0x159   : > { %2912 = vmatprep.subr.bf16.mxu1 %v3137_v17 }
 0x15a   : > { %2841 = vmatmul.mubr.bf16.gmra.mrb[8].mxu0 %v978_v54 }
 0x15b   : > { %2857 = vmatpush3.bf16.msra.mxu0 %v3109_v51  ;;  %2844 = vmatprep.mubr.bf16.mxu0 %v979_v55 }
 0x15c   : > { %2858 = vmatprep.subr.bf16.mxu0 %v3110_v56 }
 0x15f   : > { %2859 = vmatpush3.bf16.msra.mxu0 %v3110_v56 }
 0x160   : > { %2860 = vmatprep.subr.bf16.mxu0 %v3111_v59 }
 0x162   : > { %2845 = vmatmul.mubr.bf16.gmra.mrb[12].mxu0 %v980_v60 }
 0x163   : > { %2861 = vmatpush3.bf16.msra.mxu0 %v3111_v59  ;;  %2864 = vmatprep.mubr.bf16.mxu0 %v3113_v61 }
 0x164   : > { %2862 = vmatprep.subr.bf16.mxu0 %v3112_v62 }
 0x167   : > { %2863 = vmatpush3.bf16.msra.mxu0 %v3112_v62  ;;  %v3140_v62 = vld [vmem:[%s3725_s8 + $0x18] sm:$0xff]  }
 0x168   : > { %2944 = vmatprep.subr.bf16.mxu0 %v3472_v63 }
 0x16a   : > { %2865 = vmatmul.mubr.bf16.vlgmr.msra.gmra.mrb[0].mxu0 %v3114_v0 }
 0x16b   : > { %2868 = vmatprep.mubr.bf16.mxu0 %v3115_v1  ;;  %2945 = vmatpush3.bf16.msra.mxu0 %v3472_v63 }
 0x16c   : > { %2946 = vmatprep.subr.bf16.mxu0 %v3480_v2 }
 0x16f   : > { %2947 = vmatpush3.bf16.msra.mxu0 %v3480_v2 }
 0x170   : > { %2948 = vmatprep.subr.bf16.mxu0 %v3487_v3 }
 0x172   : > { %2869 = vmatmul.mubr.bf16.gmra.mrb[4].mxu0 %v3116_v4 }
 0x173   : > { %2872 = vmatprep.mubr.bf16.mxu0 %v3117_v5  ;;  %2949 = vmatpush3.bf16.msra.mxu0 %v3487_v3 }
 0x174   : > { %2950 = vmatprep.subr.bf16.mxu0 %v3496_v6 }
 0x177   : > { %2951 = vmatpush3.bf16.msra.mxu0 %v3496_v6 }
 0x178   : > { %2952 = vmatprep.subr.bf16.mxu0 %v3503_v7 }
 0x17a   : > { %2873 = vmatmul.mubr.bf16.gmra.mrb[8].mxu0 %v3118_v8 }
 0x17b   : > { %2876 = vmatprep.mubr.bf16.mxu0 %v3119_v9  ;;  %2953 = vmatpush3.bf16.msra.mxu0 %v3503_v7 }
 0x17c   : > { %2954 = vmatprep.subr.bf16.mxu0 %v3517_v12 }
 0x17f   : > { %2955 = vmatpush3.bf16.msra.mxu0 %v3517_v12 }
 0x180   : > { %2956 = vmatprep.subr.bf16.mxu0 %v3527_v14 }
 0x182   : > { %2877 = vmatmul.mubr.bf16.gmra.mrb[12].mxu0 %v3120_v10 }
 0x183   : > { %2957 = vmatpush3.bf16.msra.mxu0 %v3527_v14 }
 0x184   : > { %2958 = vmatprep.subr.bf16.mxu0 %v3537_v16 }
 0x187   : > { %2959 = vmatpush3.bf16.msra.mxu0 %v3537_v16 }
 0x23d   : > { %v2866_v19 = vpop.f32.mrb[0].mxu0 }
 0x23e   : > { %v1376_v20 = vadd.f32 %v2866_v19, %v3547_v18  ;;  %v1304_v21 = vpop.f32.mrb[1].mxu0 }
 0x23f   : > { %v1374_v22 = vadd.f32 %v3547_v18, %v1304_v21  ;;  %v2867_v23 = vpop.f32.mrb[2].mxu0 }
 0x240   : > { %v1408_v24 = vmul.f32 0.01, %v1376_v20  ;;  %v1377_v25 = vadd.f32 %v2867_v23, %v3547_v18  ;;  %v1307_v26 = vpop.f32.mrb[3].mxu0  ;;  %vm1392_vm0 = vcmp.gt.f32.partialorder %v1376_v20, 0.0 }
 0x241   : > { %v1406_v27 = vmul.f32 0.01, %v1374_v22  ;;  %v1375_v28 = vadd.f32 %v3547_v18, %v1307_v26  ;;  %vm1390_vm1 = vcmp.gt.f32.partialorder %v1374_v22, 0.0 }
 0x242   : > { %vm1393_vm2 = vcmp.gt.f32.partialorder %v1377_v25, 0.0  ;;  %v1409_v29 = vmul.f32 0.01, %v1377_v25  ;;  %v1424_v31 = vsel %vm1392_vm0, %v1376_v20, %v1408_v24 }
 0x243   : > { %vm1391_vm3 = vcmp.gt.f32.partialorder %v1375_v28, 0.0  ;;  %v1407_v30 = vmul.f32 0.01, %v1375_v28  ;;  %v1422_v34 = vsel %vm1390_vm1, %v1374_v22, %v1406_v27  ;;  %v3142_v27 = vld [vmem:[%s3725_s8 + $0x28] sm:$0xff]  }
 0x244   : > { %v1425_v32 = vsel %vm1393_vm2, %v1377_v25, %v1409_v29 }
 0x245   : > { %v2870_v33 = vpop.f32.mrb[4].mxu0  ;;  %v1423_v35 = vsel %vm1391_vm3, %v1375_v28, %v1407_v30  ;;  %v3553_v36 = vpack.c.bf16 %v1425_v32, %v1424_v31 }
 0x246   : > { %v1380_v37 = vadd.f32 %v2870_v33, %v3547_v18  ;;  %v1320_v38 = vpop.f32.mrb[5].mxu0  ;;  %v3556_v39 = vpack.c.bf16 %v1423_v35, %v1422_v34  ;;  %v3143_v35 = vld [vmem:[%s3725_s8 + $0x30] sm:$0xff]  }
 0x247   : > { %v1378_v40 = vadd.f32 %v3547_v18, %v1320_v38  ;;  %v2871_v41 = vpop.f32.mrb[6].mxu0 }
 0x248   : > { %v1412_v43 = vmul.f32 0.01, %v1380_v37  ;;  %v1381_v44 = vadd.f32 %v2871_v41, %v3547_v18  ;;  %v1323_v45 = vpop.f32.mrb[7].mxu0  ;;  %2896 = vmatprep.mubr.bf16.mxu1 %v3556_v39  ;;  %2960 = vmatprep.mubr.bf16.mxu0 %v3556_v39  ;;  %vm1396_vm4 = vcmp.gt.f32.partialorder %v1380_v37, 0.0 }
 0x249   : > { %v1410_v46 = vmul.f32 0.01, %v1378_v40  ;;  %v1379_v47 = vadd.f32 %v3547_v18, %v1323_v45  ;;  %2897 = vmatmul.mubr.bf16.vlgmr.msra.gmra.mrb[0].mxu1 %v3553_v36  ;;  %2961 = vmatmul.mubr.bf16.vlgmr.msra.gmra.mrb[16].mxu0 %v3553_v36  ;;  %vm1394_vm5 = vcmp.gt.f32.partialorder %v1378_v40, 0.0 }
 0x24a   : > { %vm1397_vm6 = vcmp.gt.f32.partialorder %v1381_v44, 0.0  ;;  %v1413_v48 = vmul.f32 0.01, %v1381_v44  ;;  %2913 = vmatpush3.bf16.msra.mxu1 %v3137_v17  ;;  %v1428_v51 = vsel %vm1396_vm4, %v1380_v37, %v1412_v43  ;;  %v3144_v43 = vld [vmem:[%s3725_s8 + $0x38] sm:$0xff]  }
 0x24b   : > { %vm1395_vm7 = vcmp.gt.f32.partialorder %v1379_v47, 0.0  ;;  %v1411_v49 = vmul.f32 0.01, %v1379_v47  ;;  %2914 = vmatprep.subr.bf16.mxu1 %v3138_v42  ;;  %v1426_v54 = vsel %vm1394_vm5, %v1378_v40, %v1410_v46 }
 0x24c   : > { %v1429_v52 = vsel %vm1397_vm6, %v1381_v44, %v1413_v48 }
 0x24d   : > { %v2874_v53 = vpop.f32.mrb[8].mxu0  ;;  %v1427_v55 = vsel %vm1395_vm7, %v1379_v47, %v1411_v49  ;;  %v3571_v56 = vpack.c.bf16 %v1429_v52, %v1428_v51 }
 0x24e   : > { %v1384_v57 = vadd.f32 %v2874_v53, %v3547_v18  ;;  %v1336_v58 = vpop.f32.mrb[9].mxu0  ;;  %2915 = vmatpush3.bf16.msra.mxu1 %v3138_v42  ;;  %v3574_v59 = vpack.c.bf16 %v1427_v55, %v1426_v54 }
 0x24f   : > { %v1382_v60 = vadd.f32 %v3547_v18, %v1336_v58  ;;  %v2875_v61 = vpop.f32.mrb[10].mxu0  ;;  %2916 = vmatprep.subr.bf16.mxu1 %v3139_v50 }
 0x250   : > { %v1416_v0 = vmul.f32 0.01, %v1384_v57  ;;  %v1385_v1 = vadd.f32 %v2875_v61, %v3547_v18  ;;  %v1339_v4 = vpop.f32.mrb[11].mxu0  ;;  %2900 = vmatprep.mubr.bf16.mxu1 %v3574_v59  ;;  %2964 = vmatprep.mubr.bf16.mxu0 %v3574_v59  ;;  %vm1400_vm8 = vcmp.gt.f32.partialorder %v1384_v57, 0.0 }
 0x251   : > { %v1414_v5 = vmul.f32 0.01, %v1382_v60  ;;  %v1383_v8 = vadd.f32 %v3547_v18, %v1339_v4  ;;  %2901 = vmatmul.mubr.bf16.gmra.mrb[4].mxu1 %v3571_v56  ;;  %2965 = vmatmul.mubr.bf16.gmra.mrb[20].mxu0 %v3571_v56  ;;  %vm1398_vm9 = vcmp.gt.f32.partialorder %v1382_v60, 0.0 }
 0x252   : > { %vm1401_vm10 = vcmp.gt.f32.partialorder %v1385_v1, 0.0  ;;  %v1417_v9 = vmul.f32 0.01, %v1385_v1  ;;  %2917 = vmatpush3.bf16.msra.mxu1 %v3139_v50  ;;  %v1432_v13 = vsel %vm1400_vm8, %v1384_v57, %v1416_v0 }
 0x253   : > { %vm1399_vm11 = vcmp.gt.f32.partialorder %v1383_v8, 0.0  ;;  %v1415_v10 = vmul.f32 0.01, %v1383_v8  ;;  %2918 = vmatprep.subr.bf16.mxu1 %v3140_v62  ;;  %v1430_v19 = vsel %vm1398_vm9, %v1382_v60, %v1414_v5 }
 0x254   : > { %v1433_v15 = vsel %vm1401_vm10, %v1385_v1, %v1417_v9 }
 0x255   : > { %v2878_v17 = vpop.f32.mrb[12].mxu0  ;;  %v1431_v20 = vsel %vm1399_vm11, %v1383_v8, %v1415_v10  ;;  %v3589_v21 = vpack.c.bf16 %v1433_v15, %v1432_v13 }
 0x256   : > { %v1388_v22 = vadd.f32 %v2878_v17, %v3547_v18  ;;  %v1352_v23 = vpop.f32.mrb[13].mxu0  ;;  %2919 = vmatpush3.bf16.msra.mxu1 %v3140_v62  ;;  %v1442_v24 = vpack.c.bf16 %v1431_v20, %v1430_v19 }
 0x257   : > { %v1386_v25 = vadd.f32 %v3547_v18, %v1352_v23  ;;  %v2879_v26 = vpop.f32.mrb[14].mxu0  ;;  %2920 = vmatprep.subr.bf16.mxu1 %v3141_v11 }
 0x258   : > { %v1420_v28 = vmul.f32 0.01, %v1388_v22  ;;  %v1389_v29 = vadd.f32 %v2879_v26, %v3547_v18  ;;  %v1355_v30 = vpop.f32.mrb[15].mxu0  ;;  %2904 = vmatprep.mubr.bf16.mxu1 %v1442_v24  ;;  %vm1404_vm12 = vcmp.gt.f32.partialorder %v1388_v22, 0.0 }
 0x259   : > { %v1418_v31 = vmul.f32 0.01, %v1386_v25  ;;  %v1387_v32 = vadd.f32 %v3547_v18, %v1355_v30  ;;  %2905 = vmatmul.mubr.bf16.gmra.mrb[8].mxu1 %v3589_v21  ;;  %vm1402_vm13 = vcmp.gt.f32.partialorder %v1386_v25, 0.0 }
 0x25a   : > { %vm1405_vm14 = vcmp.gt.f32.partialorder %v1389_v29, 0.0  ;;  %v1421_v33 = vmul.f32 0.01, %v1389_v29  ;;  %2921 = vmatpush3.bf16.msra.mxu1 %v3141_v11  ;;  %v1436_v37 = vsel %vm1404_vm12, %v1388_v22, %v1420_v28 }
 0x25b   : > { %vm1403_vm15 = vcmp.gt.f32.partialorder %v1387_v32, 0.0  ;;  %v1419_v34 = vmul.f32 0.01, %v1387_v32  ;;  %2922 = vmatprep.subr.bf16.mxu1 %v3142_v27  ;;  %v1434_v40 = vsel %vm1402_vm13, %v1386_v25, %v1418_v31 }
 0x25c   : > { %v1437_v38 = vsel %vm1405_vm14, %v1389_v29, %v1421_v33 }
 0x25d   : > { %v1435_v41 = vsel %vm1403_vm15, %v1387_v32, %v1419_v34  ;;  %v1445_v42 = vpack.c.bf16 %v1437_v38, %v1436_v37 }
 0x25e   : > { %2923 = vmatpush3.bf16.msra.mxu1 %v3142_v27  ;;  %v1444_v18 = vpack.c.bf16 %v1435_v41, %v1434_v40 }
 0x25f   : > { %2924 = vmatprep.subr.bf16.mxu1 %v3143_v35 }
 0x260   : > { %2908 = vmatprep.mubr.bf16.mxu1 %v1444_v18 }
 0x261   : > { %2909 = vmatmul.mubr.bf16.gmra.mrb[12].mxu1 %v1445_v42 }
 0x262   : > { %2925 = vmatpush3.bf16.msra.mxu1 %v3143_v35  ;;  %2928 = vmatprep.mubr.bf16.mxu1 %v3556_v39 }
 0x263   : > { %2926 = vmatprep.subr.bf16.mxu1 %v3144_v43 }
 0x266   : > { %2927 = vmatpush3.bf16.msra.mxu1 %v3144_v43  ;;  %v2446_v43 = vld [vmem:[%s3747_s24] ss:$0 sm:$0xff] }
 0x267   : > { %2992 = vmatprep.subr.bf16.mxu1 %v3472_v63 }
 0x269   : > { %2929 = vmatmul.mubr.bf16.vlgmr.msra.gmra.mrb[16].mxu1 %v3553_v36 }
 0x26a   : > { %2932 = vmatprep.mubr.bf16.mxu1 %v3574_v59  ;;  %3000 = vmatpush3.bf16.msra.mxu1 %v3472_v63 }
 0x26b   : > { %2993 = vmatprep.subr.bf16.mxu1 %v3480_v2 }
 0x26e   : > { %3001 = vmatpush3.bf16.msra.mxu1 %v3480_v2  ;;  %v3630_v2 = vld [vmem:[%s3745_s22] ss:$0 sm:$0xff] }
 0x26f   : > { %2994 = vmatprep.subr.bf16.mxu1 %v3487_v3 }
 0x271   : > { %2933 = vmatmul.mubr.bf16.gmra.mrb[20].mxu1 %v3571_v56 }
 0x272   : > { %2936 = vmatprep.mubr.bf16.mxu1 %v1442_v24  ;;  %3002 = vmatpush3.bf16.msra.mxu1 %v3487_v3 }
 0x273   : > { %2995 = vmatprep.subr.bf16.mxu1 %v3496_v6 }
 0x276   : > { %3003 = vmatpush3.bf16.msra.mxu1 %v3496_v6  ;;  %v3635_v6 = vld [vmem:[%s3746_s15] ss:$0 sm:$0xff] }
 0x277   : > { %2996 = vmatprep.subr.bf16.mxu1 %v3503_v7 }
 0x279   : > { %2937 = vmatmul.mubr.bf16.gmra.mrb[24].mxu1 %v3589_v21 }
 0x27a   : > { %2940 = vmatprep.mubr.bf16.mxu1 %v1444_v18  ;;  %3004 = vmatpush3.bf16.msra.mxu1 %v3503_v7 }
 0x27b   : > { %2997 = vmatprep.subr.bf16.mxu1 %v3517_v12 }
 0x27e   : > { %3005 = vmatpush3.bf16.msra.mxu1 %v3517_v12 }
 0x27f   : > { %2998 = vmatprep.subr.bf16.mxu1 %v3527_v14 }
 0x281   : > { %2941 = vmatmul.mubr.bf16.gmra.mrb[28].mxu1 %v1445_v42 }
 0x282   : > { %3006 = vmatpush3.bf16.msra.mxu1 %v3527_v14  ;;  %2968 = vmatprep.mubr.bf16.mxu1 %v1442_v24 }
 0x283   : > { %2999 = vmatprep.subr.bf16.mxu1 %v3537_v16 }
 0x286   : > { %3007 = vmatpush3.bf16.msra.mxu1 %v3537_v16 }
 0x289   : > { %2969 = vmatmul.mubr.bf16.vlgmr.msra.gmra.mrb[32].mxu1 %v3589_v21 }
 0x28a   : > { %2972 = vmatprep.mubr.bf16.mxu1 %v1444_v18 }
 0x291   : > { %2973 = vmatmul.mubr.bf16.gmra.mrb[36].mxu1 %v1445_v42 }
 0x31c   : > { %v2898_v63 = vpop.f32.mrb[0].mxu1  ;;  %v2962_v3 = vpop.f32.mrb[16].mxu0 }
 0x31d   : > { %v1551_v7 = vpop.f32.mrb[1].mxu1  ;;  %v2047_v12 = vpop.f32.mrb[17].mxu0  ;;  %v1560_v36 = vadd.f32 %v2898_v63, %v3630_v2  ;;  %v2056_v39 = vadd.f32 %v2962_v3, %v3635_v6 }
 0x31e   : > { %v2899_v14 = vpop.f32.mrb[2].mxu1  ;;  %v2963_v16 = vpop.f32.mrb[18].mxu0  ;;  %v1552_v48 = vadd.f32 %v3630_v2, %v1551_v7  ;;  %v2048_v49 = vadd.f32 %v3635_v6, %v2047_v12 }
 0x31f   : > { %v1563_v44 = vadd.f32 %v2899_v14, %v3630_v2  ;;  %v2059_v45 = vadd.f32 %v2963_v16, %v3635_v6  ;;  %v1554_v46 = vpop.f32.mrb[3].mxu1  ;;  %v2050_v47 = vpop.f32.mrb[19].mxu0 }
 0x320   : > { %v1555_v50 = vadd.f32 %v3630_v2, %v1554_v46  ;;  %v2051_v51 = vadd.f32 %v3635_v6, %v2050_v47 }
 0x321   : > { %v2555_v52 = vpack.c.bf16 %v1563_v44, %v1560_v36  ;;  %v2635_v53 = vpack.c.bf16 %v2059_v45, %v2056_v39 }
 0x322   : > { %v2550_v54 = vpack.c.bf16 %v1555_v50, %v1552_v48  ;;  %v2630_v55 = vpack.c.bf16 %v2051_v51, %v2048_v49 }
 0x323   : > { %2667 = vst [vmem:[%s3373_s5 + $0x8] sm:$0xff] %v2555_v52   ;;  %2681 = vst [vmem:[%s3383_s25 + $0x8] sm:$0xff] %v2635_v53  }
 0x324   : > { %2551 = vst [vmem:[%s3373_s5] sm:$0xff] %v2550_v54   ;;  %2631 = vst [vmem:[%s3383_s25] sm:$0xff] %v2630_v55   ;;  %v2902_v56 = vpop.f32.mrb[4].mxu1  ;;  %v2966_v57 = vpop.f32.mrb[20].mxu0 }
 0x325   : > { %v1567_v58 = vpop.f32.mrb[5].mxu1  ;;  %v2063_v59 = vpop.f32.mrb[21].mxu0  ;;  %v1576_v62 = vadd.f32 %v2902_v56, %v3630_v2  ;;  %v2072_v0 = vadd.f32 %v2966_v57, %v3635_v6 }
 0x326   : > { %v2903_v60 = vpop.f32.mrb[6].mxu1  ;;  %v2967_v61 = vpop.f32.mrb[22].mxu0  ;;  %v1568_v9 = vadd.f32 %v3630_v2, %v1567_v58  ;;  %v2064_v10 = vadd.f32 %v3635_v6, %v2063_v59 }
 0x327   : > { %v1579_v1 = vadd.f32 %v2903_v60, %v3630_v2  ;;  %v2075_v4 = vadd.f32 %v2967_v61, %v3635_v6  ;;  %v1570_v5 = vpop.f32.mrb[7].mxu1  ;;  %v2066_v8 = vpop.f32.mrb[23].mxu0 }
 0x328   : > { %v1571_v11 = vadd.f32 %v3630_v2, %v1570_v5  ;;  %v2067_v13 = vadd.f32 %v3635_v6, %v2066_v8 }
 0x329   : > { %v2565_v15 = vpack.c.bf16 %v1579_v1, %v1576_v62  ;;  %v2645_v17 = vpack.c.bf16 %v2075_v4, %v2072_v0 }
 0x32a   : > { %v2560_v19 = vpack.c.bf16 %v1571_v11, %v1568_v9  ;;  %v2640_v20 = vpack.c.bf16 %v2067_v13, %v2064_v10 }
 0x32b   : > { %2669 = vst [vmem:[%s3373_s5 + $0x18] sm:$0xff] %v2565_v15   ;;  %2683 = vst [vmem:[%s3383_s25 + $0x18] sm:$0xff] %v2645_v17  }
 0x32c   : > { %2668 = vst [vmem:[%s3373_s5 + $0x10] sm:$0xff] %v2560_v19   ;;  %2682 = vst [vmem:[%s3383_s25 + $0x10] sm:$0xff] %v2640_v20   ;;  %v2906_v21 = vpop.f32.mrb[8].mxu1 }
 0x32d   : > { %v1583_v22 = vpop.f32.mrb[9].mxu1  ;;  %v1592_v24 = vadd.f32 %v2906_v21, %v3630_v2 }
 0x32e   : > { %v2907_v23 = vpop.f32.mrb[10].mxu1  ;;  %v1584_v27 = vadd.f32 %v3630_v2, %v1583_v22 }
 0x32f   : > { %v1595_v25 = vadd.f32 %v2907_v23, %v3630_v2  ;;  %v1586_v26 = vpop.f32.mrb[11].mxu1 }
 0x330   : > { %v1587_v28 = vadd.f32 %v3630_v2, %v1586_v26 }
 0x331   : > { %v2575_v29 = vpack.c.bf16 %v1595_v25, %v1592_v24 }
 0x332   : > { %v2570_v30 = vpack.c.bf16 %v1587_v28, %v1584_v27 }
 0x333   : > { %2671 = vst [vmem:[%s3373_s5 + $0x28] sm:$0xff] %v2575_v29  }
 0x334   : > { %2670 = vst [vmem:[%s3373_s5 + $0x20] sm:$0xff] %v2570_v30   ;;  %v2910_v31 = vpop.f32.mrb[12].mxu1 }
 0x335   : > { %v1599_v32 = vpop.f32.mrb[13].mxu1  ;;  %v1608_v34 = vadd.f32 %v2910_v31, %v3630_v2 }
 0x336   : > { %v2911_v33 = vpop.f32.mrb[14].mxu1  ;;  %v1600_v38 = vadd.f32 %v3630_v2, %v1599_v32 }
 0x337   : > { %v1611_v35 = vadd.f32 %v2911_v33, %v3630_v2  ;;  %v1602_v37 = vpop.f32.mrb[15].mxu1 }
 0x338   : > { %v1603_v40 = vadd.f32 %v3630_v2, %v1602_v37 }
 0x339   : > { %v2585_v41 = vpack.c.bf16 %v1611_v35, %v1608_v34 }
 0x33a   : > { %v2580_v42 = vpack.c.bf16 %v1603_v40, %v1600_v38 }
 0x33b   : > { %2673 = vst [vmem:[%s3373_s5 + $0x38] sm:$0xff] %v2585_v41  }
 0x33c   : > { %2672 = vst [vmem:[%s3373_s5 + $0x30] sm:$0xff] %v2580_v42   ;;  %v2930_v18 = vpop.f32.mrb[16].mxu1 }
 0x33d   : > { %v1799_v63 = vpop.f32.mrb[17].mxu1  ;;  %v1808_v7 = vadd.f32 %v2930_v18, %v2446_v43 }
 0x33e   : > { %v2931_v3 = vpop.f32.mrb[18].mxu1  ;;  %v1800_v16 = vadd.f32 %v2446_v43, %v1799_v63 }
 0x33f   : > { %v1811_v12 = vadd.f32 %v2931_v3, %v2446_v43  ;;  %v1802_v14 = vpop.f32.mrb[19].mxu1 }
 0x340   : > { %v1803_v36 = vadd.f32 %v2446_v43, %v1802_v14 }
 0x341   : > { %v2595_v2 = vpack.c.bf16 %v1811_v12, %v1808_v7 }
 0x342   : > { %v2590_v39 = vpack.c.bf16 %v1803_v36, %v1800_v16 }
 0x343   : > { %2674 = vst [vmem:[%s3378_s7 + $0x8] sm:$0xff] %v2595_v2  }
 0x344   : > { %2591 = vst [vmem:[%s3378_s7] sm:$0xff] %v2590_v39   ;;  %v2934_v44 = vpop.f32.mrb[20].mxu1 }
 0x345   : > { %v1815_v45 = vpop.f32.mrb[21].mxu1  ;;  %v1824_v47 = vadd.f32 %v2934_v44, %v2446_v43 }
 0x346   : > { %v2935_v46 = vpop.f32.mrb[22].mxu1  ;;  %v1816_v50 = vadd.f32 %v2446_v43, %v1815_v45 }
 0x347   : > { %v1827_v48 = vadd.f32 %v2935_v46, %v2446_v43  ;;  %v1818_v49 = vpop.f32.mrb[23].mxu1 }
 0x348   : > { %v1819_v51 = vadd.f32 %v2446_v43, %v1818_v49 }
 0x349   : > { %v2605_v52 = vpack.c.bf16 %v1827_v48, %v1824_v47 }
 0x34a   : > { %v2600_v53 = vpack.c.bf16 %v1819_v51, %v1816_v50 }
 0x34b   : > { %2676 = vst [vmem:[%s3378_s7 + $0x18] sm:$0xff] %v2605_v52  }
 0x34c   : > { %2675 = vst [vmem:[%s3378_s7 + $0x10] sm:$0xff] %v2600_v53   ;;  %v2938_v54 = vpop.f32.mrb[24].mxu1 }
 0x34d   : > { %v1831_v55 = vpop.f32.mrb[25].mxu1  ;;  %v1840_v57 = vadd.f32 %v2938_v54, %v2446_v43 }
 0x34e   : > { %v2939_v56 = vpop.f32.mrb[26].mxu1  ;;  %v1832_v60 = vadd.f32 %v2446_v43, %v1831_v55 }
 0x34f   : > { %v1843_v58 = vadd.f32 %v2939_v56, %v2446_v43  ;;  %v1834_v59 = vpop.f32.mrb[27].mxu1 }
 0x350   : > { %v1835_v61 = vadd.f32 %v2446_v43, %v1834_v59 }
 0x351   : > { %v2615_v62 = vpack.c.bf16 %v1843_v58, %v1840_v57 }
 0x352   : > { %v2610_v0 = vpack.c.bf16 %v1835_v61, %v1832_v60 }
 0x353   : > { %2678 = vst [vmem:[%s3378_s7 + $0x28] sm:$0xff] %v2615_v62  }
 0x354   : > { %2677 = vst [vmem:[%s3378_s7 + $0x20] sm:$0xff] %v2610_v0   ;;  %v2942_v1 = vpop.f32.mrb[28].mxu1 }
 0x355   : > { %v1847_v4 = vpop.f32.mrb[29].mxu1  ;;  %v1856_v8 = vadd.f32 %v2942_v1, %v2446_v43 }
 0x356   : > { %v2943_v5 = vpop.f32.mrb[30].mxu1  ;;  %v1848_v11 = vadd.f32 %v2446_v43, %v1847_v4 }
 0x357   : > { %v1859_v9 = vadd.f32 %v2943_v5, %v2446_v43  ;;  %v1850_v10 = vpop.f32.mrb[31].mxu1 }
 0x358   : > { %v1851_v13 = vadd.f32 %v2446_v43, %v1850_v10 }
 0x359   : > { %v2625_v15 = vpack.c.bf16 %v1859_v9, %v1856_v8 }
 0x35a   : > { %v2620_v17 = vpack.c.bf16 %v1851_v13, %v1848_v11 }
 0x35b   : > { %2680 = vst [vmem:[%s3378_s7 + $0x38] sm:$0xff] %v2625_v15  }
 0x35c   : > { %2679 = vst [vmem:[%s3378_s7 + $0x30] sm:$0xff] %v2620_v17   ;;  %v2970_v19 = vpop.f32.mrb[32].mxu1 }
 0x35d   : > { %v2079_v20 = vpop.f32.mrb[33].mxu1  ;;  %v2088_v22 = vadd.f32 %v2970_v19, %v3635_v6 }
 0x35e   : > { %v2971_v21 = vpop.f32.mrb[34].mxu1  ;;  %v2080_v25 = vadd.f32 %v3635_v6, %v2079_v20 }
 0x35f   : > { %v2091_v23 = vadd.f32 %v2971_v21, %v3635_v6  ;;  %v2082_v24 = vpop.f32.mrb[35].mxu1 }
 0x360   : > { %v2083_v26 = vadd.f32 %v3635_v6, %v2082_v24 }
 0x361   : > { %v2655_v27 = vpack.c.bf16 %v2091_v23, %v2088_v22 }
 0x362   : > { %v2650_v28 = vpack.c.bf16 %v2083_v26, %v2080_v25 }
 0x363   : > { %2685 = vst [vmem:[%s3383_s25 + $0x28] sm:$0xff] %v2655_v27  }
 0x364   : > { %2684 = vst [vmem:[%s3383_s25 + $0x20] sm:$0xff] %v2650_v28   ;;  %v2974_v29 = vpop.f32.mrb[36].mxu1 }
 0x365   : > { %v2095_v30 = vpop.f32.mrb[37].mxu1  ;;  %v2104_v32 = vadd.f32 %v2974_v29, %v3635_v6 }
 0x366   : > { %v2975_v31 = vpop.f32.mrb[38].mxu1  ;;  %v2096_v35 = vadd.f32 %v3635_v6, %v2095_v30 }
 0x367   : > { %v2107_v33 = vadd.f32 %v2975_v31, %v3635_v6  ;;  %v2098_v34 = vpop.f32.mrb[39].mxu1 }
 0x368   : > { %v2099_v37 = vadd.f32 %v3635_v6, %v2098_v34 }
 0x369   : > { %v2665_v38 = vpack.c.bf16 %v2107_v33, %v2104_v32 }
 0x36a   : > { %v2660_v40 = vpack.c.bf16 %v2099_v37, %v2096_v35 }
 0x36b   : > { %2687 = vst [vmem:[%s3383_s25 + $0x38] sm:$0xff] %v2665_v38  }
 0x36c   : > { %2686 = vst [vmem:[%s3383_s25 + $0x30] sm:$0xff] %v2660_v40  }
 0x36d PF: > { %s25_s19 = sadd.s32 1, %s3199_s19   ;;  %s3748_s16 = sld [smem:[#allocation4_spill]] }
 0x36e   : > { %p22_p0 = scmp.ge.s32.totalorder %s25_s19, 6   ;;  %s3749_s5 = sld [smem:[#allocation5_spill]] }
 0x36f   : > { %s3750_s18 = sld [smem:[#allocation6_spill]]  ;;  %s3751_s29 = smov %s3179_s30 }
 0x370   : > { %s3752_s30 = smov %s3328_s26  ;;  %s3753_s15 = smov %s3191_s17 }
 0x371   :  { %24 = sbr.rel (!%p22_p0) target bundleno = 10 (0xa), region = 182 }
 0x374   : > { %s3754_s17 = smov %s3749_s5 }

// kernel: word_sage_forward.4
= control target key start
LH: loop header
LB: loop body
LE: loop exit
PB: predicated region body
PF: predicated region fallthrough
CT: control target
= control target key end

     0   :  { %s2312_s18 = smov 0   ;;  %s2314_s19 = smov 0   ;;  %s2970_s0 = inlined_call_operand.vmem [shape: bf16[256,128], index: 0, kind: input, shape index: {}]   ;;  %s2971_s1 = inlined_call_operand.vmem [shape: bf16[256,128], index: 1, kind: input, shape index: {}]   ;;  %s2972_s2 = inlined_call_operand.vmem [shape: bf16[256,128], index: 2, kind: input, shape index: {}]   ;;  %s2973_s3 = inlined_call_operand.vmem [shape: f32[1,128], index: 3, kind: input, shape index: {}]   ;;  %s2974_s4 = inlined_call_operand.vmem [shape: f32[1,128], index: 4, kind: input, shape index: {}]   ;;  %s2975_s5 = inlined_call_operand.vmem [shape: bf16[256,128], index: 5, kind: output, shape index: {}]  }
   0x1   :  { %s2316_s20 = smov 0   ;;  %s2318_s21 = smov 0  }
   0x2   :  { %s2320_s22 = smov 0  }
   0x3 LB: > { %s24_s23 = sadd.s32 1, %s2268_s20  ;;  %s27_s24 = sadd.s32 1, %s2272_s21  ;;  %s2276_s22 = sphi %s2320_s22, %s15_s22   ;;  %s2272_s21 = sphi %s2318_s21, %s2979_s21   ;;  %s2268_s20 = sphi %s2316_s20, %s2978_s20   ;;  %s2264_s19 = sphi %s2314_s19, %s2977_s19   ;;  %s2260_s18 = sphi %s2312_s18, %s2976_s18  }
   0x4   : > { %p25_p0 = scmp.ge.s32.totalorder %s24_s23, 2  ;;  %p1824_p1 = scmp.ge.s32.totalorder %s2276_s22, 1 }
   0x5   : > { %p222_p2 = scmp.lt.s32.totalorder %s2276_s22, 5 }
   0x6   : > { %s2981_s23 = smov (%p25_p0, %s24_s23), 0  ;;  %s2983_s24 = smov (!%p25_p0, %s27_s24), %s2272_s21 }
   0x7   : > { %p223_p3 = pnand %p1824_p1, %p222_p2  ;;  %p29_p4 = scmp.ge.s32.totalorder %s2983_s24, 2 }
   0x8   : > { %s1825_s25 = sshll.u32 (!%p223_p3), %s2264_s19, 4  ;;  %s1827_s26 = sshll.u32 (!%p223_p3), %s2260_s18, 4 }
   0x9   : > { %s2985_s24 = smov (%p29_p4, %s2983_s24), 0  ;;  %226 = sbr.rel (%p223_p3) target bundleno = 1326 (0x52e), region = 40 }
   0xa   : > { %p261_p5 = scmp.lt.s32.totalorder (!%p223_p3), %s1825_s25, 31  ;;  %p267_p6 = scmp.lt.s32.totalorder (!%p223_p3), %s1827_s26, 31 }
   0xb   : > { %p1833_p7 = scmp.ne.s32.totalorder (!%p223_p3), %s2260_s18, 0 }
  0x10   : > { %s2987_s25 = smov (!%p261_p5, %s1825_s25), 31  ;;  %s2989_s26 = smov (!%p267_p6, %s1827_s26), 31 }
  0x11   : > { %s1826_s27 = sshll.u32 %s2987_s25, 2  ;;  %s1828_s6 = sshll.u32 %s2989_s26, 2  ;;  %vm289_vm0 = vcmask (!%p1833_p7), 7168   ;;  %v2278_v0 = vmov (!%p1833_p7), -inf   ;;  %v2279_v1 = vmov (!%p1833_p7), 0.0  }
  0x12   : > { %s2348_s30 = scalar_lea.vmem %s2970_s0, %s1826_s27  ;;  %s2353_s9 = scalar_lea.vmem %s2971_s1, %s1828_s6  ;;  %290 = vst.msk [vmem:[#allocation2] sm:$0xff] (!%p1833_p7), %vm289_vm0, %v2278_v0  ;;  %291 = vst.msk [vmem:[#allocation2 + $0x8] sm:$0xff] (!%p1833_p7), %vm289_vm0, %v2278_v0 }
  0x13   : > { %s2358_s12 = scalar_lea.vmem %s2972_s2, %s1828_s6  ;;  %s2363_s15 = scalar_lea.vmem %s2975_s5, %s1826_s27  ;;  %292 = vst.msk [vmem:[#allocation2 + $0x10] sm:$0xff] (!%p1833_p7), %vm289_vm0, %v2278_v0  ;;  %293 = vst.msk [vmem:[#allocation2 + $0x18] sm:$0xff] (!%p1833_p7), %vm289_vm0, %v2278_v0 }
  0x14   : > { %288 = sbr.rel (%p1833_p7) target bundleno = 42 (0x2a), region = 44  ;;  %294 = vst.msk [vmem:[#allocation2 + $0x20] sm:$0xff] (!%p1833_p7), %vm289_vm0, %v2278_v0  ;;  %295 = vst.msk [vmem:[#allocation2 + $0x28] sm:$0xff] (!%p1833_p7), %vm289_vm0, %v2278_v0 }
  0x15   : > { %296 = vst.msk [vmem:[#allocation2 + $0x30] sm:$0xff] (!%p1833_p7), %vm289_vm0, %v2278_v0  ;;  %297 = vst.msk [vmem:[#allocation2 + $0x38] sm:$0xff] (!%p1833_p7), %vm289_vm0, %v2278_v0 }
  0x16   : > { %298 = vst.msk [vmem:[#allocation2 + $0x40] sm:$0xff] (!%p1833_p7), %vm289_vm0, %v2278_v0  ;;  %299 = vst.msk [vmem:[#allocation2 + $0x48] sm:$0xff] (!%p1833_p7), %vm289_vm0, %v2278_v0 }
  0x17   : > { %300 = vst.msk [vmem:[#allocation2 + $0x50] sm:$0xff] (!%p1833_p7), %vm289_vm0, %v2278_v0  ;;  %301 = vst.msk [vmem:[#allocation2 + $0x58] sm:$0xff] (!%p1833_p7), %vm289_vm0, %v2278_v0 }
  0x18   : > { %302 = vst.msk [vmem:[#allocation2 + $0x60] sm:$0xff] (!%p1833_p7), %vm289_vm0, %v2278_v0  ;;  %303 = vst.msk [vmem:[#allocation2 + $0x68] sm:$0xff] (!%p1833_p7), %vm289_vm0, %v2278_v0 }
  0x19   : > { %304 = vst.msk [vmem:[#allocation2 + $0x70] sm:$0xff] (!%p1833_p7), %vm289_vm0, %v2278_v0  ;;  %305 = vst.msk [vmem:[#allocation2 + $0x78] sm:$0xff] (!%p1833_p7), %vm289_vm0, %v2278_v0 }
  0x1a   : > { %306 = vst.msk [vmem:[#allocation3] sm:$0xff] (!%p1833_p7), %vm289_vm0, %v2279_v1  ;;  %307 = vst.msk [vmem:[#allocation3 + $0x8] sm:$0xff] (!%p1833_p7), %vm289_vm0, %v2279_v1 }
  0x1b   : > { %308 = vst.msk [vmem:[#allocation3 + $0x10] sm:$0xff] %vm289_vm0, %v2279_v1  ;;  %309 = vst.msk [vmem:[#allocation3 + $0x18] sm:$0xff] %vm289_vm0, %v2279_v1 }
  0x1c   : > { %310 = vst.msk [vmem:[#allocation3 + $0x20] sm:$0xff] %vm289_vm0, %v2279_v1  ;;  %311 = vst.msk [vmem:[#allocation3 + $0x28] sm:$0xff] %vm289_vm0, %v2279_v1 }
  0x1d   : > { %312 = vst.msk [vmem:[#allocation3 + $0x30] sm:$0xff] %vm289_vm0, %v2279_v1  ;;  %313 = vst.msk [vmem:[#allocation3 + $0x38] sm:$0xff] %vm289_vm0, %v2279_v1 }
  0x1e   : > { %314 = vst.msk [vmem:[#allocation3 + $0x40] sm:$0xff] %vm289_vm0, %v2279_v1  ;;  %315 = vst.msk [vmem:[#allocation3 + $0x48] sm:$0xff] %vm289_vm0, %v2279_v1 }
  0x1f   : > { %316 = vst.msk [vmem:[#allocation3 + $0x50] sm:$0xff] %vm289_vm0, %v2279_v1  ;;  %317 = vst.msk [vmem:[#allocation3 + $0x58] sm:$0xff] %vm289_vm0, %v2279_v1 }
  0x20   : > { %318 = vst.msk [vmem:[#allocation3 + $0x60] sm:$0xff] %vm289_vm0, %v2279_v1  ;;  %319 = vst.msk [vmem:[#allocation3 + $0x68] sm:$0xff] %vm289_vm0, %v2279_v1 }
  0x21   : > { %320 = vst.msk [vmem:[#allocation3 + $0x70] sm:$0xff] %vm289_vm0, %v2279_v1  ;;  %321 = vst.msk [vmem:[#allocation3 + $0x78] sm:$0xff] %vm289_vm0, %v2279_v1 }
  0x22   : > { %322 = vst [vmem:[#allocation4] sm:$0xff] %v2279_v1  ;;  %323 = vst [vmem:[#allocation4 + $0x8] sm:$0xff] %v2279_v1 }
  0x23   : > { %324 = vst [vmem:[#allocation4 + $0x10] sm:$0xff] %v2279_v1  ;;  %325 = vst [vmem:[#allocation4 + $0x18] sm:$0xff] %v2279_v1 }
  0x24   : > { %326 = vst [vmem:[#allocation4 + $0x20] sm:$0xff] %v2279_v1  ;;  %327 = vst [vmem:[#allocation4 + $0x28] sm:$0xff] %v2279_v1 }
  0x25   : > { %328 = vst [vmem:[#allocation4 + $0x30] sm:$0xff] %v2279_v1  ;;  %329 = vst [vmem:[#allocation4 + $0x38] sm:$0xff] %v2279_v1 }
  0x26   : > { %330 = vst [vmem:[#allocation4 + $0x40] sm:$0xff] %v2279_v1  ;;  %331 = vst [vmem:[#allocation4 + $0x48] sm:$0xff] %v2279_v1 }
  0x27   : > { %332 = vst [vmem:[#allocation4 + $0x50] sm:$0xff] %v2279_v1  ;;  %333 = vst [vmem:[#allocation4 + $0x58] sm:$0xff] %v2279_v1 }
  0x28   : > { %334 = vst [vmem:[#allocation4 + $0x60] sm:$0xff] %v2279_v1  ;;  %335 = vst [vmem:[#allocation4 + $0x68] sm:$0xff] %v2279_v1 }
  0x29   : > { %336 = vst [vmem:[#allocation4 + $0x70] sm:$0xff] %v2279_v1  ;;  %337 = vst [vmem:[#allocation4 + $0x78] sm:$0xff] %v2279_v1 }
  0x2a PF: > { %v2084_v2 = vld [vmem:[%s2353_s9] sm:$0xff]   ;;  %v2085_v3 = vld [vmem:[%s2353_s9 + $0x8] sm:$0xff]   ;;  %v2086_v4 = vld [vmem:[%s2353_s9 + $0x10] sm:$0xff]   ;;  %v2280_v27 = vmov 0   ;;  %vm883_vm1 = vcmask 7168   ;;  %p1858_p8 = scmp.ne.s32.totalorder %s2260_s18, 1 }
  0x2b   : > { %1974 = vmatprep.subr.bf16.mxu0 %v2084_v2  ;;  %v2092_v5 = vld [vmem:[%s2348_s30] sm:$0xff]   ;;  %v2087_v6 = vld [vmem:[%s2353_s9 + $0x18] sm:$0xff]   ;;  %v2089_v8 = vld [vmem:[%s2353_s9 + $0x28] sm:$0xff]   ;;  %2083 = vset.pattern.permute.xlu1 %v2280_v27 }
  0x2c   : > { %1975 = vmatpush3.bf16.xpose.msra.mxu0 %v2084_v2  ;;  %1990 = vmatprep.mubr.bf16.mxu0 %v2092_v5  ;;  %v2088_v7 = vld [vmem:[%s2353_s9 + $0x20] sm:$0xff]   ;;  %v2090_v9 = vld [vmem:[%s2353_s9 + $0x30] sm:$0xff]   ;;  %v2091_v10 = vld [vmem:[%s2353_s9 + $0x38] sm:$0xff]  }
  0x2d   : > { %1976 = vmatprep.subr.bf16.mxu0 %v2085_v3  ;;  %v2093_v11 = vld [vmem:[%s2348_s30 + $0x8] sm:$0xff]   ;;  %v2094_v12 = vld [vmem:[%s2348_s30 + $0x10] sm:$0xff]   ;;  %v2095_v13 = vld [vmem:[%s2348_s30 + $0x18] sm:$0xff]   ;;  %2082 = vset.pattern.permute.xlu0 %v2280_v27 }
  0x2e   : > { %v2096_v14 = vld [vmem:[%s2348_s30 + $0x20] sm:$0xff]   ;;  %v2097_v15 = vld [vmem:[%s2348_s30 + $0x28] sm:$0xff]   ;;  %v2098_v16 = vld [vmem:[%s2348_s30 + $0x30] sm:$0xff]  }
  0x2f   : > { %v2099_v17 = vld [vmem:[%s2348_s30 + $0x38] sm:$0xff]   ;;  %v2100_v35 = vld [vmem:[%s2358_s12] sm:$0xff]   ;;  %v2101_v36 = vld [vmem:[%s2358_s12 + $0x8] sm:$0xff]  }
  0x30   : > { %2006 = vmatprep.subr.bf16.mxu1 %v2100_v35  ;;  %v2464_v37 = vld [vmem:[#allocation2 + $0x10] sm:$0xff]  ;;  %v2466_v38 = vld [vmem:[#allocation2] sm:$0xff]  ;;  %v2474_v43 = vld [vmem:[#allocation2 + $0x18] sm:$0xff] }
  0x31   : > { %2007 = vmatpush3.bf16.msra.mxu1 %v2100_v35  ;;  %v2479_v44 = vld [vmem:[#allocation2 + $0x8] sm:$0xff]  ;;  %v2102_v45 = vld [vmem:[%s2358_s12 + $0x10] sm:$0xff]   ;;  %v2494_v50 = vld [vmem:[#allocation2 + $0x20] sm:$0xff] }
  0x32   : > { %2008 = vmatprep.subr.bf16.mxu1 %v2101_v36  ;;  %v2103_v51 = vld [vmem:[%s2358_s12 + $0x18] sm:$0xff]   ;;  %v2508_v57 = vld [vmem:[#allocation2 + $0x30] sm:$0xff]  ;;  %v2104_v58 = vld [vmem:[%s2358_s12 + $0x20] sm:$0xff]  }
  0x33   : > { %v2499_v52 = vld [vmem:[#allocation2 + $0x38] sm:$0xff]  ;;  %v2513_v59 = vld [vmem:[#allocation2 + $0x28] sm:$0xff]  ;;  %v2523_v0 = vld [vmem:[#allocation2 + $0x40] sm:$0xff] }
  0x34   : > { %1977 = vmatpush3.bf16.xpose.msra.mxu0 %v2085_v3  ;;  %v2105_v1 = vld [vmem:[%s2358_s12 + $0x28] sm:$0xff]   ;;  %v2529_v2 = vld [vmem:[#allocation2 + $0x58] sm:$0xff] }
  0x35   : > { %1978 = vmatprep.subr.bf16.mxu0 %v2086_v4  ;;  %2009 = vmatpush3.bf16.msra.mxu1 %v2101_v36 }
  0x36   : > { %2010 = vmatprep.subr.bf16.mxu1 %v2102_v45 }
  0x39   : > { %2011 = vmatpush3.bf16.msra.mxu1 %v2102_v45  ;;  %v576_v45 = vld [vmem:[#allocation2 + $0x68] sm:$0xff] }
  0x3a   : > { %2012 = vmatprep.subr.bf16.mxu1 %v2103_v51 }
  0x3c   : > { %1979 = vmatpush3.bf16.xpose.msra.mxu0 %v2086_v4 }
  0x3d   : > { %1980 = vmatprep.subr.bf16.mxu0 %v2087_v6  ;;  %2013 = vmatpush3.bf16.msra.mxu1 %v2103_v51 }
  0x3e   : > { %2014 = vmatprep.subr.bf16.mxu1 %v2104_v58 }
  0x41   : > { %2015 = vmatpush3.bf16.msra.mxu1 %v2104_v58 }
  0x42   : > { %2016 = vmatprep.subr.bf16.mxu1 %v2105_v1 }
  0x44   : > { %1981 = vmatpush3.bf16.xpose.msra.mxu0 %v2087_v6 }
  0x45   : > { %1982 = vmatprep.subr.bf16.mxu0 %v2088_v7  ;;  %2017 = vmatpush3.bf16.msra.mxu1 %v2105_v1 }
  0x4c   : > { %1983 = vmatpush3.bf16.xpose.msra.mxu0 %v2088_v7  ;;  %v2539_v7 = vld [vmem:[#allocation2 + $0x50] sm:$0xff] }
  0x4d   : > { %1984 = vmatprep.subr.bf16.mxu0 %v2089_v8 }
  0x54   : > { %1985 = vmatpush3.bf16.xpose.msra.mxu0 %v2089_v8  ;;  %v2106_v8 = vld [vmem:[%s2358_s12 + $0x30] sm:$0xff]  }
  0x55   : > { %1986 = vmatprep.subr.bf16.mxu0 %v2090_v9  ;;  %2018 = vmatprep.subr.bf16.mxu1 %v2106_v8 }
  0x56   : > { %2019 = vmatpush3.bf16.msra.mxu1 %v2106_v8 }
  0x5c   : > { %1987 = vmatpush3.bf16.xpose.msra.mxu0 %v2090_v9  ;;  %v2545_v9 = vld [vmem:[#allocation2 + $0x48] sm:$0xff] }
  0x5d   : > { %1988 = vmatprep.subr.bf16.mxu0 %v2091_v10 }
  0x64   : > { %1989 = vmatpush3.bf16.xpose.msra.mxu0 %v2091_v10 }
  0x6b   : > { %1991 = vmatmul.mubr.bf16.vlgmr.msra.gmra.mrb[0].mxu0 %v2093_v11 }
  0x6c   : > { %1994 = vmatprep.mubr.bf16.mxu0 %v2094_v12 }
  0x73   : > { %1995 = vmatmul.mubr.bf16.gmra.mrb[4].mxu0 %v2095_v13 }
  0x74   : > { %1998 = vmatprep.mubr.bf16.mxu0 %v2096_v14 }
  0x7b   : > { %1999 = vmatmul.mubr.bf16.gmra.mrb[8].mxu0 %v2097_v15  ;;  %v2557_v15 = vld [vmem:[#allocation2 + $0x60] sm:$0xff] }
  0x7c   : > { %2002 = vmatprep.mubr.bf16.mxu0 %v2098_v16  ;;  %v2107_v16 = vld [vmem:[%s2358_s12 + $0x38] sm:$0xff]  }
  0x7d   : > { %2020 = vmatprep.subr.bf16.mxu1 %v2107_v16 }
  0x7e   : > { %2021 = vmatpush3.bf16.msra.mxu1 %v2107_v16 }
  0x83   : > { %2003 = vmatmul.mubr.bf16.gmra.mrb[12].mxu0 %v2099_v17  ;;  %v2563_v17 = vld [vmem:[#allocation2 + $0x78] sm:$0xff] }
 0x13e   : > { %v2414_v18 = vpop.f32.mrb[0].mxu0 }
 0x13f   : > { %583 = vmax.xlane.f32.xlu1 %v2414_v18  ;;  %v2417_v19 = vpop.f32.mrb[1].mxu0 }
 0x140   : > { %579 = vmax.xlane.f32.xlu0 %v2417_v19  ;;  %v2420_v20 = vpop.f32.mrb[2].mxu0 }
 0x141   : > { %v2422_v21 = vpop.f32.mrb[3].mxu0 }
 0x143   : > { %585 = vmax.xlane.f32.xlu1 %v2420_v20 }
 0x144   : > { %581 = vmax.xlane.f32.xlu0 %v2422_v21 }
 0x146   : > { %v2426_v22 = vpop.f32.mrb[4].mxu0 }
 0x147   : > { %v2428_v23 = vpop.f32.mrb[5].mxu0 }
 0x148   : > { %587 = vmax.xlane.f32.xlu0 %v2428_v23  ;;  %v2431_v24 = vpop.f32.mrb[6].mxu0 }
 0x149   : > { %593 = vmax.xlane.f32.xlu1 %v2431_v24  ;;  %v2434_v25 = vpop.f32.mrb[7].mxu0 }
 0x14c   : > { %591 = vmax.xlane.f32.xlu0 %v2426_v22 }
 0x14d   : > { %589 = vmax.xlane.f32.xlu1 %v2434_v25 }
 0x14e   : > { %v2438_v26 = vpop.f32.mrb[8].mxu0 }
 0x14f   : > { %v2440_v28 = vpop.f32.mrb[9].mxu0 }
 0x150   : > { %v2442_v29 = vpop.f32.mrb[10].mxu0  ;;  %595 = vmax.xlane.f32.xlu0 %v2440_v28 }
 0x151   : > { %601 = vmax.xlane.f32.xlu1 %v2442_v29  ;;  %v2446_v30 = vpop.f32.mrb[11].mxu0 }
 0x154   : > { %599 = vmax.xlane.f32.xlu0 %v2438_v26 }
 0x155   : > { %597 = vmax.xlane.f32.xlu1 %v2446_v30 }
 0x156   : > { %v2450_v31 = vpop.f32.mrb[12].mxu0 }
 0x157   : > { %v2452_v32 = vpop.f32.mrb[13].mxu0 }
 0x158   : > { %v2454_v33 = vpop.f32.mrb[14].mxu0  ;;  %603 = vmax.xlane.f32.xlu0 %v2452_v32 }
 0x159   : > { %609 = vmax.xlane.f32.xlu1 %v2454_v33  ;;  %v2458_v34 = vpop.f32.mrb[15].mxu0 }
 0x15c   : > { %607 = vmax.xlane.f32.xlu0 %v2450_v31 }
 0x15d   : > { %605 = vmax.xlane.f32.xlu1 %v2458_v34 }
 0x1cc   : > { %v584_v39 = vpop.xlane.xlu1 %583 }
 0x1cd   : > { %v2469_v40 = vmax.f32 %v2464_v37, %v584_v39  ;;  %v580_v41 = vpop.xlane.xlu0 %579 }
 0x1ce   : > { %v2472_v42 = vmax.f32 %v2466_v38, %v580_v41 }
 0x1cf   : > { %1215 = vst.msk [vmem:[#allocation2 + $0x10] sm:$0xff] %vm883_vm1, %v2469_v40  ;;  %687 = vperm.xlu1 %2083, %v2469_v40  }
 0x1d0   : > { %1213 = vst.msk [vmem:[#allocation2] sm:$0xff] %vm883_vm1, %v2472_v42  ;;  %v586_v46 = vpop.xlane.xlu1 %585  ;;  %677 = vperm.xlu0 %2082, %v2472_v42   ;;  %v627_v11 = vsub.f32 %v2466_v38, %v2472_v42  ;;  %v2576_v42 = vld [vmem:[#allocation2 + $0x70] sm:$0xff] }
 0x1d1   : > { %v2486_v47 = vmax.f32 %v2474_v43, %v586_v46  ;;  %v582_v48 = vpop.xlane.xlu0 %581 }
 0x1d2   : > { %v2489_v49 = vmax.f32 %v2479_v44, %v582_v48  ;;  %v643_v35 = vmul.f32 1.442695, %v627_v11 }
 0x1d3   : > { %1216 = vst.msk [vmem:[#allocation2 + $0x18] sm:$0xff] %vm883_vm1, %v2486_v47  ;;  %692 = vperm.xlu1 %2083, %v2486_v47   ;;  %v630_v36 = vsub.f32 %v2474_v43, %v2486_v47 }
 0x1d4   : > { %1214 = vst.msk [vmem:[#allocation2 + $0x8] sm:$0xff] %vm883_vm1, %v2489_v49  ;;  %v628_v46 = vsub.f32 %v2479_v44, %v2489_v49  ;;  %2108 = vpow2.f32 %v643_v35 }
 0x1d5   : > { %v588_v53 = vpop.xlane.xlu0 %587  ;;  %v649_v48 = vmul.f32 1.442695, %v630_v36 }
 0x1d6   : > { %v2502_v54 = vmax.f32 %v2494_v50, %v588_v53  ;;  %v594_v55 = vpop.xlane.xlu1 %593 }
 0x1d7   : > { %v2505_v56 = vmax.f32 %v2499_v52, %v594_v55  ;;  %682 = vperm.xlu1 %2083, %v2489_v49   ;;  %v629_v49 = vsub.f32 %v2464_v37, %v2469_v40  ;;  %2110 = vpow2.f32 %v649_v48 }
 0x1d8   : > { %1217 = vst.msk [vmem:[#allocation2 + $0x20] sm:$0xff] %vm883_vm1, %v2502_v54  ;;  %v631_v1 = vsub.f32 %v2494_v50, %v2502_v54 }
 0x1d9   : > { %1220 = vst.msk [vmem:[#allocation2 + $0x38] sm:$0xff] %vm883_vm1, %v2505_v56  ;;  %v592_v60 = vpop.xlane.xlu0 %591 }
 0x1da   : > { %v2518_v61 = vmax.f32 %v2508_v57, %v592_v60  ;;  %v590_v62 = vpop.xlane.xlu1 %589  ;;  %v645_v60 = vmul.f32 1.442695, %v628_v46 }
 0x1db   : > { %v2521_v63 = vmax.f32 %v2513_v59, %v590_v62 }
 0x1dc   : > { %1219 = vst.msk [vmem:[#allocation2 + $0x30] sm:$0xff] %vm883_vm1, %v2518_v61  ;;  %707 = vperm.xlu1 %2083, %v2518_v61   ;;  %2112 = vpow2.f32 %v645_v60 }
 0x1dd   : > { %1218 = vst.msk [vmem:[#allocation2 + $0x28] sm:$0xff] %vm883_vm1, %v2521_v63  ;;  %v596_v3 = vpop.xlane.xlu0 %595  ;;  %v632_v51 = vsub.f32 %v2513_v59, %v2521_v63  ;;  %v634_v59 = vsub.f32 %v2499_v52, %v2505_v56  ;;  %v651_v52 = vmul.f32 1.442695, %v631_v1 }
 0x1de   : > { %v602_v4 = vpop.xlane.xlu1 %601  ;;  %v2534_v5 = vmax.f32 %v2523_v0, %v596_v3  ;;  %v2609_v40 = vpop.eup %2108 }
 0x1df   : > { %v2537_v6 = vmax.f32 %v2529_v2, %v602_v4  ;;  %v653_v62 = vmul.f32 1.442695, %v632_v51  ;;  %v657_v3 = vmul.f32 1.442695, %v634_v59 }
 0x1e0   : > { %1221 = vst.msk [vmem:[#allocation2 + $0x40] sm:$0xff] %vm883_vm1, %v2534_v5  ;;  %697 = vperm.xlu1 %2083, %v2502_v54  }
 0x1e1   : > { %1224 = vst.msk [vmem:[#allocation2 + $0x58] sm:$0xff] %vm883_vm1, %v2537_v6  ;;  %v600_v10 = vpop.xlane.xlu0 %599  ;;  %2114 = vpow2.f32 %v653_v62  ;;  %v638_v37 = vsub.f32 %v2529_v2, %v2537_v6  ;;  %v2617_v4 = vpop.eup %2110 }
 0x1e2   : > { %v598_v12 = vpop.xlane.xlu1 %597  ;;  %v2552_v13 = vmax.f32 %v2539_v7, %v600_v10 }
 0x1e3   : > { %v2555_v14 = vmax.f32 %v2545_v9, %v598_v12  ;;  %v665_v50 = vmul.f32 1.442695, %v638_v37 }
 0x1e4   : > { %1223 = vst.msk [vmem:[#allocation2 + $0x50] sm:$0xff] %vm883_vm1, %v2552_v13  ;;  %702 = vperm.xlu1 %2083, %v2521_v63   ;;  %v647_v63 = vmul.f32 1.442695, %v629_v49 }
 0x1e5   : > { %1222 = vst.msk [vmem:[#allocation2 + $0x48] sm:$0xff] %vm883_vm1, %v2555_v14  ;;  %722 = vperm.xlu0 %2082, %v2555_v14   ;;  %v604_v27 = vpop.xlane.xlu0 %603  ;;  %v636_v54 = vsub.f32 %v2545_v9, %v2555_v14  ;;  %v635_v9 = vsub.f32 %v2523_v0, %v2534_v5 }
 0x1e6   : > { %v610_v38 = vpop.xlane.xlu1 %609  ;;  %v2571_v39 = vmax.f32 %v2557_v15, %v604_v27  ;;  %2116 = vpow2.f32 %v647_v63  ;;  %v2623_v8 = vpop.eup %2112 }
 0x1e7   : > { %v2574_v41 = vmax.f32 %v2563_v17, %v610_v38  ;;  %2118 = vpow2.f32 %v657_v3  ;;  %v659_v14 = vmul.f32 1.442695, %v635_v9 }
 0x1e8   : > { %1225 = vst.msk [vmem:[#allocation2 + $0x60] sm:$0xff] %vm883_vm1, %v2571_v39  ;;  %712 = vperm.xlu1 %2083, %v2505_v56   ;;  %v633_v56 = vsub.f32 %v2508_v57, %v2518_v61  ;;  %2120 = vpow2.f32 %v651_v52  ;;  %v661_v57 = vmul.f32 1.442695, %v636_v54  ;;  %v639_v16 = vsub.f32 %v2557_v15, %v2571_v39 }
 0x1e9   : > { %v642_v43 = vsub.f32 %v2563_v17, %v2574_v41  ;;  %1228 = vst.msk [vmem:[#allocation2 + $0x78] sm:$0xff] %vm883_vm1, %v2574_v41  ;;  %732 = vperm.xlu0 %2082, %v2537_v6   ;;  %v608_v47 = vpop.xlane.xlu0 %607  ;;  %v637_v6 = vsub.f32 %v2539_v7, %v2552_v13  ;;  %2122 = vpow2.f32 %v665_v50 }
 0x1ea   : > { %v606_v53 = vpop.xlane.xlu1 %605  ;;  %v2591_v55 = vmax.f32 %v2576_v42, %v608_v47  ;;  %v655_v2 = vmul.f32 1.442695, %v633_v56  ;;  %v667_v27 = vmul.f32 1.442695, %v639_v16 }
 0x1eb   : > { %v624_v58 = vmax.f32 %v576_v45, %v606_v53  ;;  %v2625_v10 = vpop.eup %2114  ;;  %v663_v11 = vmul.f32 1.442695, %v637_v6 }
 0x1ec   : > { %v641_v44 = vsub.f32 %v2576_v42, %v2591_v55  ;;  %1227 = vst.msk [vmem:[#allocation2 + $0x70] sm:$0xff] %vm883_vm1, %v2591_v55  ;;  %717 = vperm.xlu1 %2083, %v2534_v5   ;;  %2124 = vpow2.f32 %v655_v2 }
 0x1ed   : > { %1226 = vst.msk [vmem:[#allocation2 + $0x68] sm:$0xff] %vm883_vm1, %v624_v58  ;;  %742 = vperm.xlu0 %2082, %v624_v58   ;;  %v640_v61 = vsub.f32 %v576_v45, %v624_v58  ;;  %2126 = vpow2.f32 %v661_v57 }
 0x1ee   : > { %2128 = vpow2.f32 %v663_v11 }
 0x1ef   : > { %v669_v7 = vmul.f32 1.442695, %v640_v61 }
 0x1f0   : > { %727 = vperm.xlu1 %2083, %v2552_v13   ;;  %v2631_v12 = vpop.eup %2116 }
 0x1f1   : > { %752 = vperm.xlu0 %2082, %v2574_v41   ;;  %v2633_v13 = vpop.eup %2118  ;;  %2130 = vpow2.f32 %v669_v7 }
 0x1f2   : > { %v2639_v0 = vpop.eup %2120  ;;  %2132 = vpow2.f32 %v659_v14 }
 0x1f3   : > { %v2641_v5 = vpop.eup %2122  ;;  %2134 = vpow2.f32 %v667_v27 }
 0x1f4   : > { %737 = vperm.xlu1 %2083, %v2571_v39  }
 0x1f5   : > { %918 = vperm.xlu0 %2082, %v2609_v40  }
 0x1f6   : > { %v2645_v35 = vpop.eup %2124 }
 0x1f7   : > { %v2647_v36 = vpop.eup %2126 }
 0x1f8   : > { %747 = vperm.xlu1 %2083, %v2591_v55   ;;  %v2651_v15 = vpop.eup %2128 }
 0x1f9   : > { %933 = vperm.xlu0 %2082, %v2617_v4  }
 0x1fb   : > { %v2653_v38 = vpop.eup %2130 }
 0x1fc   : > { %923 = vperm.xlu1 %2083, %v2623_v8   ;;  %v2657_v39 = vpop.eup %2132 }
 0x1fd   : > { %943 = vperm.xlu0 %2082, %v2625_v10   ;;  %v2660_v45 = vpop.eup %2134 }
 0x200   : > { %928 = vperm.xlu1 %2083, %v2631_v12  }
 0x201   : > { %953 = vperm.xlu0 %2082, %v2633_v13  }
 0x204   : > { %938 = vperm.xlu1 %2083, %v2639_v0  }
 0x205   : > { %973 = vperm.xlu0 %2082, %v2641_v5  }
 0x208   : > { %948 = vperm.xlu1 %2083, %v2645_v35  }
 0x209   : > { %963 = vperm.xlu0 %2082, %v2647_v36  }
 0x20c   : > { %968 = vperm.xlu1 %2083, %v2651_v15  }
 0x20d   : > { %983 = vperm.xlu0 %2082, %v2653_v38  }
 0x210   : > { %958 = vperm.xlu1 %2083, %v2657_v39  }
 0x214   : > { %978 = vperm.xlu1 %2083, %v2660_v45  }
 0x24e   : > { %v688_v46 = vpop.permute.xlu1 %687 }
 0x24f   : > { %v757_v47 = vsub.f32 %v2414_v18, %v688_v46  ;;  %v678_v48 = vpop.permute.xlu0 %677 }
 0x250   : > { %v755_v51 = vsub.f32 %v2417_v19, %v678_v48 }
 0x251   : > { %v775_v53 = vmul.f32 1.442695, %v757_v47 }
 0x252   : > { %v771_v58 = vmul.f32 1.442695, %v755_v51  ;;  %v693_v49 = vpop.permute.xlu1 %692 }
 0x253   : > { %2136 = vpow2.f32 %v775_v53  ;;  %v758_v60 = vsub.f32 %v2420_v20, %v693_v49 }
 0x254   : > { %2138 = vpow2.f32 %v771_v58 }
 0x255   : > { %v777_v59 = vmul.f32 1.442695, %v758_v60 }
 0x256   : > { %v683_v62 = vpop.permute.xlu1 %682 }
 0x257   : > { %2140 = vpow2.f32 %v777_v59  ;;  %v756_v63 = vsub.f32 %v2422_v21, %v683_v62 }
 0x259   : > { %v773_v1 = vmul.f32 1.442695, %v756_v63 }
 0x25b   : > { %2142 = vpow2.f32 %v773_v1  ;;  %v708_v3 = vpop.permute.xlu1 %707 }
 0x25c   : > { %v761_v18 = vsub.f32 %v2426_v22, %v708_v3 }
 0x25d   : > { %v2137_v37 = vpop.eup %2136 }
 0x25e   : > { %v2139_v52 = vpop.eup %2138  ;;  %v783_v19 = vmul.f32 1.442695, %v761_v18  ;;  %839 = vadd.xlane.f32.xlu0 %v2137_v37 }
 0x25f   : > { %835 = vadd.xlane.f32.xlu1 %v2139_v52  ;;  %v698_v56 = vpop.permute.xlu1 %697 }
 0x260   : > { %2144 = vpow2.f32 %v783_v19  ;;  %v759_v20 = vsub.f32 %v2428_v23, %v698_v56 }
 0x261   : > { %v2141_v50 = vpop.eup %2140 }
 0x262   : > { %v779_v54 = vmul.f32 1.442695, %v759_v20  ;;  %v1013_v2 = vpack.c.bf16 %v2141_v50, %v2137_v37 }
 0x263   : > { %841 = vadd.xlane.f32.xlu1 %v2141_v50  ;;  %v703_v6 = vpop.permute.xlu1 %702 }
 0x264   : > { %2146 = vpow2.f32 %v779_v54  ;;  %v760_v21 = vsub.f32 %v2434_v25, %v703_v6  ;;  %v723_v57 = vpop.permute.xlu0 %722 }
 0x265   : > { %v2143_v61 = vpop.eup %2142  ;;  %v764_v11 = vsub.f32 %v2446_v30, %v723_v57 }
 0x266   : > { %v781_v22 = vmul.f32 1.442695, %v760_v21  ;;  %837 = vadd.xlane.f32.xlu0 %v2143_v61  ;;  %v1012_v9 = vpack.c.bf16 %v2143_v61, %v2139_v52 }
 0x267   : > { %v713_v7 = vpop.permute.xlu1 %712  ;;  %v789_v46 = vmul.f32 1.442695, %v764_v11  ;;  %v671_v11 = vmul.f32 1.442695, %v641_v44 }
 0x268   : > { %2148 = vpow2.f32 %v781_v22  ;;  %v762_v14 = vsub.f32 %v2431_v24, %v713_v7  ;;  %v733_v23 = vpop.permute.xlu0 %732  ;;  %2022 = vmatprep.mubr.bf16.mxu1 %v1012_v9  ;;  %v673_v7 = vmul.f32 1.442695, %v642_v43 }
 0x269   : > { %2023 = vmatmul.mubr.bf16.vlgmr.msra.gmra.mrb[0].mxu1 %v1013_v2  ;;  %v766_v47 = vsub.f32 %v2442_v29, %v733_v23 }
 0x26a   : > { %v2145_v16 = vpop.eup %2144  ;;  %v785_v27 = vmul.f32 1.442695, %v762_v14 }
 0x26b   : > { %847 = vadd.xlane.f32.xlu0 %v2145_v16  ;;  %v718_v25 = vpop.permute.xlu1 %717  ;;  %v793_v58 = vmul.f32 1.442695, %v766_v47 }
 0x26c   : > { %2150 = vpow2.f32 %v785_v27  ;;  %v763_v48 = vsub.f32 %v2440_v28, %v718_v25  ;;  %v743_v51 = vpop.permute.xlu0 %742 }
 0x26d   : > { %2152 = vpow2.f32 %v789_v46  ;;  %v768_v24 = vsub.f32 %v2458_v34, %v743_v51 }
 0x26e   : > { %v2147_v53 = vpop.eup %2146  ;;  %v787_v30 = vmul.f32 1.442695, %v763_v48 }
 0x26f   : > { %843 = vadd.xlane.f32.xlu0 %v2147_v53  ;;  %v728_v49 = vpop.permute.xlu1 %727  ;;  %v797_v63 = vmul.f32 1.442695, %v768_v24 }
 0x270   : > { %2154 = vpow2.f32 %v787_v30  ;;  %v765_v60 = vsub.f32 %v2438_v26, %v728_v49  ;;  %v753_v59 = vpop.permute.xlu0 %752 }
 0x271   : > { %2156 = vpow2.f32 %v793_v58  ;;  %v770_v1 = vsub.f32 %v2454_v33, %v753_v59  ;;  %v803_v58 = vld [vmem:[#allocation3] sm:$0xff] }
 0x272   : > { %v2149_v62 = vpop.eup %2148  ;;  %v791_v29 = vmul.f32 1.442695, %v765_v60  ;;  %v819_v60 = vmul.f32 %v2609_v40, %v803_v58  ;;  %v809_v40 = vld [vmem:[#allocation3 + $0x30] sm:$0xff] }
 0x273   : > { %v738_v28 = vpop.permute.xlu1 %737  ;;  %v1014_v3 = vpack.c.bf16 %v2149_v62, %v2147_v53  ;;  %v801_v52 = vmul.f32 1.442695, %v770_v1  ;;  %v805_v53 = vld [vmem:[#allocation3 + $0x10] sm:$0xff] }
 0x274   : > { %2158 = vpow2.f32 %v791_v29  ;;  %v767_v18 = vsub.f32 %v2452_v32, %v738_v28  ;;  %v821_v24 = vmul.f32 %v2631_v12, %v805_v53  ;;  %v806_v29 = vld [vmem:[#allocation3 + $0x18] sm:$0xff]  ;;  %v804_v28 = vld [vmem:[#allocation3 + $0x8] sm:$0xff] }
 0x275   : > { %2026 = vmatprep.mubr.bf16.mxu1 %v1014_v3  ;;  %2160 = vpow2.f32 %v797_v63  ;;  %v822_v1 = vmul.f32 %v2617_v4, %v806_v29 }
 0x276   : > { %v2151_v37 = vpop.eup %2150  ;;  %v795_v34 = vmul.f32 1.442695, %v767_v18 }
 0x277   : > { %849 = vadd.xlane.f32.xlu1 %v2151_v37  ;;  %v748_v19 = vpop.permute.xlu1 %747  ;;  %v1015_v26 = vpack.c.bf16 %v2151_v37, %v2145_v16  ;;  %v2153_v20 = vpop.eup %2152  ;;  %v820_v37 = vmul.f32 %v2623_v8, %v804_v28  ;;  %v810_v8 = vld [vmem:[#allocation3 + $0x38] sm:$0xff]  ;;  %v815_v28 = vld [vmem:[#allocation3 + $0x60] sm:$0xff] }
 0x278   : > { %2162 = vpow2.f32 %v795_v34  ;;  %v769_v56 = vsub.f32 %v2450_v31, %v748_v19  ;;  %v2691_v16 = vpop.permute.xlu0 %918 }
 0x279   : > { %2027 = vmatmul.mubr.bf16.gmra.mrb[4].mxu1 %v1015_v26  ;;  %2164 = vpow2.f32 %v801_v52  ;;  %v825_v52 = vmul.f32 %v2645_v35, %v809_v40  ;;  %v807_v26 = vld [vmem:[#allocation3 + $0x20] sm:$0xff] }
 0x27a   : > { %v2155_v50 = vpop.eup %2154  ;;  %v799_v33 = vmul.f32 1.442695, %v769_v56  ;;  %v823_v4 = vmul.f32 %v2639_v0, %v807_v26  ;;  %v901_v26 = vld [vmem:[#allocation4 + $0x8] sm:$0xff] }
 0x27b   : > { %845 = vadd.xlane.f32.xlu1 %v2149_v62  ;;  %v1016_v54 = vpack.c.bf16 %v2153_v20, %v2155_v50  ;;  %v2157_v32 = vpop.eup %2156  ;;  %v2693_v27 = vpop.permute.xlu1 %923 }
 0x27c   : > { %2166 = vpow2.f32 %v799_v33  ;;  %v2695_v42 = vpop.permute.xlu0 %933  ;;  %v826_v33 = vmul.f32 %v2633_v13, %v810_v8  ;;  %v811_v13 = vld [vmem:[#allocation3 + $0x40] sm:$0xff]  ;;  %v997_v8 = vmul.f32 %v2693_v27, %v901_v26 }
 0x27d   : > { %2030 = vmatprep.mubr.bf16.mxu1 %v1016_v54  ;;  %2168 = vpow2.f32 %v671_v11  ;;  %v812_v11 = vld [vmem:[#allocation3 + $0x48] sm:$0xff] }
 0x27e   : > { %v2159_v2 = vpop.eup %2158  ;;  %2170 = vpow2.f32 %v673_v7  ;;  %v828_v58 = vmul.f32 %v2647_v36, %v812_v11 }
 0x27f   : > { %857 = vadd.xlane.f32.xlu1 %v2157_v32  ;;  %855 = vadd.xlane.f32.xlu0 %v2159_v2  ;;  %v1017_v6 = vpack.c.bf16 %v2157_v32, %v2159_v2  ;;  %v2161_v21 = vpop.eup %2160  ;;  %v2697_v55 = vpop.permute.xlu1 %928  ;;  %v808_v32 = vld [vmem:[#allocation3 + $0x28] sm:$0xff] }
 0x280   : > { %v2699_v44 = vpop.permute.xlu0 %943  ;;  %v824_v35 = vmul.f32 %v2625_v10, %v808_v32  ;;  %v827_v10 = vmul.f32 %v2657_v39, %v811_v13  ;;  %v816_v39 = vld [vmem:[#allocation3 + $0x68] sm:$0xff] }
 0x281   : > { %2031 = vmatmul.mubr.bf16.gmra.mrb[8].mxu1 %v1017_v6 }
 0x282   : > { %v2163_v57 = vpop.eup %2162 }
 0x283   : > { %853 = vadd.xlane.f32.xlu1 %v2153_v20  ;;  %851 = vadd.xlane.f32.xlu0 %v2155_v50  ;;  %v1018_v31 = vpack.c.bf16 %v2161_v21, %v2163_v57  ;;  %v2165_v61 = vpop.eup %2164  ;;  %v2701_v17 = vpop.permute.xlu1 %938 }
 0x284   : > { %v2703_v41 = vpop.permute.xlu0 %953 }
 0x285   : > { %2034 = vmatprep.mubr.bf16.mxu1 %v1018_v31 }
 0x286   : > { %v2167_v22 = vpop.eup %2166 }
 0x287   : > { %865 = vadd.xlane.f32.xlu1 %v2165_v61  ;;  %863 = vadd.xlane.f32.xlu0 %v2167_v22  ;;  %v1019_v9 = vpack.c.bf16 %v2165_v61, %v2167_v22  ;;  %v2685_v14 = vpop.eup %2168  ;;  %v2705_v43 = vpop.permute.xlu1 %948 }
 0x288   : > { %v2688_v23 = vpop.eup %2170  ;;  %v2707_v46 = vpop.permute.xlu0 %973 }
 0x289   : > { %2035 = vmatmul.mubr.bf16.gmra.mrb[12].mxu1 %v1019_v9 }
 0x28b   : > { %861 = vadd.xlane.f32.xlu1 %v2161_v21  ;;  %859 = vadd.xlane.f32.xlu0 %v2163_v57  ;;  %v2709_v47 = vpop.permute.xlu1 %968  ;;  %v813_v21 = vld [vmem:[#allocation3 + $0x50] sm:$0xff]  ;;  %v814_v57 = vld [vmem:[#allocation3 + $0x58] sm:$0xff] }
 0x28c   : > { %v2711_v25 = vpop.permute.xlu0 %963  ;;  %v829_v0 = vmul.f32 %v2651_v15, %v813_v21  ;;  %v830_v61 = vmul.f32 %v2641_v5, %v814_v57  ;;  %v818_v15 = vld [vmem:[#allocation3 + $0x78] sm:$0xff] }
 0x28d   : > { %v834_v29 = vmul.f32 %v2688_v23, %v818_v15  ;;  %v907_v21 = vld [vmem:[#allocation4 + $0x38] sm:$0xff] }
 0x28e   : > { %v1003_v27 = vmul.f32 %v2703_v41, %v907_v21 }
 0x28f   : > { %v2713_v48 = vpop.permute.xlu1 %958 }
 0x290   : > { %v2715_v51 = vpop.permute.xlu0 %983 }
 0x293   : > { %v2717_v30 = vpop.permute.xlu1 %978 }
 0x29c   : > { %988 = vperm.xlu1 %2083, %v2685_v14  }
 0x2a1   : > { %993 = vperm.xlu0 %2082, %v2688_v23   ;;  %v902_v23 = vld [vmem:[#allocation4 + $0x10] sm:$0xff] }
 0x2eb   : > { %v840_v49 = vpop.xlane.xlu0 %839 }
 0x2ec   : > { %v869_v59 = vadd.f32 %v840_v49, %v821_v24  ;;  %v836_v62 = vpop.xlane.xlu1 %835 }
 0x2ed   : > { %v867_v63 = vadd.f32 %v836_v62, %v819_v60  ;;  %v817_v60 = vld [vmem:[#allocation3 + $0x70] sm:$0xff] }
 0x2ee   : > { %886 = vst.msk [vmem:[#allocation3 + $0x10] sm:$0xff] %vm883_vm1, %v869_v59  ;;  %v833_v62 = vmul.f32 %v2685_v14, %v817_v60 }
 0x2ef   : > { %884 = vst.msk [vmem:[#allocation3] sm:$0xff] %vm883_vm1, %v867_v63 }
 0x2f0   : > { %v842_v3 = vpop.xlane.xlu1 %841 }
 0x2f1   : > { %v870_v18 = vadd.f32 %v842_v3, %v822_v1 }
 0x2f3   : > { %887 = vst.msk [vmem:[#allocation3 + $0x18] sm:$0xff] %vm883_vm1, %v870_v18  ;;  %v838_v12 = vpop.xlane.xlu0 %837  ;;  %v831_v18 = vmul.f32 %v2660_v45, %v815_v28 }
 0x2f4   : > { %v868_v34 = vadd.f32 %v838_v12, %v820_v37  ;;  %v832_v37 = vmul.f32 %v2653_v38, %v816_v39 }
 0x2f6   : > { %885 = vst.msk [vmem:[#allocation3 + $0x8] sm:$0xff] %vm883_vm1, %v868_v34 }
 0x2f8   : > { %v848_v19 = vpop.xlane.xlu0 %847 }
 0x2f9   : > { %v873_v56 = vadd.f32 %v848_v19, %v825_v52  ;;  %v900_v52 = vld [vmem:[#allocation4] sm:$0xff]  ;;  %v903_v19 = vld [vmem:[#allocation4 + $0x18] sm:$0xff] }
 0x2fa   : > { %v999_v45 = vmul.f32 %v2695_v42, %v903_v19 }
 0x2fb   : > { %890 = vst.msk [vmem:[#allocation3 + $0x30] sm:$0xff] %vm883_vm1, %v873_v56  ;;  %v998_v56 = vmul.f32 %v2697_v55, %v902_v23  ;;  %v904_v55 = vld [vmem:[#allocation4 + $0x20] sm:$0xff] }
 0x2fc   : > { %v844_v20 = vpop.xlane.xlu0 %843  ;;  %v1000_v42 = vmul.f32 %v2701_v17, %v904_v55  ;;  %v909_v17 = vld [vmem:[#allocation4 + $0x48] sm:$0xff] }
 0x2fd   : > { %v871_v50 = vadd.f32 %v844_v20, %v823_v4  ;;  %v996_v4 = vmul.f32 %v2691_v16, %v900_v52  ;;  %v905_v16 = vld [vmem:[#allocation4 + $0x28] sm:$0xff] }
 0x2ff   : > { %888 = vst.msk [vmem:[#allocation3 + $0x20] sm:$0xff] %vm883_vm1, %v871_v50 }
 0x304   : > { %v850_v54 = vpop.xlane.xlu1 %849 }
 0x305   : > { %v874_v2 = vadd.f32 %v850_v54, %v826_v33 }
 0x307   : > { %891 = vst.msk [vmem:[#allocation3 + $0x38] sm:$0xff] %vm883_vm1, %v874_v2 }
 0x308   : > { %v846_v6 = vpop.xlane.xlu1 %845 }
 0x309   : > { %v872_v31 = vadd.f32 %v846_v6, %v824_v35  ;;  %v906_v6 = vld [vmem:[#allocation4 + $0x30] sm:$0xff] }
 0x30a   : > { %v1002_v57 = vmul.f32 %v2705_v43, %v906_v6  ;;  %v911_v43 = vld [vmem:[#allocation4 + $0x58] sm:$0xff] }
 0x30b   : > { %889 = vst.msk [vmem:[#allocation3 + $0x28] sm:$0xff] %vm883_vm1, %v872_v31 }
 0x30c   : > { %v856_v22 = vpop.xlane.xlu0 %855  ;;  %v858_v9 = vpop.xlane.xlu1 %857 }
 0x30d   : > { %v877_v7 = vadd.f32 %v856_v22, %v829_v0  ;;  %v878_v53 = vadd.f32 %v858_v9, %v830_v61  ;;  %v1001_v22 = vmul.f32 %v2699_v44, %v905_v16  ;;  %v1007_v44 = vmul.f32 %v2707_v46, %v911_v43 }
 0x30f   : > { %894 = vst.msk [vmem:[#allocation3 + $0x50] sm:$0xff] %vm883_vm1, %v877_v7  ;;  %895 = vst.msk [vmem:[#allocation3 + $0x58] sm:$0xff] %vm883_vm1, %v878_v53  ;;  %v910_v53 = vld [vmem:[#allocation4 + $0x50] sm:$0xff] }
 0x310   : > { %v852_v24 = vpop.xlane.xlu0 %851  ;;  %v854_v49 = vpop.xlane.xlu1 %853 }
 0x311   : > { %v875_v59 = vadd.f32 %v852_v24, %v827_v10  ;;  %v876_v5 = vadd.f32 %v854_v49, %v828_v58  ;;  %v908_v58 = vld [vmem:[#allocation4 + $0x40] sm:$0xff]  ;;  %v1006_v24 = vmul.f32 %v2709_v47, %v910_v53  ;;  %v915_v47 = vld [vmem:[#allocation4 + $0x78] sm:$0xff] }
 0x312   : > { %v1004_v41 = vmul.f32 %v2713_v48, %v908_v58 }
 0x313   : > { %892 = vst.msk [vmem:[#allocation3 + $0x40] sm:$0xff] %vm883_vm1, %v875_v59  ;;  %893 = vst.msk [vmem:[#allocation3 + $0x48] sm:$0xff] %vm883_vm1, %v876_v5  ;;  %v1005_v59 = vmul.f32 %v2711_v25, %v909_v17 }
 0x314   : > { %v864_v63 = vpop.xlane.xlu0 %863  ;;  %v866_v1 = vpop.xlane.xlu1 %865 }
 0x315   : > { %v881_v3 = vadd.f32 %v864_v63, %v833_v62  ;;  %v882_v36 = vadd.f32 %v866_v1, %v834_v29  ;;  %v914_v1 = vld [vmem:[#allocation4 + $0x70] sm:$0xff] }
 0x316   : > { %v1260_v55 = vld [vmem:[#allocation3 + $0x58] sm:$0xff] (!%p1858_p8)  ;;  %v1259_v16 = vld [vmem:[#allocation3 + $0x50] sm:$0xff] (!%p1858_p8) }
 0x317   : > { %898 = vst.msk [vmem:[#allocation3 + $0x70] sm:$0xff] %vm883_vm1, %v881_v3  ;;  %899 = vst.msk [vmem:[#allocation3 + $0x78] sm:$0xff] %vm883_vm1, %v882_v36  ;;  %v912_v3 = vld [vmem:[#allocation4 + $0x60] sm:$0xff]  ;;  %v913_v36 = vld [vmem:[#allocation4 + $0x68] sm:$0xff] }
 0x318   : > { %v860_v12 = vpop.xlane.xlu0 %859  ;;  %v862_v34 = vpop.xlane.xlu1 %861 }
 0x319   : > { %v879_v40 = vadd.f32 %v860_v12, %v831_v18  ;;  %v880_v14 = vadd.f32 %v862_v34, %v832_v37  ;;  %v1008_v18 = vmul.f32 %v2717_v30, %v912_v3  ;;  %v1249_v30 = vld [vmem:[#allocation3] sm:$0xff] (!%p1858_p8) }
 0x31b   : > { %896 = vst.msk [vmem:[#allocation3 + $0x60] sm:$0xff] %vm883_vm1, %v879_v40  ;;  %897 = vst.msk [vmem:[#allocation3 + $0x68] sm:$0xff] %vm883_vm1, %v880_v14  ;;  %v1009_v40 = vmul.f32 %v2715_v51, %v913_v36  ;;  %v1250_v51 = vld [vmem:[#allocation3 + $0x8] sm:$0xff] (!%p1858_p8) }
 0x31c   : > { %v989_v28 = vpop.permute.xlu1 %988 }
 0x31d   : > { %v1010_v46 = vmul.f32 %v989_v28, %v914_v1 }
 0x320   : > { %v994_v48 = vpop.permute.xlu0 %993 }
 0x321   : > { %v1011_v25 = vmul.f32 %v994_v48, %v915_v47 }
 0x33c   : > { %v2024_v20 = vpop.f32.mrb[0].mxu1 }
 0x33d   : > { %v1183_v38 = vadd.f32 %v2024_v20, %v998_v56  ;;  %v1118_v50 = vpop.f32.mrb[1].mxu1  ;;  %v1251_v56 = vld [vmem:[#allocation3 + $0x10] sm:$0xff] (!%p1858_p8)  ;;  %v2281_v20 = vmov (!%p1858_p8), 0  }
 0x33e   : > { %v1181_v33 = vadd.f32 %v1118_v50, %v996_v4  ;;  %v2025_v54 = vpop.f32.mrb[2].mxu1  ;;  %v1252_v4 = vld [vmem:[#allocation3 + $0x18] sm:$0xff] (!%p1858_p8)  ;;  %2173 = vset.pattern.permute.xlu1 (!%p1858_p8), %v2281_v20  ;;  %2172 = vset.pattern.permute.xlu0 (!%p1858_p8), %v2281_v20  ;;  %2174 = vrcp.f32 (!%p1858_p8), %v1251_v56 }
 0x33f   : > { %1199 = vst [vmem:[#allocation4 + $0x10] sm:$0xff] %v1183_v38  ;;  %v1184_v32 = vadd.f32 %v2025_v54, %v999_v45  ;;  %v1121_v2 = vpop.f32.mrb[3].mxu1  ;;  %2176 = vrcp.f32 (!%p1858_p8), %v1249_v30  ;;  %v1254_v45 = vld [vmem:[#allocation3 + $0x28] sm:$0xff] (!%p1858_p8)  ;;  %v1253_v38 = vld [vmem:[#allocation3 + $0x20] sm:$0xff] (!%p1858_p8)  ;;  %v1256_v50 = vld [vmem:[#allocation3 + $0x38] sm:$0xff] (!%p1858_p8) }
 0x340   : > { %1197 = vst [vmem:[#allocation4] sm:$0xff] %v1181_v33  ;;  %v1182_v35 = vadd.f32 %v1121_v2, %v997_v8  ;;  %2178 = vrcp.f32 (!%p1858_p8), %v1252_v4  ;;  %v1255_v8 = vld [vmem:[#allocation3 + $0x30] sm:$0xff] (!%p1858_p8) }
 0x341   : > { %1200 = vst [vmem:[#allocation4 + $0x18] sm:$0xff] %v1184_v32  ;;  %2180 = vrcp.f32 (!%p1858_p8), %v1250_v51  ;;  %v1258_v32 = vld [vmem:[#allocation3 + $0x48] sm:$0xff] (!%p1858_p8) }
 0x342   : > { %1198 = vst [vmem:[#allocation4 + $0x8] sm:$0xff] %v1182_v35  ;;  %2182 = vrcp.f32 (!%p1858_p8), %v1254_v45  ;;  %v1257_v35 = vld [vmem:[#allocation3 + $0x40] sm:$0xff] (!%p1858_p8) }
 0x343   : > { %2184 = vrcp.f32 (!%p1858_p8), %v1253_v38 }
 0x344   : > { %2186 = vrcp.f32 (!%p1858_p8), %v1256_v50 }
 0x345   : > { %2188 = vrcp.f32 (!%p1858_p8), %v1255_v8 }
 0x346   : > { %2190 = vrcp.f32 (!%p1858_p8), %v1258_v32 }
 0x347   : > { %2192 = vrcp.f32 (!%p1858_p8), %v1257_v35  ;;  %v1233_v17 = vld [vmem:[#allocation4] sm:$0xff] (!%p1858_p8) }
 0x348   : > { %v2175_v33 = vpop.eup (!%p1858_p8), %2174  ;;  %2194 = vrcp.f32 (!%p1858_p8), %v1260_v55 }
 0x349   : > { %v2177_v54 = vpop.eup (!%p1858_p8), %2176  ;;  %1293 = vperm.xlu1 (!%p1858_p8), %2173, %v2175_v33   ;;  %2196 = vrcp.f32 (!%p1858_p8), %v1259_v16 }
 0x34a   : > { %v2179_v2 = vpop.eup (!%p1858_p8), %2178  ;;  %1283 = vperm.xlu0 (!%p1858_p8), %2172, %v2177_v54  }
 0x34b   : > { %v2181_v6 = vpop.eup (!%p1858_p8), %2180 }
 0x34c   : > { %v2028_v31 = vpop.f32.mrb[4].mxu1  ;;  %v2183_v21 = vpop.eup (!%p1858_p8), %2182 }
 0x34d   : > { %v1187_v0 = vadd.f32 %v2028_v31, %v1002_v57  ;;  %v1134_v61 = vpop.f32.mrb[5].mxu1  ;;  %1298 = vperm.xlu1 (!%p1858_p8), %2173, %v2179_v2   ;;  %v2185_v57 = vpop.eup (!%p1858_p8), %2184 }
 0x34e   : > { %v1185_v9 = vadd.f32 %v1134_v61, %v1000_v42  ;;  %v2029_v13 = vpop.f32.mrb[6].mxu1  ;;  %1288 = vperm.xlu0 (!%p1858_p8), %2172, %v2181_v6   ;;  %v1262_v42 = vld [vmem:[#allocation3 + $0x68] sm:$0xff] (!%p1858_p8)  ;;  %v2187_v31 = vpop.eup (!%p1858_p8), %2186  ;;  %v1264_v61 = vld [vmem:[#allocation3 + $0x78] sm:$0xff] (!%p1858_p8) }
 0x34f   : > { %1203 = vst [vmem:[#allocation4 + $0x30] sm:$0xff] %v1187_v0  ;;  %v1188_v11 = vadd.f32 %v2029_v13, %v1003_v27  ;;  %v1137_v7 = vpop.f32.mrb[7].mxu1  ;;  %v1261_v27 = vld [vmem:[#allocation3 + $0x60] sm:$0xff] (!%p1858_p8)  ;;  %v2189_v0 = vpop.eup (!%p1858_p8), %2188  ;;  %2198 = vrcp.f32 (!%p1858_p8), %v1262_v42 }
 0x350   : > { %1201 = vst [vmem:[#allocation4 + $0x20] sm:$0xff] %v1185_v9  ;;  %v1186_v10 = vadd.f32 %v1137_v7, %v1001_v22  ;;  %2200 = vrcp.f32 (!%p1858_p8), %v1261_v27  ;;  %v2191_v22 = vpop.eup (!%p1858_p8), %2190  ;;  %v1263_v9 = vld [vmem:[#allocation3 + $0x70] sm:$0xff] (!%p1858_p8) }
 0x351   : > { %1204 = vst [vmem:[#allocation4 + $0x38] sm:$0xff] %v1188_v11  ;;  %1308 = vperm.xlu1 (!%p1858_p8), %2173, %v2183_v21   ;;  %v2193_v13 = vpop.eup (!%p1858_p8), %2192  ;;  %2202 = vrcp.f32 (!%p1858_p8), %v1264_v61 }
 0x352   : > { %1202 = vst [vmem:[#allocation4 + $0x28] sm:$0xff] %v1186_v10  ;;  %1303 = vperm.xlu0 (!%p1858_p8), %2172, %v2185_v57   ;;  %2204 = vrcp.f32 (!%p1858_p8), %v1263_v9  ;;  %v2195_v11 = vpop.eup (!%p1858_p8), %2194 }
 0x353   : > { %v2197_v7 = vpop.eup (!%p1858_p8), %2196 }
 0x354   : > { %v2032_v49 = vpop.f32.mrb[8].mxu1 }
 0x355   : > { %v1191_v60 = vadd.f32 %v2032_v49, %v1006_v24  ;;  %v1150_v15 = vpop.f32.mrb[9].mxu1  ;;  %1318 = vperm.xlu1 (!%p1858_p8), %2173, %v2187_v31  }
 0x356   : > { %v1189_v5 = vadd.f32 %v1150_v15, %v1004_v41  ;;  %v2033_v62 = vpop.f32.mrb[10].mxu1  ;;  %1313 = vperm.xlu0 (!%p1858_p8), %2172, %v2189_v0   ;;  %v1235_v41 = vld [vmem:[#allocation4 + $0x10] sm:$0xff] (!%p1858_p8) }
 0x357   : > { %1207 = vst [vmem:[#allocation4 + $0x50] sm:$0xff] %v1191_v60  ;;  %v1192_v29 = vadd.f32 %v2033_v62, %v1007_v44  ;;  %v1153_v63 = vpop.f32.mrb[11].mxu1  ;;  %v1234_v60 = vld [vmem:[#allocation4 + $0x8] sm:$0xff] (!%p1858_p8)  ;;  %v1239_v48 = vld [vmem:[#allocation4 + $0x30] sm:$0xff] (!%p1858_p8) }
 0x358   : > { %1205 = vst [vmem:[#allocation4 + $0x40] sm:$0xff] %v1189_v5  ;;  %v1190_v39 = vadd.f32 %v1153_v63, %v1005_v59  ;;  %v1237_v63 = vld [vmem:[#allocation4 + $0x20] sm:$0xff] (!%p1858_p8) }
 0x359   : > { %1208 = vst [vmem:[#allocation4 + $0x58] sm:$0xff] %v1192_v29  ;;  %1328 = vperm.xlu1 (!%p1858_p8), %2173, %v2191_v22   ;;  %v2199_v53 = vpop.eup (!%p1858_p8), %2198  ;;  %v1236_v29 = vld [vmem:[#allocation4 + $0x18] sm:$0xff] (!%p1858_p8)  ;;  %v1238_v47 = vld [vmem:[#allocation4 + $0x28] sm:$0xff] (!%p1858_p8) }
 0x35a   : > { %1206 = vst [vmem:[#allocation4 + $0x48] sm:$0xff] %v1190_v39  ;;  %1323 = vperm.xlu0 (!%p1858_p8), %2172, %v2193_v13   ;;  %v2201_v10 = vpop.eup (!%p1858_p8), %2200 }
 0x35b   : > { %v2203_v58 = vpop.eup (!%p1858_p8), %2202 }
 0x35c   : > { %v2036_v37 = vpop.f32.mrb[12].mxu1  ;;  %1232 = sbr.rel (%p1858_p8) target bundleno = 1326 (0x52e), region = 48  ;;  %v2205_v43 = vpop.eup (!%p1858_p8), %2204 }
 0x35d   : > { %v1195_v12 = vadd.f32 %v2036_v37, %v1010_v46  ;;  %v1166_v34 = vpop.f32.mrb[13].mxu1  ;;  %1338 = vperm.xlu1 (!%p1858_p8), %2173, %v2195_v11  }
 0x35e   : > { %v1193_v14 = vadd.f32 %v1166_v34, %v1008_v18  ;;  %v2037_v23 = vpop.f32.mrb[14].mxu1  ;;  %1333 = vperm.xlu0 (!%p1858_p8), %2172, %v2197_v7  }
 0x35f   : > { %1211 = vst [vmem:[#allocation4 + $0x70] sm:$0xff] %v1195_v12  ;;  %v1196_v52 = vadd.f32 %v2037_v23, %v1011_v25  ;;  %v1169_v19 = vpop.f32.mrb[15].mxu1  ;;  %v1240_v25 = vld [vmem:[#allocation4 + $0x38] sm:$0xff] (!%p1858_p8)  ;;  %v1241_v12 = vld [vmem:[#allocation4 + $0x40] sm:$0xff] (!%p1858_p8) }
 0x360   : > { %1209 = vst [vmem:[#allocation4 + $0x60] sm:$0xff] %v1193_v14  ;;  %v1194_v26 = vadd.f32 %v1169_v19, %v1009_v40  ;;  %v1243_v19 = vld [vmem:[#allocation4 + $0x50] sm:$0xff] (!%p1858_p8)  ;;  %v1244_v20 = vld [vmem:[#allocation4 + $0x58] sm:$0xff] (!%p1858_p8) }
 0x361   : > { %1212 = vst [vmem:[#allocation4 + $0x78] sm:$0xff] %v1196_v52  ;;  %1348 = vperm.xlu1 (!%p1858_p8), %2173, %v2199_v53   ;;  %v1242_v52 = vld [vmem:[#allocation4 + $0x48] sm:$0xff] (!%p1858_p8) }
 0x362   : > { %1210 = vst [vmem:[#allocation4 + $0x68] sm:$0xff] %v1194_v26  ;;  %1343 = vperm.xlu0 (!%p1858_p8), %2172, %v2201_v10  }
 0x365   : > { %1358 = vperm.xlu1 %2173, %v2203_v58  }
 0x366   : > { %1353 = vperm.xlu0 %2172, %v2205_v43   ;;  %v1247_v54 = vld [vmem:[#allocation4 + $0x70] sm:$0xff] }
 0x367   : > { %v1245_v51 = vld [vmem:[#allocation4 + $0x60] sm:$0xff] }
 0x368   : > { %v1248_v55 = vld [vmem:[#allocation4 + $0x78] sm:$0xff] }
 0x369   : > { %v1246_v33 = vld [vmem:[#allocation4 + $0x68] sm:$0xff] }
 0x3c8   : > { %v1294_v24 = vpop.permute.xlu1 %1293 }
 0x3c9   : > { %v1284_v49 = vpop.permute.xlu0 %1283  ;;  %v2766_v15 = vmul.f32 %v1294_v24, %v1235_v41 }
 0x3ca   : > { %v1361_v44 = vmul.f32 %v1284_v49, %v1233_v17 }
 0x3cc   : > { %1377 = vadd.xlane.f32.xlu0 %v1361_v44  ;;  %v1299_v59 = vpop.permute.xlu1 %1298 }
 0x3cd   : > { %v1289_v5 = vpop.permute.xlu0 %1288  ;;  %v2769_v39 = vmul.f32 %v1299_v59, %v1236_v29 }
 0x3ce   : > { %v1362_v62 = vmul.f32 %v1289_v5, %v1234_v60 }
 0x3d0   : > { %1379 = vadd.xlane.f32.xlu1 %v1362_v62  ;;  %1381 = vadd.xlane.f32.xlu0 %v2766_v15  ;;  %v1309_v1 = vpop.permute.xlu1 %1308 }
 0x3d1   : > { %v1304_v28 = vpop.permute.xlu0 %1303  ;;  %v2775_v18 = vmul.f32 %v1309_v1, %v1238_v47 }
 0x3d2   : > { %v2771_v3 = vmul.f32 %v1304_v28, %v1237_v63 }
 0x3d4   : > { %1385 = vadd.xlane.f32.xlu1 %v2771_v3  ;;  %1383 = vadd.xlane.f32.xlu0 %v2769_v39  ;;  %v1319_v36 = vpop.permute.xlu1 %1318 }
 0x3d5   : > { %v1314_v46 = vpop.permute.xlu0 %1313  ;;  %v2781_v14 = vmul.f32 %v1319_v36, %v1240_v25 }
 0x3d6   : > { %v2777_v37 = vmul.f32 %v1314_v46, %v1239_v48 }
 0x3d8   : > { %1389 = vadd.xlane.f32.xlu1 %v2777_v37  ;;  %1387 = vadd.xlane.f32.xlu0 %v2775_v18  ;;  %v1329_v34 = vpop.permute.xlu1 %1328 }
 0x3d9   : > { %v1324_v40 = vpop.permute.xlu0 %1323  ;;  %v2787_v30 = vmul.f32 %v1329_v34, %v1242_v52 }
 0x3da   : > { %v2783_v23 = vmul.f32 %v1324_v40, %v1241_v12 }
 0x3dc   : > { %1393 = vadd.xlane.f32.xlu1 %v2783_v23  ;;  %1391 = vadd.xlane.f32.xlu0 %v2781_v14  ;;  %v1339_v26 = vpop.permute.xlu1 %1338 }
 0x3dd   : > { %v1334_v56 = vpop.permute.xlu0 %1333  ;;  %v2793_v50 = vmul.f32 %v1339_v26, %v1244_v20 }
 0x3de   : > { %v2789_v4 = vmul.f32 %v1334_v56, %v1243_v19 }
 0x3e0   : > { %1397 = vadd.xlane.f32.xlu1 %v2789_v4  ;;  %1395 = vadd.xlane.f32.xlu0 %v2787_v30  ;;  %v1349_v45 = vpop.permute.xlu1 %1348 }
 0x3e1   : > { %v1344_v38 = vpop.permute.xlu0 %1343  ;;  %v2799_v2 = vmul.f32 %v1349_v45, %v1246_v33 }
 0x3e2   : > { %v2795_v8 = vmul.f32 %v1344_v38, %v1245_v51 }
 0x3e4   : > { %1401 = vadd.xlane.f32.xlu1 %v2795_v8  ;;  %1399 = vadd.xlane.f32.xlu0 %v2793_v50  ;;  %v1359_v6 = vpop.permute.xlu1 %1358 }
 0x3e5   : > { %v1354_v32 = vpop.permute.xlu0 %1353  ;;  %v2805_v21 = vmul.f32 %v1359_v6, %v1248_v55 }
 0x3e6   : > { %v2801_v35 = vmul.f32 %v1354_v32, %v1247_v54 }
 0x3e8   : > { %1405 = vadd.xlane.f32.xlu1 %v2801_v35  ;;  %1403 = vadd.xlane.f32.xlu0 %v2799_v2 }
 0x3ec   : > { %1407 = vadd.xlane.f32.xlu0 %v2805_v21 }
 0x459   : > { %v1378_v16 = vpop.xlane.xlu0 %1377 }
 0x45a   : > { %v1410_v57 = vmul.f32 0.0078125, %v1378_v16 }
 0x45c   : > { %v2808_v42 = vsub.f32 %v1361_v44, %v1410_v57 }
 0x45d   : > { %v1380_v31 = vpop.xlane.xlu1 %1379  ;;  %v1382_v27 = vpop.xlane.xlu0 %1381 }
 0x45e   : > { %v1411_v0 = vmul.f32 0.0078125, %v1380_v31  ;;  %v1412_v61 = vmul.f32 0.0078125, %v1382_v27  ;;  %v1442_v22 = vmul.f32 %v2808_v42, %v2808_v42 }
 0x460   : > { %v2812_v9 = vsub.f32 %v1362_v62, %v1411_v0  ;;  %v2815_v13 = vsub.f32 %v2766_v15, %v1412_v61  ;;  %1458 = vadd.xlane.f32.xlu1 %v1442_v22 }
 0x461   : > { %v1386_v11 = vpop.xlane.xlu1 %1385  ;;  %v1384_v7 = vpop.xlane.xlu0 %1383 }
 0x462   : > { %v1414_v53 = vmul.f32 0.0078125, %v1386_v11  ;;  %v1413_v10 = vmul.f32 0.0078125, %v1384_v7  ;;  %v1443_v58 = vmul.f32 %v2812_v9, %v2812_v9  ;;  %v1444_v43 = vmul.f32 %v2815_v13, %v2815_v13 }
 0x464   : > { %v2822_v17 = vsub.f32 %v2771_v3, %v1414_v53  ;;  %v2825_v24 = vsub.f32 %v2769_v39, %v1413_v10  ;;  %1460 = vadd.xlane.f32.xlu0 %v1443_v58  ;;  %1462 = vadd.xlane.f32.xlu1 %v1444_v43 }
 0x465   : > { %v1390_v41 = vpop.xlane.xlu1 %1389  ;;  %v1388_v49 = vpop.xlane.xlu0 %1387 }
 0x466   : > { %v1416_v44 = vmul.f32 0.0078125, %v1390_v41  ;;  %v1415_v60 = vmul.f32 0.0078125, %v1388_v49  ;;  %v1446_v15 = vmul.f32 %v2822_v17, %v2822_v17  ;;  %v1445_v59 = vmul.f32 %v2825_v24, %v2825_v24 }
 0x468   : > { %v2832_v5 = vsub.f32 %v2777_v37, %v1416_v44  ;;  %v2835_v62 = vsub.f32 %v2775_v18, %v1415_v60  ;;  %1466 = vadd.xlane.f32.xlu1 %v1446_v15  ;;  %1464 = vadd.xlane.f32.xlu0 %v1445_v59 }
 0x469   : > { %v1394_v29 = vpop.xlane.xlu1 %1393  ;;  %v1392_v63 = vpop.xlane.xlu0 %1391 }
 0x46a   : > { %v1418_v1 = vmul.f32 0.0078125, %v1394_v29  ;;  %v1417_v28 = vmul.f32 0.0078125, %v1392_v63  ;;  %v1448_v39 = vmul.f32 %v2832_v5, %v2832_v5  ;;  %v1447_v3 = vmul.f32 %v2835_v62, %v2835_v62  ;;  %v2889_v63 = vld [vmem:[%s2973_s3] ss:$0 sm:$0xff] }
 0x46c   : > { %v2842_v47 = vsub.f32 %v2783_v23, %v1418_v1  ;;  %v2845_v48 = vsub.f32 %v2781_v14, %v1417_v28  ;;  %1470 = vadd.xlane.f32.xlu1 %v1448_v39  ;;  %1468 = vadd.xlane.f32.xlu0 %v1447_v3 }
 0x46d   : > { %v1398_v36 = vpop.xlane.xlu1 %1397  ;;  %v1396_v46 = vpop.xlane.xlu0 %1395 }
 0x46e   : > { %v1420_v18 = vmul.f32 0.0078125, %v1398_v36  ;;  %v1419_v37 = vmul.f32 0.0078125, %v1396_v46  ;;  %v1450_v25 = vmul.f32 %v2842_v47, %v2842_v47  ;;  %v1449_v12 = vmul.f32 %v2845_v48, %v2845_v48  ;;  %v2895_v46 = vld [vmem:[%s2974_s4] ss:$0 sm:$0xff] }
 0x470   : > { %v2852_v34 = vsub.f32 %v2789_v4, %v1420_v18  ;;  %v2855_v40 = vsub.f32 %v2787_v30, %v1419_v37  ;;  %1474 = vadd.xlane.f32.xlu1 %v1450_v25  ;;  %1472 = vadd.xlane.f32.xlu0 %v1449_v12 }
 0x471   : > { %v1402_v14 = vpop.xlane.xlu1 %1401  ;;  %v1400_v23 = vpop.xlane.xlu0 %1399 }
 0x472   : > { %v1422_v52 = vmul.f32 0.0078125, %v1402_v14  ;;  %v1421_v19 = vmul.f32 0.0078125, %v1400_v23  ;;  %v1452_v26 = vmul.f32 %v2852_v34, %v2852_v34  ;;  %v1451_v56 = vmul.f32 %v2855_v40, %v2855_v40 }
 0x474   : > { %v2862_v20 = vsub.f32 %v2795_v8, %v1422_v52  ;;  %v2865_v4 = vsub.f32 %v2793_v50, %v1421_v19  ;;  %1478 = vadd.xlane.f32.xlu1 %v1452_v26  ;;  %1476 = vadd.xlane.f32.xlu0 %v1451_v56 }
 0x475   : > { %v1406_v30 = vpop.xlane.xlu1 %1405  ;;  %v1404_v51 = vpop.xlane.xlu0 %1403 }
 0x476   : > { %v1424_v45 = vmul.f32 0.0078125, %v1406_v30  ;;  %v1423_v38 = vmul.f32 0.0078125, %v1404_v51  ;;  %v1454_v33 = vmul.f32 %v2862_v20, %v2862_v20  ;;  %v1453_v54 = vmul.f32 %v2865_v4, %v2865_v4 }
 0x478   : > { %v2872_v32 = vsub.f32 %v2801_v35, %v1424_v45  ;;  %v2875_v8 = vsub.f32 %v2799_v2, %v1423_v38  ;;  %1482 = vadd.xlane.f32.xlu1 %v1454_v33  ;;  %1480 = vadd.xlane.f32.xlu0 %v1453_v54 }
 0x479   : > { %v1408_v50 = vpop.xlane.xlu0 %1407 }
 0x47a   : > { %v1425_v6 = vmul.f32 0.0078125, %v1408_v50  ;;  %v1456_v55 = vmul.f32 %v2872_v32, %v2872_v32  ;;  %v1455_v16 = vmul.f32 %v2875_v8, %v2875_v8 }
 0x47c   : > { %v2882_v57 = vsub.f32 %v2805_v21, %v1425_v6  ;;  %1486 = vadd.xlane.f32.xlu1 %v1456_v55  ;;  %1484 = vadd.xlane.f32.xlu0 %v1455_v16 }
 0x47e   : > { %v1457_v35 = vmul.f32 %v2882_v57, %v2882_v57 }
 0x480   : > { %1488 = vadd.xlane.f32.xlu0 %v1457_v35 }
 0x4ed   : > { %v1459_v2 = vpop.xlane.xlu1 %1458 }
 0x4ee   : > { %v1490_v31 = vmul.f32 0.0078125, %v1459_v2 }
 0x4f0   : > { %v1506_v27 = vadd.f32 1e-05, %v1490_v31 }
 0x4f1   : > { %v1463_v0 = vpop.xlane.xlu1 %1462  ;;  %v1461_v61 = vpop.xlane.xlu0 %1460 }
 0x4f2   : > { %2206 = vrsqrt.f32 %v1506_v27  ;;  %v1492_v22 = vmul.f32 0.0078125, %v1463_v0  ;;  %v1491_v11 = vmul.f32 0.0078125, %v1461_v61 }
 0x4f4   : > { %v1508_v7 = vadd.f32 1e-05, %v1492_v22  ;;  %v1507_v53 = vadd.f32 1e-05, %v1491_v11 }
 0x4f5   : > { %v1467_v10 = vpop.xlane.xlu1 %1466  ;;  %v1465_v58 = vpop.xlane.xlu0 %1464 }
 0x4f6   : > { %2208 = vrsqrt.f32 %v1508_v7  ;;  %v1494_v21 = vmul.f32 0.0078125, %v1467_v10  ;;  %v1493_v43 = vmul.f32 0.0078125, %v1465_v58 }
 0x4f7   : > { %2210 = vrsqrt.f32 %v1507_v53 }
 0x4f8   : > { %v1510_v41 = vadd.f32 1e-05, %v1494_v21  ;;  %v1509_v49 = vadd.f32 1e-05, %v1493_v43 }
 0x4f9   : > { %v1471_v44 = vpop.xlane.xlu1 %1470  ;;  %v1469_v60 = vpop.xlane.xlu0 %1468 }
 0x4fa   : > { %2212 = vrsqrt.f32 %v1510_v41  ;;  %v1496_v15 = vmul.f32 0.0078125, %v1471_v44  ;;  %v1495_v59 = vmul.f32 0.0078125, %v1469_v60 }
 0x4fb   : > { %2214 = vrsqrt.f32 %v1509_v49 }
 0x4fc   : > { %v2207_v29 = vpop.eup %2206  ;;  %v1512_v1 = vadd.f32 1e-05, %v1496_v15  ;;  %v1511_v28 = vadd.f32 1e-05, %v1495_v59 }
 0x4fd   : > { %v1538_v39 = vmul.f32 %v2207_v29, %v2808_v42  ;;  %v1475_v3 = vpop.xlane.xlu1 %1474  ;;  %v1473_v36 = vpop.xlane.xlu0 %1472 }
 0x4fe   : > { %2216 = vrsqrt.f32 %v1512_v1  ;;  %v1498_v18 = vmul.f32 0.0078125, %v1475_v3  ;;  %v1497_v37 = vmul.f32 0.0078125, %v1473_v36 }
 0x4ff   : > { %v1561_v25 = vmul.f32 %v2889_v63, %v1538_v39  ;;  %2218 = vrsqrt.f32 %v1511_v28 }
 0x500   : > { %v2209_v12 = vpop.eup %2208  ;;  %v1514_v14 = vadd.f32 1e-05, %v1498_v18  ;;  %v1513_v23 = vadd.f32 1e-05, %v1497_v37 }
 0x501   : > { %v2211_v52 = vpop.eup %2210  ;;  %v1584_v19 = vadd.f32 %v2895_v46, %v1561_v25  ;;  %v1540_v42 = vmul.f32 %v2209_v12, %v2815_v13  ;;  %v1479_v26 = vpop.xlane.xlu1 %1478 }
 0x502   : > { %v1477_v56 = vpop.xlane.xlu0 %1476  ;;  %v1539_v30 = vmul.f32 %v2211_v52, %v2812_v9  ;;  %2220 = vrsqrt.f32 %v1514_v14  ;;  %v1500_v51 = vmul.f32 0.0078125, %v1479_v26 }
 0x503   : > { %v1499_v45 = vmul.f32 0.0078125, %v1477_v56  ;;  %v1616_v38 = vmul.f32 0.01, %v1584_v19  ;;  %v1563_v33 = vmul.f32 %v2889_v63, %v1540_v42  ;;  %2222 = vrsqrt.f32 %v1513_v23 }
 0x504   : > { %v2213_v54 = vpop.eup %2212  ;;  %vm1600_vm2 = vcmp.gt.f32.partialorder %v1584_v19, 0.0  ;;  %v1562_v50 = vmul.f32 %v2889_v63, %v1539_v30  ;;  %v1516_v6 = vadd.f32 1e-05, %v1500_v51 }
 0x505   : > { %v1515_v55 = vadd.f32 1e-05, %v1499_v45  ;;  %v2215_v16 = vpop.eup %2214  ;;  %v1586_v13 = vadd.f32 %v2895_v46, %v1563_v33  ;;  %v1542_v35 = vmul.f32 %v2213_v54, %v2822_v17  ;;  %v1483_v2 = vpop.xlane.xlu1 %1482  ;;  %v1632_v61 = vsel %vm1600_vm2, %v1584_v19, %v1616_v38 }
 0x506   : > { %v1585_v9 = vadd.f32 %v2895_v46, %v1562_v50  ;;  %v1541_v31 = vmul.f32 %v2215_v16, %v2825_v24  ;;  %2224 = vrsqrt.f32 %v1516_v6  ;;  %v1502_v27 = vmul.f32 0.0078125, %v1483_v2  ;;  %v1481_v0 = vpop.xlane.xlu0 %1480 }
 0x507   : > { %vm1602_vm3 = vcmp.gt.f32.partialorder %v1586_v13, 0.0  ;;  %v1565_v22 = vmul.f32 %v2889_v63, %v1542_v35  ;;  %2226 = vrsqrt.f32 %v1515_v55  ;;  %v1618_v58 = vmul.f32 0.01, %v1586_v13 }
 0x508   : > { %v2217_v11 = vpop.eup %2216  ;;  %vm1601_vm4 = vcmp.gt.f32.partialorder %v1585_v9, 0.0  ;;  %v1617_v7 = vmul.f32 0.01, %v1585_v9  ;;  %v1564_v53 = vmul.f32 %v2889_v63, %v1541_v31  ;;  %v1518_v10 = vadd.f32 1e-05, %v1502_v27 }
 0x509   : > { %v2219_v17 = vpop.eup %2218  ;;  %v1588_v21 = vadd.f32 %v2895_v46, %v1565_v22  ;;  %v1544_v24 = vmul.f32 %v2217_v11, %v2832_v5  ;;  %v1501_v43 = vmul.f32 0.0078125, %v1481_v0  ;;  %v1487_v60 = vpop.xlane.xlu1 %1486  ;;  %v1634_v18 = vsel %vm1602_vm3, %v1586_v13, %v1618_v58 }
 0x50a   : > { %v1633_v41 = vsel %vm1601_vm4, %v1585_v9, %v1617_v7  ;;  %v1587_v49 = vadd.f32 %v2895_v46, %v1564_v53  ;;  %v1543_v44 = vmul.f32 %v2219_v17, %v2835_v62  ;;  %2228 = vrsqrt.f32 %v1518_v10  ;;  %v1485_v3 = vpop.xlane.xlu0 %1484 }
 0x50b   : > { %v1898_v15 = vpack.c.bf16 %v1633_v41, %v1632_v61  ;;  %vm1604_vm5 = vcmp.gt.f32.partialorder %v1588_v21, 0.0  ;;  %v1620_v59 = vmul.f32 0.01, %v1588_v21  ;;  %v1567_v29 = vmul.f32 %v2889_v63, %v1544_v24 }
 0x50c   : > { %v2221_v1 = vpop.eup %2220  ;;  %vm1603_vm6 = vcmp.gt.f32.partialorder %v1587_v49, 0.0  ;;  %v1619_v28 = vmul.f32 0.01, %v1587_v49  ;;  %v1566_v39 = vmul.f32 %v2889_v63, %v1543_v44  ;;  %v1517_v5 = vadd.f32 1e-05, %v1501_v43 }
 0x50d   : > { %v2223_v36 = vpop.eup %2222  ;;  %1899 = vst [vmem:[%s2363_s15] sm:$0xff] %v1898_v15   ;;  %v1590_v62 = vadd.f32 %v2895_v46, %v1567_v29  ;;  %v1546_v37 = vmul.f32 %v2221_v1, %v2842_v47  ;;  %v1504_v25 = vmul.f32 0.0078125, %v1487_v60  ;;  %v1636_v52 = vsel %vm1604_vm5, %v1588_v21, %v1620_v59 }
 0x50e   : > { %v1635_v12 = vsel %vm1603_vm6, %v1587_v49, %v1619_v28  ;;  %v1589_v14 = vadd.f32 %v2895_v46, %v1566_v39  ;;  %v1545_v23 = vmul.f32 %v2223_v36, %v2845_v48  ;;  %2230 = vrsqrt.f32 %v1517_v5  ;;  %v1489_v55 = vpop.xlane.xlu0 %1488 }
 0x50f   : > { %v1903_v19 = vpack.c.bf16 %v1635_v12, %v1634_v18  ;;  %vm1606_vm7 = vcmp.gt.f32.partialorder %v1590_v62, 0.0  ;;  %v1569_v42 = vmul.f32 %v2889_v63, %v1546_v37  ;;  %v1520_v47 = vadd.f32 1e-05, %v1504_v25 }
 0x510   : > { %v2225_v26 = vpop.eup %2224  ;;  %vm1605_vm8 = vcmp.gt.f32.partialorder %v1589_v14, 0.0  ;;  %v1621_v56 = vmul.f32 0.01, %v1589_v14  ;;  %v1568_v30 = vmul.f32 %v2889_v63, %v1545_v23  ;;  %v1622_v45 = vmul.f32 0.01, %v1590_v62 }
 0x511   : > { %v2227_v51 = vpop.eup %2226  ;;  %1935 = vst [vmem:[%s2363_s15 + $0x8] sm:$0xff] %v1903_v19   ;;  %v1592_v38 = vadd.f32 %v2895_v46, %v1569_v42  ;;  %v1548_v48 = vmul.f32 %v2225_v26, %v2852_v34  ;;  %v1503_v33 = vmul.f32 0.0078125, %v1485_v3  ;;  %2232 = vrsqrt.f32 %v1520_v47 }
 0x512   : > { %v1637_v54 = vsel %vm1605_vm8, %v1589_v14, %v1621_v56  ;;  %v1591_v50 = vadd.f32 %v2895_v46, %v1568_v30  ;;  %v1547_v6 = vmul.f32 %v2227_v51, %v2855_v40  ;;  %v1638_v34 = vsel %vm1606_vm7, %v1590_v62, %v1622_v45 }
 0x513   : > { %v1908_v16 = vpack.c.bf16 %v1637_v54, %v1636_v52  ;;  %v1571_v13 = vmul.f32 %v2889_v63, %v1548_v48  ;;  %v1519_v31 = vadd.f32 1e-05, %v1503_v33  ;;  %v1505_v27 = vmul.f32 0.0078125, %v1489_v55 }
 0x514   : > { %v2229_v35 = vpop.eup %2228  ;;  %vm1607_vm9 = vcmp.gt.f32.partialorder %v1591_v50, 0.0  ;;  %v1623_v2 = vmul.f32 0.01, %v1591_v50  ;;  %v1570_v9 = vmul.f32 %v2889_v63, %v1547_v6  ;;  %v1624_v0 = vmul.f32 0.01, %v1592_v38 }
 0x515   : > { %1936 = vst [vmem:[%s2363_s15 + $0x10] sm:$0xff] %v1908_v16   ;;  %2234 = vrsqrt.f32 %v1519_v31  ;;  %vm1608_vm10 = vcmp.gt.f32.partialorder %v1592_v38, 0.0  ;;  %v1594_v7 = vadd.f32 %v2895_v46, %v1571_v13  ;;  %v1521_v10 = vadd.f32 1e-05, %v1505_v27 }
 0x516   : > { %v1639_v61 = vsel %vm1607_vm9, %v1591_v50, %v1623_v2  ;;  %v1593_v40 = vadd.f32 %v2895_v46, %v1570_v9  ;;  %v1550_v17 = vmul.f32 %v2229_v35, %v2862_v20  ;;  %v1640_v21 = vsel %vm1608_vm10, %v1592_v38, %v1624_v0 }
 0x517   : > { %v1913_v22 = vpack.c.bf16 %v1639_v61, %v1638_v34  ;;  %2236 = vrsqrt.f32 %v1521_v10  ;;  %v1626_v44 = vmul.f32 0.01, %v1594_v7  ;;  %vm1610_vm12 = vcmp.gt.f32.partialorder %v1594_v7, 0.0 }
 0x518   : > { %v2231_v11 = vpop.eup %2230  ;;  %vm1609_vm11 = vcmp.gt.f32.partialorder %v1593_v40, 0.0  ;;  %v1625_v53 = vmul.f32 0.01, %v1593_v40  ;;  %v1573_v60 = vmul.f32 %v2889_v63, %v1550_v17 }
 0x519   : > { %1937 = vst [vmem:[%s2363_s15 + $0x18] sm:$0xff] %v1913_v22   ;;  %v1549_v58 = vmul.f32 %v2231_v11, %v2865_v4  ;;  %v1642_v29 = vsel %vm1610_vm12, %v1594_v7, %v1626_v44 }
 0x51a   : > { %v1641_v24 = vsel %vm1609_vm11, %v1593_v40, %v1625_v53  ;;  %v1596_v1 = vadd.f32 %v2895_v46, %v1573_v60 }
 0x51b   : > { %v1918_v43 = vpack.c.bf16 %v1641_v24, %v1640_v21  ;;  %v1572_v41 = vmul.f32 %v2889_v63, %v1549_v58  ;;  %v2233_v49 = vpop.eup %2232 }
 0x51c   : > { %v1552_v59 = vmul.f32 %v2233_v49, %v2872_v32  ;;  %v1628_v62 = vmul.f32 0.01, %v1596_v1  ;;  %vm1612_vm14 = vcmp.gt.f32.partialorder %v1596_v1, 0.0 }
 0x51d   : > { %1938 = vst [vmem:[%s2363_s15 + $0x20] sm:$0xff] %v1918_v43   ;;  %v1595_v15 = vadd.f32 %v2895_v46, %v1572_v41 }
 0x51e   : > { %v1575_v39 = vmul.f32 %v2889_v63, %v1552_v59 }
 0x51f   : > { %vm1611_vm13 = vcmp.gt.f32.partialorder %v1595_v15, 0.0  ;;  %v1627_v20 = vmul.f32 0.01, %v1595_v15  ;;  %v2235_v4 = vpop.eup %2234 }
 0x520   : > { %v1551_v5 = vmul.f32 %v2235_v4, %v2875_v8  ;;  %v1598_v32 = vadd.f32 %v2895_v46, %v1575_v39  ;;  %v1644_v8 = vsel %vm1612_vm14, %v1596_v1, %v1628_v62 }
 0x521   : > { %v1643_v28 = vsel %vm1611_vm13, %v1595_v15, %v1627_v20  ;;  %v2237_v18 = vpop.eup %2236 }
 0x522   : > { %v1923_v3 = vpack.c.bf16 %v1643_v28, %v1642_v29  ;;  %v1574_v36 = vmul.f32 %v2889_v63, %v1551_v5  ;;  %v1553_v25 = vmul.f32 %v2237_v18, %v2882_v57  ;;  %v1630_v23 = vmul.f32 0.01, %v1598_v32 }
 0x523   : > { %vm1614_vm0 = vcmp.gt.f32.partialorder %v1598_v32, 0.0 }
 0x524   : > { %1939 = vst [vmem:[%s2363_s15 + $0x28] sm:$0xff] %v1923_v3   ;;  %v1597_v37 = vadd.f32 %v2895_v46, %v1574_v36  ;;  %v1576_v14 = vmul.f32 %v2889_v63, %v1553_v25  ;;  %v1646_v56 = vsel %vm1614_vm0, %v1598_v32, %v1630_v23 }
 0x526   : > { %vm1613_vm15 = vcmp.gt.f32.partialorder %v1597_v37, 0.0  ;;  %v1629_v12 = vmul.f32 0.01, %v1597_v37  ;;  %v1599_v19 = vadd.f32 %v2895_v46, %v1576_v14 }
 0x528   : > { %v1645_v52 = vsel %vm1613_vm15, %v1597_v37, %v1629_v12  ;;  %vm1615_vm1 = vcmp.gt.f32.partialorder %v1599_v19, 0.0  ;;  %v1631_v26 = vmul.f32 0.01, %v1599_v19 }
 0x529   : > { %v1928_v42 = vpack.c.bf16 %v1645_v52, %v1644_v8 }
 0x52a   : > { %v1647_v30 = vsel %vm1615_vm1, %v1599_v19, %v1631_v26 }
 0x52b   : > { %1940 = vst [vmem:[%s2363_s15 + $0x30] sm:$0xff] %v1928_v42   ;;  %v1933_v47 = vpack.c.bf16 %v1647_v30, %v1646_v56 }
 0x52d   : > { %1941 = vst [vmem:[%s2363_s15 + $0x38] sm:$0xff] %v1933_v47  }
 0x52e PF: > { %s15_s22 = sadd.s32 1, %s2276_s22   ;;  %s2976_s18 = smov %s2268_s20 }
 0x52f   : > { %p12_p9 = scmp.ge.s32.totalorder %s15_s22, 6   ;;  %s2977_s19 = smov %s2272_s21 }
 0x530   : > { %s2978_s20 = smov %s2981_s23  ;;  %s2979_s21 = smov %s2985_s24 }
 0x531   :  { %14 = sbr.rel (!%p12_p9) target bundleno = 3 (0x3), region = 84 }

// kernel: word_sage_forward.5
= control target key start
LH: loop header
LB: loop body
LE: loop exit
PB: predicated region body
PF: predicated region fallthrough
CT: control target
= control target key end

     0   :  { %s2968_s0 = inlined_call_operand.vmem [shape: bf16[256,256], index: 0, kind: input, shape index: {}]   ;;  %s2969_s1 = inlined_call_operand.vmem [shape: bf16[256,128], index: 1, kind: input, shape index: {}, may-alias: {1,2}]   ;;  %s2970_s2 = inlined_call_operand.vmem [shape: bf16[256,128], index: 2, kind: input, shape index: {}, may-alias: {1,2}]   ;;  %s2971_s3 = inlined_call_operand.vmem [shape: bf16[128,128], index: 3, kind: input, shape index: {}]   ;;  %s2972_s4 = inlined_call_operand.vmem [shape: bf16[128,128], index: 4, kind: input, shape index: {}]   ;;  %s2973_s5 = inlined_call_operand.vmem [shape: f32[1,128], index: 5, kind: input, shape index: {}]   ;;  %s2974_s6 = inlined_call_operand.vmem [shape: bf16[128,128], index: 6, kind: input, shape index: {}]   ;;  %s2975_s7 = inlined_call_operand.vmem [shape: f32[1,128], index: 7, kind: input, shape index: {}]   ;;  %s2976_s8 = inlined_call_operand.vmem [shape: bf16[128,128], index: 8, kind: input, shape index: {}]   ;;  %s2977_s9 = inlined_call_operand.vmem [shape: f32[1,128], index: 9, kind: input, shape index: {}]   ;;  %s2978_s10 = inlined_call_operand.hbm [shape: f32[256,128], index: 10, kind: output, shape index: {0}]   ;;  %s2979_s11 = inlined_call_operand.vmem [shape: f32[256,128], index: 11, kind: output, shape index: {1}]  }
   0x1   :  { %2989 = sst [smem:[#allocation16_spill]] %s2968_s0 }
   0x2   :  { %2990 = sst [smem:[#allocation17_spill]] %s2975_s7 }
   0x3   :  { %2991 = sst [smem:[#allocation18_spill]] %s2977_s9 }
   0x4   :  { %2992 = sst [smem:[#allocation19_spill]] %s2978_s10 }
   0x5   :  { %17 = vsyncpa [#allocation5], 0 }
   0x6   :  { %19 = vsyncpa [#allocation5 + $0x1], 0  ;;  %s2574_s17 = smov 0   ;;  %s2576_s18 = smov 0  }
   0x7   :  { %s2578_s19 = smov 0   ;;  %s2580_s20 = smov 0  }
   0x8   :  { %s2582_s21 = smov 0   ;;  %s2584_s22 = smov 0  }
   0x9   :  { %s2586_s23 = smov 0   ;;  %s2588_s24 = smov 0  }
   0xa   :  { %s2590_s25 = smov 0   ;;  %s2592_s26 = smov 0  }
   0xb LB: > { %2993 = sst [smem:[#allocation7_spill]] %s2472_s17  ;;  %s1895_s27 = sadd.s32 4294967295, %s2508_s26   ;;  %s2508_s26 = sphi %s2592_s26, %s25_s26   ;;  %s2504_s25 = sphi %s2590_s25, %s3018_s25   ;;  %s2500_s24 = sphi %s2588_s24, %s3017_s24   ;;  %s2496_s23 = sphi %s2586_s23, %s3022_s23   ;;  %s2492_s22 = sphi %s2584_s22, %s3015_s22   ;;  %s2488_s21 = sphi %s2582_s21, %s3014_s21   ;;  %s2484_s20 = sphi %s2580_s20, %s3013_s20   ;;  %s2480_s19 = sphi %s2578_s19, %s3021_s19   ;;  %s2476_s18 = sphi %s2576_s18, %s3020_s18   ;;  %s2472_s17 = sphi %s2574_s17, %s3019_s17  }
   0xc   : > { %2994 = sst [smem:[#allocation8_spill]] %s2488_s21  ;;  %s1896_s28 = sadd.s32 4294967294, %s2508_s26  }
   0xd   : > { %2995 = sst [smem:[#allocation9_spill]] %s2500_s24  ;;  %s34_s29 = sadd.s32 1, %s2500_s24 }
   0xe   : > { %2996 = sst [smem:[#allocation10_spill]] %s2504_s25  ;;  %s37_s30 = sadd.s32 1, %s2504_s25 }
   0xf   : > { %p35_p0 = scmp.ge.s32.totalorder %s34_s29, 2  ;;  %s46_s12 = sadd.s32 1, %s2488_s21 }
  0x10   : > { %p53_p1 = scmp.ne.s32.totalorder %s2488_s21, %s2484_s20  ;;  %p54_p2 = scmp.eq.s32.totalorder %s2508_s26, 0 }
  0x11   : > { %s3024_s29 = smov (%p35_p0, %s34_s29), 0  ;;  %s3026_s30 = smov (!%p35_p0, %s37_s30), %s2504_s25 }
  0x12   : > { %2997 = sst [smem:[#allocation11_spill]] %s3024_s29  ;;  %s42_s13 = ssub.s32 %s2500_s24, %s3024_s29 }
  0x13   : > { %p2637_p3 = por %p54_p2, %p53_p1  ;;  %p39_p4 = scmp.ge.s32.totalorder %s3026_s30, 2 }
  0x14   : > { %s271_s15 = sadd.s32 1, %s2480_s19  ;;  %p281_p5 = scmp.ne.s32.totalorder %s2480_s19, %s2476_s18 }
  0x15   : > { %p282_p6 = scmp.eq.s32.totalorder %s1895_s27, 3  ;;  %s3028_s30 = smov (%p39_p4, %s3026_s30), 0 }
  0x16   : > { %2999 = sst [smem:[#allocation12_spill]] %s3028_s30  ;;  %p287_p8 = scmp.ne.s32.totalorder %s2476_s18, %s2472_s17 }
  0x17   : > { %p2646_p7 = por %p282_p6, %p281_p5  ;;  %s41_s10 = ssub.s32 %s2504_s25, %s3028_s30 }
  0x18   : > { %p288_p9 = scmp.eq.s32.totalorder %s1896_s28, 3  ;;  %s43_s29 = sor.u32 %s42_s13, %s41_s10 }
  0x19   : > { %p269_p10 = scmp.eq.s32.totalorder %s41_s10, 0  ;;  %p44_p11 = scmp.eq.s32.totalorder %s43_s29, 0 }
  0x1a   : > { %p2654_p12 = por %p288_p9, %p287_p8  ;;  %p1898_p13 = scmp.ge.s32.totalorder %s2508_s26, 4 }
  0x1b   : > { %s2659_s7 = scalar_select %p269_p10, %s2480_s19, %s271_s15  }
  0x1c   : > { %s3001_s9 = scalar_select %p2654_p12, 1, 0 }
  0x1d   : > { %3003 = sst [smem:[#allocation14_spill]] %s2659_s7  ;;  %351 = sbr.rel (%p1898_p13) target bundleno = 56 (0x38), region = 44 }
  0x1e   : > { %3002 = sst [smem:[#allocation13_spill]] %s3001_s9 }
  0x1f   : > { %s2662_s27 = scalar_select %p44_p11, %s2488_s21, %s46_s12  }
  0x21   : > { %3004 = sst [smem:[#allocation15_spill]] %s2662_s27 }
  0x24   : > { %354 = sbr.rel (!%p2637_p3) target bundleno = 56 (0x38), region = 48  ;;  %s356_s28 = sand.u32 (%p2637_p3), 1, %s2488_s21  }
  0x25   : > { %s1978_s10 = sshll.u32 (%p2637_p3), %s2504_s25, 5  ;;  %s1899_s29 = sshll.u32 (%p2637_p3), %s356_s28, 6 }
  0x26   : > { %s361_s13 = sadd.s32 (%p2637_p3), %s2500_s24, %s1978_s10  ;;  %s3005_s0 = sld [smem:[#allocation16_spill]] (%p2637_p3) }
  0x27   : > { %s1902_s30 = sshll.u32 (%p2637_p3), %s361_s13, 2  ;;  %s358_s12 = scalar_lea.vmem (%p2637_p3), [#allocation3], %s1899_s29 }
  0x2c   : > { %s2673_s15 = scalar_lea.vmem %s3005_s0, %s1902_s30 }
  0x2d   : > { %v379_v0 = vld [vmem:[%s2673_s15] sm:$0xf]  ;;  %v381_v1 = vld [vmem:[%s2673_s15 + $0x8] sm:$0xf]  ;;  %v383_v2 = vld [vmem:[%s2673_s15 + $0x10] sm:$0xf] }
  0x2e   : > { %380 = vst [vmem:[%s358_s12] sm:$0xf] %v379_v0  ;;  %382 = vst [vmem:[%s358_s12 + $0x4] sm:$0xf] %v381_v1  ;;  %v385_v3 = vld [vmem:[%s2673_s15 + $0x18] sm:$0xf] }
  0x2f   : > { %384 = vst [vmem:[%s358_s12 + $0x8] sm:$0xf] %v383_v2  ;;  %v387_v4 = vld [vmem:[%s2673_s15 + $0x20] sm:$0xf]  ;;  %v389_v5 = vld [vmem:[%s2673_s15 + $0x28] sm:$0xf] }
  0x30   : > { %386 = vst [vmem:[%s358_s12 + $0xc] sm:$0xf] %v385_v3  ;;  %388 = vst [vmem:[%s358_s12 + $0x10] sm:$0xf] %v387_v4  ;;  %v391_v6 = vld [vmem:[%s2673_s15 + $0x30] sm:$0xf] }
  0x31   : > { %390 = vst [vmem:[%s358_s12 + $0x14] sm:$0xf] %v389_v5  ;;  %v393_v7 = vld [vmem:[%s2673_s15 + $0x38] sm:$0xf]  ;;  %v395_v8 = vld [vmem:[%s2673_s15 + $0x40] sm:$0xf] }
  0x32   : > { %392 = vst [vmem:[%s358_s12 + $0x18] sm:$0xf] %v391_v6  ;;  %394 = vst [vmem:[%s358_s12 + $0x1c] sm:$0xf] %v393_v7  ;;  %v397_v9 = vld [vmem:[%s2673_s15 + $0x48] sm:$0xf] }
  0x33   : > { %396 = vst [vmem:[%s358_s12 + $0x20] sm:$0xf] %v395_v8  ;;  %v399_v10 = vld [vmem:[%s2673_s15 + $0x50] sm:$0xf]  ;;  %v401_v11 = vld [vmem:[%s2673_s15 + $0x58] sm:$0xf] }
  0x34   : > { %398 = vst [vmem:[%s358_s12 + $0x24] sm:$0xf] %v397_v9  ;;  %400 = vst [vmem:[%s358_s12 + $0x28] sm:$0xf] %v399_v10  ;;  %v403_v12 = vld [vmem:[%s2673_s15 + $0x60] sm:$0xf] }
  0x35   : > { %402 = vst [vmem:[%s358_s12 + $0x2c] sm:$0xf] %v401_v11  ;;  %v405_v13 = vld [vmem:[%s2673_s15 + $0x68] sm:$0xf]  ;;  %v407_v14 = vld [vmem:[%s2673_s15 + $0x70] sm:$0xf] }
  0x36   : > { %404 = vst [vmem:[%s358_s12 + $0x30] sm:$0xf] %v403_v12  ;;  %406 = vst [vmem:[%s358_s12 + $0x34] sm:$0xf] %v405_v13  ;;  %v409_v15 = vld [vmem:[%s2673_s15 + $0x78] sm:$0xf] }
  0x37   : > { %408 = vst [vmem:[%s358_s12 + $0x38] sm:$0xf] %v407_v14  ;;  %410 = vst [vmem:[%s358_s12 + $0x3c] sm:$0xf] %v409_v15 }
  0x38 PF: > { %p1903_p0 = scmp.ge.s32.totalorder %s2508_s26, 1  ;;  %p482_p1 = scmp.lt.s32.totalorder %s2508_s26, 5 }
  0x3a   : > { %p483_p2 = pnand %p1903_p0, %p482_p1 }
  0x3b   : > { %s489_s9 = sand.u32 (!%p483_p2), 1, %s2484_s20   ;;  %s2987_s17 = sand.u32 (!%p483_p2), 1, %s2476_s18  }
  0x3c   : > { %486 = sbr.rel (%p483_p2) target bundleno = 1085 (0x43d), region = 97  ;;  %s1904_s30 = sshll.u32 (!%p483_p2), %s489_s9, 6 }
  0x3d   : > { %s1905_s14 = sshll.u32 (!%p483_p2), %s2987_s17, 7  ;;  %s1906_s28 = sshll.u32 (!%p483_p2), %s2492_s22, 4 }
  0x3e   : > { %s1908_s10 = sshll.u32 (!%p483_p2), %s2496_s23, 4  ;;  %p545_p3 = scmp.lt.s32.totalorder (!%p483_p2), %s1906_s28, 31 }
  0x3f   : > { %p551_p4 = scmp.lt.s32.totalorder (!%p483_p2), %s1908_s10, 31  ;;  %s2714_s7 = scalar_lea.vmem (!%p483_p2), [#allocation3], %s1904_s30 }
  0x40   : > { %p1912_p5 = scmp.ne.s32.totalorder (!%p483_p2), %s2492_s22, 0 }
  0x43   : > { %s3030_s28 = smov (!%p545_p3, %s1906_s28), 31  ;;  %s3032_s10 = smov (!%p551_p4, %s1908_s10), 31 }
  0x44   : > { %s1907_s29 = sshll.u32 %s3030_s28, 2  ;;  %s1909_s0 = sshll.u32 %s3032_s10, 2  ;;  %v2510_v16 = vmov (!%p1912_p5), 0.0  }
  0x45   : > { %s2702_s12 = scalar_lea.vmem %s2969_s1, %s1907_s29  ;;  %s2707_s20 = scalar_lea.vmem %s2970_s2, %s1909_s0  ;;  %568 = vst [vmem:[#allocation2] sm:$0xff] (!%p1912_p5), %v2510_v16  ;;  %569 = vst [vmem:[#allocation2 + $0x8] sm:$0xff] (!%p1912_p5), %v2510_v16 }
  0x46   : > { %s1911_s9 = sshll.u32 %s3032_s10, 3  ;;  %s2716_s28 = scalar_lea.vmem [#allocation4], %s1905_s14  ;;  %570 = vst [vmem:[#allocation2 + $0x10] sm:$0xff] (!%p1912_p5), %v2510_v16  ;;  %571 = vst [vmem:[#allocation2 + $0x18] sm:$0xff] (!%p1912_p5), %v2510_v16 }
  0x47   : > { %s2712_s21 = scalar_lea.vmem %s2979_s11, %s1911_s9  ;;  %567 = sbr.rel (%p1912_p5) target bundleno = 78 (0x4e), region = 105  ;;  %572 = vst [vmem:[#allocation2 + $0x20] sm:$0xff] (!%p1912_p5), %v2510_v16  ;;  %573 = vst [vmem:[#allocation2 + $0x28] sm:$0xff] (!%p1912_p5), %v2510_v16 }
  0x48   : > { %574 = vst [vmem:[#allocation2 + $0x30] sm:$0xff] (!%p1912_p5), %v2510_v16  ;;  %575 = vst [vmem:[#allocation2 + $0x38] sm:$0xff] (!%p1912_p5), %v2510_v16 }
  0x49   : > { %576 = vst [vmem:[#allocation2 + $0x40] sm:$0xff] (!%p1912_p5), %v2510_v16  ;;  %577 = vst [vmem:[#allocation2 + $0x48] sm:$0xff] (!%p1912_p5), %v2510_v16 }
  0x4a   : > { %578 = vst [vmem:[#allocation2 + $0x50] sm:$0xff] (!%p1912_p5), %v2510_v16  ;;  %579 = vst [vmem:[#allocation2 + $0x58] sm:$0xff] (!%p1912_p5), %v2510_v16 }
  0x4b   : > { %580 = vst [vmem:[#allocation2 + $0x60] sm:$0xff] (!%p1912_p5), %v2510_v16  ;;  %581 = vst [vmem:[#allocation2 + $0x68] sm:$0xff] (!%p1912_p5), %v2510_v16 }
  0x4c   : > { %582 = vst [vmem:[#allocation2 + $0x70] sm:$0xff] (!%p1912_p5), %v2510_v16  ;;  %583 = vst [vmem:[#allocation2 + $0x78] sm:$0xff] (!%p1912_p5), %v2510_v16 }
  0x4e PF: > { %v2342_v17 = vld [vmem:[%s2702_s12] sm:$0xff]   ;;  %v2343_v18 = vld [vmem:[%s2702_s12 + $0x8] sm:$0xff]   ;;  %v2344_v19 = vld [vmem:[%s2702_s12 + $0x10] sm:$0xff]   ;;  %p1929_p6 = scmp.ne.s32.totalorder %s2492_s22, 1 }
  0x4f   : > { %2060 = vmatprep.subr.bf16.mxu0 %v2342_v17  ;;  %2220 = vmatprep.subr.bf16.mxu1 %v2342_v17  ;;  %v2345_v20 = vld [vmem:[%s2702_s12 + $0x18] sm:$0xff]   ;;  %v2350_v21 = vld [vmem:[%s2714_s7] sm:$0xff]   ;;  %v2347_v24 = vld [vmem:[%s2702_s12 + $0x28] sm:$0xff]   ;;  %s3006_s30 = sld [smem:[#allocation17_spill]] (!%p1929_p6)  ;;  %s3007_s10 = sld [smem:[#allocation18_spill]] (!%p1929_p6) }
  0x50   : > { %2061 = vmatpush3.bf16.msra.mxu0 %v2342_v17  ;;  %2228 = vmatpush3.bf16.msra.mxu1 %v2342_v17  ;;  %v2351_v22 = vld [vmem:[%s2714_s7 + $0x20] sm:$0xff]   ;;  %v2348_v25 = vld [vmem:[%s2702_s12 + $0x30] sm:$0xff]   ;;  %v2349_v26 = vld [vmem:[%s2702_s12 + $0x38] sm:$0xff]  }
  0x51   : > { %2062 = vmatprep.subr.bf16.mxu0 %v2343_v18  ;;  %2221 = vmatprep.subr.bf16.mxu1 %v2343_v18  ;;  %v2346_v23 = vld [vmem:[%s2702_s12 + $0x20] sm:$0xff]   ;;  %v2352_v27 = vld [vmem:[%s2714_s7 + $0x8] sm:$0xff]   ;;  %v2354_v29 = vld [vmem:[%s2714_s7 + $0x10] sm:$0xff]  }
  0x52   : > { %2076 = vmatprep.mubr.bf16.mxu0 %v2350_v21  ;;  %2084 = vmatprep.mubr.bf16.mxu1 %v2351_v22  ;;  %v2353_v28 = vld [vmem:[%s2714_s7 + $0x28] sm:$0xff]   ;;  %v2355_v30 = vld [vmem:[%s2714_s7 + $0x30] sm:$0xff]   ;;  %v2356_v31 = vld [vmem:[%s2714_s7 + $0x18] sm:$0xff]  }
  0x53   : > { %v2357_v32 = vld [vmem:[%s2714_s7 + $0x38] sm:$0xff]   ;;  %v586_v33 = vld [vmem:[#allocation2 + $0x10] sm:$0xff]  ;;  %v584_v35 = vld [vmem:[#allocation2] sm:$0xff] }
  0x54   : > { %2063 = vmatpush3.bf16.msra.mxu0 %v2343_v18  ;;  %2229 = vmatpush3.bf16.msra.mxu1 %v2343_v18  ;;  %v594_v34 = vld [vmem:[#allocation2 + $0x50] sm:$0xff]  ;;  %v592_v36 = vld [vmem:[#allocation2 + $0x40] sm:$0xff]  ;;  %v587_v39 = vld [vmem:[#allocation2 + $0x18] sm:$0xff] }
  0x55   : > { %2064 = vmatprep.subr.bf16.mxu0 %v2344_v19  ;;  %2222 = vmatprep.subr.bf16.mxu1 %v2344_v19  ;;  %v595_v40 = vld [vmem:[#allocation2 + $0x58] sm:$0xff]  ;;  %v585_v45 = vld [vmem:[#allocation2 + $0x8] sm:$0xff]  ;;  %v590_v57 = vld [vmem:[#allocation2 + $0x30] sm:$0xff] }
  0x56   : > { %v593_v46 = vld [vmem:[#allocation2 + $0x48] sm:$0xff]  ;;  %v598_v58 = vld [vmem:[#allocation2 + $0x70] sm:$0xff]  ;;  %v588_v59 = vld [vmem:[#allocation2 + $0x20] sm:$0xff] }
  0x57   : > { %v596_v60 = vld [vmem:[#allocation2 + $0x60] sm:$0xff]  ;;  %v591_v63 = vld [vmem:[#allocation2 + $0x38] sm:$0xff]  ;;  %v589_v5 = vld [vmem:[#allocation2 + $0x28] sm:$0xff] }
  0x58   : > { %2065 = vmatpush3.bf16.msra.mxu0 %v2344_v19  ;;  %2230 = vmatpush3.bf16.msra.mxu1 %v2344_v19  ;;  %v599_v0 = vld [vmem:[#allocation2 + $0x78] sm:$0xff]  ;;  %v597_v6 = vld [vmem:[#allocation2 + $0x68] sm:$0xff]  ;;  %v2358_v17 = vld [vmem:[%s2972_s4] sm:$0xff] (!%p1929_p6)  }
  0x59   : > { %2066 = vmatprep.subr.bf16.mxu0 %v2345_v20  ;;  %2223 = vmatprep.subr.bf16.mxu1 %v2345_v20  ;;  %v2359_v18 = vld [vmem:[%s2972_s4 + $0x8] sm:$0xff] (!%p1929_p6)   ;;  %v2360_v19 = vld [vmem:[%s2972_s4 + $0x10] sm:$0xff] (!%p1929_p6)  }
  0x5c   : > { %2067 = vmatpush3.bf16.msra.mxu0 %v2345_v20  ;;  %2231 = vmatpush3.bf16.msra.mxu1 %v2345_v20  ;;  %v2361_v20 = vld [vmem:[%s2972_s4 + $0x18] sm:$0xff] (!%p1929_p6)  }
  0x5d   : > { %2068 = vmatprep.subr.bf16.mxu0 %v2346_v23  ;;  %2224 = vmatprep.subr.bf16.mxu1 %v2346_v23 }
  0x60   : > { %2069 = vmatpush3.bf16.msra.mxu0 %v2346_v23  ;;  %2232 = vmatpush3.bf16.msra.mxu1 %v2346_v23 }
  0x61   : > { %2070 = vmatprep.subr.bf16.mxu0 %v2347_v24  ;;  %2225 = vmatprep.subr.bf16.mxu1 %v2347_v24 }
  0x64   : > { %2071 = vmatpush3.bf16.msra.mxu0 %v2347_v24  ;;  %2233 = vmatpush3.bf16.msra.mxu1 %v2347_v24  ;;  %v2362_v24 = vld [vmem:[%s2972_s4 + $0x20] sm:$0xff] (!%p1929_p6)  }
  0x65   : > { %2072 = vmatprep.subr.bf16.mxu0 %v2348_v25  ;;  %2226 = vmatprep.subr.bf16.mxu1 %v2348_v25 }
  0x68   : > { %2073 = vmatpush3.bf16.msra.mxu0 %v2348_v25  ;;  %2234 = vmatpush3.bf16.msra.mxu1 %v2348_v25  ;;  %v2363_v25 = vld [vmem:[%s2972_s4 + $0x28] sm:$0xff] (!%p1929_p6)  }
  0x69   : > { %2074 = vmatprep.subr.bf16.mxu0 %v2349_v26  ;;  %2227 = vmatprep.subr.bf16.mxu1 %v2349_v26 }
  0x6c   : > { %2075 = vmatpush3.bf16.msra.mxu0 %v2349_v26  ;;  %2235 = vmatpush3.bf16.msra.mxu1 %v2349_v26  ;;  %v2364_v26 = vld [vmem:[%s2972_s4 + $0x30] sm:$0xff] (!%p1929_p6)  }
  0x6d   : > { %2092 = vmatprep.subr.bf16.mxu0 (!%p1929_p6), %v2358_v17 }
  0x6f   : > { %2077 = vmatmul.mubr.bf16.vlgmr.msra.gmra.mrb[0].mxu0 %v2352_v27  ;;  %2085 = vmatmul.mubr.bf16.vlgmr.msra.gmra.mrb[0].mxu1 %v2353_v28  ;;  %v2365_v27 = vld [vmem:[%s2972_s4 + $0x38] sm:$0xff] (!%p1929_p6)  }
  0x70   : > { %2080 = vmatprep.mubr.bf16.mxu0 %v2354_v29  ;;  %2088 = vmatprep.mubr.bf16.mxu1 %v2355_v30  ;;  %v2366_v30 = vld [vmem:[%s2971_s3] sm:$0xff] (!%p1929_p6)  }
  0x71   : > { %2093 = vmatpush3.bf16.msra.mxu0 (!%p1929_p6), %v2358_v17 }
  0x72   : > { %2094 = vmatprep.subr.bf16.mxu0 (!%p1929_p6), %v2359_v18 }
  0x75   : > { %2095 = vmatpush3.bf16.msra.mxu0 (!%p1929_p6), %v2359_v18 }
  0x76   : > { %2096 = vmatprep.subr.bf16.mxu0 (!%p1929_p6), %v2360_v19 }
  0x77   : > { %2081 = vmatmul.mubr.bf16.gmra.mrb[4].mxu0 %v2356_v31  ;;  %2089 = vmatmul.mubr.bf16.gmra.mrb[4].mxu1 %v2357_v32 }
  0x79   : > { %2097 = vmatpush3.bf16.msra.mxu0 (!%p1929_p6), %v2360_v19 }
  0x7a   : > { %2098 = vmatprep.subr.bf16.mxu0 (!%p1929_p6), %v2361_v20 }
  0x7d   : > { %2099 = vmatpush3.bf16.msra.mxu0 (!%p1929_p6), %v2361_v20 }
  0x7e   : > { %2100 = vmatprep.subr.bf16.mxu0 (!%p1929_p6), %v2362_v24 }
  0x81   : > { %2101 = vmatpush3.bf16.msra.mxu0 (!%p1929_p6), %v2362_v24 }
  0x82   : > { %2102 = vmatprep.subr.bf16.mxu0 (!%p1929_p6), %v2363_v25 }
  0x85   : > { %2103 = vmatpush3.bf16.msra.mxu0 (!%p1929_p6), %v2363_v25 }
  0x86   : > { %2104 = vmatprep.subr.bf16.mxu0 (!%p1929_p6), %v2364_v26 }
  0x89   : > { %2105 = vmatpush3.bf16.msra.mxu0 (!%p1929_p6), %v2364_v26 }
  0x8a   : > { %2106 = vmatprep.subr.bf16.mxu0 (!%p1929_p6), %v2365_v27 }
  0x8d   : > { %2107 = vmatpush3.bf16.msra.mxu0 (!%p1929_p6), %v2365_v27 }
  0x8e   : > { %2124 = vmatprep.subr.bf16.mxu0 (!%p1929_p6), %v2366_v30 }
 0x142   : > { %v2078_v37 = vpop.f32.mrb[0].mxu0  ;;  %v2086_v38 = vpop.f32.mrb[0].mxu1 }
 0x143   : > { %v827_v41 = vadd.f32 %v2078_v37, %v586_v33  ;;  %v835_v42 = vadd.f32 %v2086_v38, %v594_v34  ;;  %v762_v43 = vpop.f32.mrb[1].mxu0  ;;  %v794_v44 = vpop.f32.mrb[1].mxu1  ;;  %v2382_v34 = vld [vmem:[%s2974_s6] sm:$0xff] (!%p1929_p6)   ;;  %v2367_v37 = vld [vmem:[%s2971_s3 + $0x8] sm:$0xff] (!%p1929_p6)  }
 0x144   : > { %v825_v47 = vadd.f32 %v762_v43, %v584_v35  ;;  %v833_v48 = vadd.f32 %v794_v44, %v592_v36  ;;  %v2079_v49 = vpop.f32.mrb[2].mxu0  ;;  %v2087_v50 = vpop.f32.mrb[2].mxu1  ;;  %v2383_v36 = vld [vmem:[%s2974_s6 + $0x8] sm:$0xff] (!%p1929_p6)   ;;  %2156 = vmatprep.subr.bf16.mxu1 (!%p1929_p6), %v2382_v34  ;;  %v2384_v43 = vld [vmem:[%s2974_s6 + $0x10] sm:$0xff] (!%p1929_p6)   ;;  %v2385_v44 = vld [vmem:[%s2974_s6 + $0x18] sm:$0xff] (!%p1929_p6)  }
 0x145   : > { %843 = vst [vmem:[#allocation2 + $0x10] sm:$0xff] %v827_v41  ;;  %851 = vst [vmem:[#allocation2 + $0x50] sm:$0xff] %v835_v42  ;;  %v828_v51 = vadd.f32 %v2079_v49, %v587_v39  ;;  %v836_v52 = vadd.f32 %v2087_v50, %v595_v40  ;;  %v765_v53 = vpop.f32.mrb[3].mxu0  ;;  %v797_v54 = vpop.f32.mrb[3].mxu1  ;;  %2157 = vmatpush3.bf16.msra.mxu1 (!%p1929_p6), %v2382_v34  ;;  %v2368_v40 = vld [vmem:[%s2971_s3 + $0x10] sm:$0xff] (!%p1929_p6)   ;;  %v2391_v34 = vld [vmem:[%s2976_s8 + $0x8] sm:$0xff] (!%p1929_p6)  }
 0x146   : > { %841 = vst [vmem:[#allocation2] sm:$0xff] %v825_v47  ;;  %849 = vst [vmem:[#allocation2 + $0x40] sm:$0xff] %v833_v48  ;;  %v826_v55 = vadd.f32 %v765_v53, %v585_v45  ;;  %v834_v56 = vadd.f32 %v797_v54, %v593_v46  ;;  %2158 = vmatprep.subr.bf16.mxu1 (!%p1929_p6), %v2383_v36  ;;  %v2369_v46 = vld [vmem:[%s2971_s3 + $0x18] sm:$0xff] (!%p1929_p6)   ;;  %v2386_v48 = vld [vmem:[%s2974_s6 + $0x20] sm:$0xff] (!%p1929_p6)  }
 0x147   : > { %844 = vst [vmem:[#allocation2 + $0x18] sm:$0xff] %v828_v51  ;;  %852 = vst [vmem:[#allocation2 + $0x58] sm:$0xff] %v836_v52  ;;  %v2370_v51 = vld [vmem:[%s2971_s3 + $0x20] sm:$0xff] (!%p1929_p6)  }
 0x148   : > { %842 = vst [vmem:[#allocation2 + $0x8] sm:$0xff] %v826_v55  ;;  %850 = vst [vmem:[#allocation2 + $0x48] sm:$0xff] %v834_v56  ;;  %v2371_v56 = vld [vmem:[%s2971_s3 + $0x28] sm:$0xff] (!%p1929_p6)  }
 0x149   : > { %2159 = vmatpush3.bf16.msra.mxu1 (!%p1929_p6), %v2383_v36 }
 0x14a   : > { %v2082_v61 = vpop.f32.mrb[4].mxu0  ;;  %v2090_v62 = vpop.f32.mrb[4].mxu1  ;;  %860 = sbr.rel (%p1929_p6) target bundleno = 1058 (0x422), region = 109  ;;  %2160 = vmatprep.subr.bf16.mxu1 (!%p1929_p6), %v2384_v43 }
 0x14b   : > { %v831_v1 = vadd.f32 %v2082_v61, %v590_v57  ;;  %v839_v2 = vadd.f32 %v2090_v62, %v598_v58  ;;  %v778_v3 = vpop.f32.mrb[5].mxu0  ;;  %v810_v4 = vpop.f32.mrb[5].mxu1  ;;  %v2374_v61 = vld [vmem:[%s2707_s20] sm:$0xff] (!%p1929_p6)   ;;  %v2373_v62 = vld [vmem:[%s2971_s3 + $0x38] sm:$0xff] (!%p1929_p6)  }
 0x14c   : > { %v829_v7 = vadd.f32 %v778_v3, %v588_v59  ;;  %v837_v8 = vadd.f32 %v810_v4, %v596_v60  ;;  %v2083_v9 = vpop.f32.mrb[6].mxu0  ;;  %v2091_v10 = vpop.f32.mrb[6].mxu1  ;;  %v863_v28 = vld [vmem:[#allocation2 + $0x10] sm:$0xff] (!%p1929_p6)  ;;  %v2379_v3 = vld [vmem:[%s2707_s20 + $0x28] sm:$0xff] (!%p1929_p6)  }
 0x14d   : > { %847 = vst [vmem:[#allocation2 + $0x30] sm:$0xff] %v831_v1  ;;  %855 = vst [vmem:[#allocation2 + $0x70] sm:$0xff] %v839_v2  ;;  %v832_v11 = vadd.f32 %v2083_v9, %v591_v63  ;;  %v840_v12 = vadd.f32 %v2091_v10, %v599_v0  ;;  %v781_v13 = vpop.f32.mrb[7].mxu0  ;;  %v813_v14 = vpop.f32.mrb[7].mxu1  ;;  %v861_v21 = vld [vmem:[#allocation2] sm:$0xff] (!%p1929_p6)  ;;  %2161 = vmatpush3.bf16.msra.mxu1 (!%p1929_p6), %v2384_v43  ;;  %v871_v49 = vld [vmem:[#allocation2 + $0x50] sm:$0xff] (!%p1929_p6) }
 0x14e   : > { %845 = vst [vmem:[#allocation2 + $0x20] sm:$0xff] %v829_v7  ;;  %853 = vst [vmem:[#allocation2 + $0x60] sm:$0xff] %v837_v8  ;;  %v830_v15 = vadd.f32 %v781_v13, %v589_v5  ;;  %v838_v16 = vadd.f32 %v813_v14, %v597_v6  ;;  %v864_v29 = vld [vmem:[#allocation2 + $0x18] sm:$0xff] (!%p1929_p6)  ;;  %v869_v41 = vld [vmem:[#allocation2 + $0x40] sm:$0xff] (!%p1929_p6)  ;;  %2162 = vmatprep.subr.bf16.mxu1 (!%p1929_p6), %v2385_v44 }
 0x14f   : > { %848 = vst [vmem:[#allocation2 + $0x38] sm:$0xff] %v832_v11  ;;  %856 = vst [vmem:[#allocation2 + $0x78] sm:$0xff] %v840_v12  ;;  %v862_v22 = vld [vmem:[#allocation2 + $0x8] sm:$0xff] (!%p1929_p6)  ;;  %v878_v33 = vpack.c.bf16 (!%p1929_p6), %v864_v29, %v863_v28  ;;  %v872_v50 = vld [vmem:[#allocation2 + $0x58] sm:$0xff] (!%p1929_p6) }
 0x150   : > { %846 = vst [vmem:[#allocation2 + $0x28] sm:$0xff] %v830_v15  ;;  %854 = vst [vmem:[#allocation2 + $0x68] sm:$0xff] %v838_v16  ;;  %v877_v23 = vpack.c.bf16 (!%p1929_p6), %v862_v22, %v861_v21  ;;  %v870_v42 = vld [vmem:[#allocation2 + $0x48] sm:$0xff] (!%p1929_p6)  ;;  %v882_v54 = vpack.c.bf16 (!%p1929_p6), %v872_v50, %v871_v49  ;;  %v2372_v59 = vld [vmem:[%s2971_s3 + $0x30] sm:$0xff] (!%p1929_p6)  }
 0x151   : > { %v881_v47 = vpack.c.bf16 %v870_v42, %v869_v41  ;;  %2163 = vmatpush3.bf16.msra.mxu1 %v2385_v44  ;;  %v2375_v63 = vld [vmem:[%s2707_s20 + $0x8] sm:$0xff]   ;;  %v2376_v0 = vld [vmem:[%s2707_s20 + $0x10] sm:$0xff]   ;;  %v2377_v1 = vld [vmem:[%s2707_s20 + $0x18] sm:$0xff]  }
 0x152   : > { %2108 = vmatprep.mubr.bf16.mxu0 %v877_v23  ;;  %2164 = vmatprep.subr.bf16.mxu1 %v2386_v48  ;;  %v2378_v2 = vld [vmem:[%s2707_s20 + $0x20] sm:$0xff]   ;;  %v2380_v4 = vld [vmem:[%s2707_s20 + $0x30] sm:$0xff]   ;;  %v2381_v5 = vld [vmem:[%s2707_s20 + $0x38] sm:$0xff]  }
 0x153   : > { %2109 = vmatmul.mubr.bf16.vlgmr.msra.gmra.mrb[0].mxu0 %v878_v33  ;;  %v2387_v6 = vld [vmem:[%s2974_s6 + $0x28] sm:$0xff]   ;;  %v2388_v7 = vld [vmem:[%s2974_s6 + $0x30] sm:$0xff]   ;;  %v2389_v8 = vld [vmem:[%s2974_s6 + $0x38] sm:$0xff]  }
 0x154   : > { %v867_v38 = vld [vmem:[#allocation2 + $0x30] sm:$0xff]  ;;  %2125 = vmatpush3.bf16.msra.mxu0 %v2366_v30  ;;  %v2390_v9 = vld [vmem:[%s2976_s8] sm:$0xff]  }
 0x155   : > { %v865_v31 = vld [vmem:[#allocation2 + $0x20] sm:$0xff]  ;;  %2126 = vmatprep.subr.bf16.mxu0 %v2367_v37  ;;  %2165 = vmatpush3.bf16.msra.mxu1 %v2386_v48  ;;  %v875_v57 = vld [vmem:[#allocation2 + $0x70] sm:$0xff] }
 0x156   : > { %v868_v39 = vld [vmem:[#allocation2 + $0x38] sm:$0xff]  ;;  %v873_v52 = vld [vmem:[#allocation2 + $0x60] sm:$0xff]  ;;  %2166 = vmatprep.subr.bf16.mxu1 %v2387_v6  ;;  %v2392_v44 = vld [vmem:[%s2976_s8 + $0x10] sm:$0xff]  }
 0x157   : > { %v866_v32 = vld [vmem:[#allocation2 + $0x28] sm:$0xff]  ;;  %v880_v45 = vpack.c.bf16 %v868_v39, %v867_v38  ;;  %v876_v58 = vld [vmem:[#allocation2 + $0x78] sm:$0xff]  ;;  %v2822_v10 = vld [vmem:[%s2973_s5] ss:$0 sm:$0xff] }
 0x158   : > { %v879_v35 = vpack.c.bf16 %v866_v32, %v865_v31  ;;  %2127 = vmatpush3.bf16.msra.mxu0 %v2367_v37  ;;  %v874_v53 = vld [vmem:[#allocation2 + $0x68] sm:$0xff]  ;;  %v884_v60 = vpack.c.bf16 %v876_v58, %v875_v57 }
 0x159   : > { %2128 = vmatprep.subr.bf16.mxu0 %v2368_v40  ;;  %v883_v55 = vpack.c.bf16 %v874_v53, %v873_v52  ;;  %2167 = vmatpush3.bf16.msra.mxu1 %v2387_v6 }
 0x15a   : > { %2112 = vmatprep.mubr.bf16.mxu0 %v879_v35  ;;  %2168 = vmatprep.subr.bf16.mxu1 %v2388_v7 }
 0x15b   : > { %2113 = vmatmul.mubr.bf16.gmra.mrb[4].mxu0 %v880_v45 }
 0x15c   : > { %2129 = vmatpush3.bf16.msra.mxu0 %v2368_v40  ;;  %2116 = vmatprep.mubr.bf16.mxu0 %v881_v47 }
 0x15d   : > { %2130 = vmatprep.subr.bf16.mxu0 %v2369_v46  ;;  %2169 = vmatpush3.bf16.msra.mxu1 %v2388_v7 }
 0x15e   : > { %2170 = vmatprep.subr.bf16.mxu1 %v2389_v8 }
 0x160   : > { %2131 = vmatpush3.bf16.msra.mxu0 %v2369_v46 }
 0x161   : > { %2132 = vmatprep.subr.bf16.mxu0 %v2370_v51  ;;  %2171 = vmatpush3.bf16.msra.mxu1 %v2389_v8 }
 0x162   : > { %2188 = vmatprep.subr.bf16.mxu1 %v2390_v9 }
 0x163   : > { %2117 = vmatmul.mubr.bf16.gmra.mrb[8].mxu0 %v882_v54  ;;  %v2393_v54 = vld [vmem:[%s2976_s8 + $0x18] sm:$0xff]  }
 0x164   : > { %2133 = vmatpush3.bf16.msra.mxu0 %v2370_v51  ;;  %2120 = vmatprep.mubr.bf16.mxu0 %v883_v55 }
 0x165   : > { %2134 = vmatprep.subr.bf16.mxu0 %v2371_v56 }
 0x168   : > { %2135 = vmatpush3.bf16.msra.mxu0 %v2371_v56 }
 0x169   : > { %2136 = vmatprep.subr.bf16.mxu0 %v2372_v59 }
 0x16b   : > { %2121 = vmatmul.mubr.bf16.gmra.mrb[12].mxu0 %v884_v60 }
 0x16c   : > { %2137 = vmatpush3.bf16.msra.mxu0 %v2372_v59  ;;  %2140 = vmatprep.mubr.bf16.mxu0 %v2374_v61 }
 0x16d   : > { %2138 = vmatprep.subr.bf16.mxu0 %v2373_v62 }
 0x170   : > { %2139 = vmatpush3.bf16.msra.mxu0 %v2373_v62 }
 0x173   : > { %2141 = vmatmul.mubr.bf16.vlgmr.msra.gmra.mrb[0].mxu0 %v2375_v63 }
 0x174   : > { %2144 = vmatprep.mubr.bf16.mxu0 %v2376_v0  ;;  %v2394_v0 = vld [vmem:[%s2976_s8 + $0x20] sm:$0xff]  }
 0x17b   : > { %2145 = vmatmul.mubr.bf16.gmra.mrb[4].mxu0 %v2377_v1 }
 0x17c   : > { %2148 = vmatprep.mubr.bf16.mxu0 %v2378_v2 }
 0x183   : > { %2149 = vmatmul.mubr.bf16.gmra.mrb[8].mxu0 %v2379_v3 }
 0x184   : > { %2152 = vmatprep.mubr.bf16.mxu0 %v2380_v4 }
 0x18b   : > { %2153 = vmatmul.mubr.bf16.gmra.mrb[12].mxu0 %v2381_v5 }
 0x246   : > { %v2142_v11 = vpop.f32.mrb[0].mxu0 }
 0x247   : > { %v1280_v12 = vadd.f32 %v2142_v11, %v2822_v10  ;;  %v1208_v13 = vpop.f32.mrb[1].mxu0  ;;  %v2395_v11 = vld [vmem:[%s2976_s8 + $0x28] sm:$0xff]  }
 0x248   : > { %v1278_v14 = vadd.f32 %v2822_v10, %v1208_v13  ;;  %v2143_v15 = vpop.f32.mrb[2].mxu0 }
 0x249   : > { %vm1296_vm0 = vcmp.gt.f32.partialorder %v1280_v12, 0.0  ;;  %v1312_v16 = vmul.f32 0.01, %v1280_v12  ;;  %v1281_v17 = vadd.f32 %v2143_v15, %v2822_v10  ;;  %v1211_v18 = vpop.f32.mrb[3].mxu0 }
 0x24a   : > { %v1310_v19 = vmul.f32 0.01, %v1278_v14  ;;  %v1279_v20 = vadd.f32 %v2822_v10, %v1211_v18  ;;  %vm1294_vm1 = vcmp.gt.f32.partialorder %v1278_v14, 0.0 }
 0x24b   : > { %vm1297_vm2 = vcmp.gt.f32.partialorder %v1281_v17, 0.0  ;;  %v1313_v21 = vmul.f32 0.01, %v1281_v17  ;;  %v1328_v22 = vsel %vm1296_vm0, %v1280_v12, %v1312_v16 }
 0x24c   : > { %v1311_v23 = vmul.f32 0.01, %v1279_v20  ;;  %vm1295_vm3 = vcmp.gt.f32.partialorder %v1279_v20, 0.0  ;;  %v1326_v24 = vsel %vm1294_vm1, %v1278_v14, %v1310_v19  ;;  %1344 = vst [vmem:[%s2716_s28 + $0x10] sm:$0xff] %v1328_v22 }
 0x24d   : > { %1342 = vst [vmem:[%s2716_s28] sm:$0xff] %v1326_v24  ;;  %v1329_v25 = vsel %vm1297_vm2, %v1281_v17, %v1313_v21 }
 0x24e   : > { %v2146_v26 = vpop.f32.mrb[4].mxu0  ;;  %v1327_v27 = vsel %vm1295_vm3, %v1279_v20, %v1311_v23  ;;  %1345 = vst [vmem:[%s2716_s28 + $0x18] sm:$0xff] %v1329_v25  ;;  %v1359_v28 = vpack.c.bf16 %v1329_v25, %v1328_v22  ;;  %v2397_v25 = vld [vmem:[%s2976_s8 + $0x38] sm:$0xff]  }
 0x24f   : > { %v1284_v29 = vadd.f32 %v2146_v26, %v2822_v10  ;;  %v1224_v30 = vpop.f32.mrb[5].mxu0  ;;  %1343 = vst [vmem:[%s2716_s28 + $0x8] sm:$0xff] %v1327_v27  ;;  %v1358_v31 = vpack.c.bf16 %v1327_v27, %v1326_v24  ;;  %v1955_v26 = vld [vmem:[%s3006_s30] ss:$0 sm:$0xff] }
 0x250   : > { %v1282_v32 = vadd.f32 %v2822_v10, %v1224_v30  ;;  %v2147_v33 = vpop.f32.mrb[6].mxu0 }
 0x251   : > { %vm1300_vm4 = vcmp.gt.f32.partialorder %v1284_v29, 0.0  ;;  %v1316_v35 = vmul.f32 0.01, %v1284_v29  ;;  %v1285_v36 = vadd.f32 %v2147_v33, %v2822_v10  ;;  %v1227_v37 = vpop.f32.mrb[7].mxu0  ;;  %2172 = vmatprep.mubr.bf16.mxu1 %v1358_v31 }
 0x252   : > { %vm1298_vm5 = vcmp.gt.f32.partialorder %v1282_v32, 0.0  ;;  %v1314_v38 = vmul.f32 0.01, %v1282_v32  ;;  %v1283_v39 = vadd.f32 %v2822_v10, %v1227_v37  ;;  %2173 = vmatmul.mubr.bf16.vlgmr.msra.gmra.mrb[0].mxu1 %v1359_v28 }
 0x253   : > { %vm1301_vm6 = vcmp.gt.f32.partialorder %v1285_v36, 0.0  ;;  %v1317_v40 = vmul.f32 0.01, %v1285_v36  ;;  %v1332_v41 = vsel %vm1300_vm4, %v1284_v29, %v1316_v35  ;;  %2189 = vmatpush3.bf16.msra.mxu1 %v2390_v9 }
 0x254   : > { %vm1299_vm7 = vcmp.gt.f32.partialorder %v1283_v39, 0.0  ;;  %v1315_v42 = vmul.f32 0.01, %v1283_v39  ;;  %v1330_v43 = vsel %vm1298_vm5, %v1282_v32, %v1314_v38  ;;  %1348 = vst [vmem:[%s2716_s28 + $0x30] sm:$0xff] %v1332_v41  ;;  %2190 = vmatprep.subr.bf16.mxu1 %v2391_v34 }
 0x255   : > { %1346 = vst [vmem:[%s2716_s28 + $0x20] sm:$0xff] %v1330_v43  ;;  %v1333_v45 = vsel %vm1301_vm6, %v1285_v36, %v1317_v40 }
 0x256   : > { %v2150_v46 = vpop.f32.mrb[8].mxu0  ;;  %v1331_v47 = vsel %vm1299_vm7, %v1283_v39, %v1315_v42  ;;  %1349 = vst [vmem:[%s2716_s28 + $0x38] sm:$0xff] %v1333_v45  ;;  %v1361_v48 = vpack.c.bf16 %v1333_v45, %v1332_v41 }
 0x257   : > { %v1288_v49 = vadd.f32 %v2150_v46, %v2822_v10  ;;  %v1240_v50 = vpop.f32.mrb[9].mxu0  ;;  %1347 = vst [vmem:[%s2716_s28 + $0x28] sm:$0xff] %v1331_v47  ;;  %v1360_v51 = vpack.c.bf16 %v1331_v47, %v1330_v43  ;;  %2191 = vmatpush3.bf16.msra.mxu1 %v2391_v34 }
 0x258   : > { %v1286_v52 = vadd.f32 %v2822_v10, %v1240_v50  ;;  %v2151_v53 = vpop.f32.mrb[10].mxu0  ;;  %2192 = vmatprep.subr.bf16.mxu1 %v2392_v44 }
 0x259   : > { %vm1304_vm8 = vcmp.gt.f32.partialorder %v1288_v49, 0.0  ;;  %v1320_v55 = vmul.f32 0.01, %v1288_v49  ;;  %v1289_v56 = vadd.f32 %v2151_v53, %v2822_v10  ;;  %v1243_v57 = vpop.f32.mrb[11].mxu0  ;;  %2176 = vmatprep.mubr.bf16.mxu1 %v1360_v51 }
 0x25a   : > { %vm1302_vm9 = vcmp.gt.f32.partialorder %v1286_v52, 0.0  ;;  %v1318_v58 = vmul.f32 0.01, %v1286_v52  ;;  %v1287_v59 = vadd.f32 %v2822_v10, %v1243_v57  ;;  %2177 = vmatmul.mubr.bf16.gmra.mrb[4].mxu1 %v1361_v48 }
 0x25b   : > { %vm1305_vm10 = vcmp.gt.f32.partialorder %v1289_v56, 0.0  ;;  %v1321_v60 = vmul.f32 0.01, %v1289_v56  ;;  %v1336_v61 = vsel %vm1304_vm8, %v1288_v49, %v1320_v55  ;;  %2193 = vmatpush3.bf16.msra.mxu1 %v2392_v44 }
 0x25c   : > { %vm1303_vm11 = vcmp.gt.f32.partialorder %v1287_v59, 0.0  ;;  %v1319_v62 = vmul.f32 0.01, %v1287_v59  ;;  %v1334_v63 = vsel %vm1302_vm9, %v1286_v52, %v1318_v58  ;;  %1352 = vst [vmem:[%s2716_s28 + $0x50] sm:$0xff] %v1336_v61  ;;  %2194 = vmatprep.subr.bf16.mxu1 %v2393_v54 }
 0x25d   : > { %1350 = vst [vmem:[%s2716_s28 + $0x40] sm:$0xff] %v1334_v63  ;;  %v1337_v1 = vsel %vm1305_vm10, %v1289_v56, %v1321_v60 }
 0x25e   : > { %v2154_v2 = vpop.f32.mrb[12].mxu0  ;;  %v1335_v3 = vsel %vm1303_vm11, %v1287_v59, %v1319_v62  ;;  %1353 = vst [vmem:[%s2716_s28 + $0x58] sm:$0xff] %v1337_v1  ;;  %v1363_v4 = vpack.c.bf16 %v1337_v1, %v1336_v61 }
 0x25f   : > { %v1292_v5 = vadd.f32 %v2154_v2, %v2822_v10  ;;  %v1256_v6 = vpop.f32.mrb[13].mxu0  ;;  %1351 = vst [vmem:[%s2716_s28 + $0x48] sm:$0xff] %v1335_v3  ;;  %v1362_v7 = vpack.c.bf16 %v1335_v3, %v1334_v63  ;;  %2195 = vmatpush3.bf16.msra.mxu1 %v2393_v54 }
 0x260   : > { %v1290_v8 = vadd.f32 %v2822_v10, %v1256_v6  ;;  %v2155_v9 = vpop.f32.mrb[14].mxu0  ;;  %2196 = vmatprep.subr.bf16.mxu1 %v2394_v0 }
 0x261   : > { %vm1308_vm12 = vcmp.gt.f32.partialorder %v1292_v5, 0.0  ;;  %v1324_v12 = vmul.f32 0.01, %v1292_v5  ;;  %v1293_v13 = vadd.f32 %v2155_v9, %v2822_v10  ;;  %v1259_v14 = vpop.f32.mrb[15].mxu0  ;;  %2180 = vmatprep.mubr.bf16.mxu1 %v1362_v7 }
 0x262   : > { %vm1306_vm13 = vcmp.gt.f32.partialorder %v1290_v8, 0.0  ;;  %v1322_v15 = vmul.f32 0.01, %v1290_v8  ;;  %v1291_v16 = vadd.f32 %v2822_v10, %v1259_v14  ;;  %2181 = vmatmul.mubr.bf16.gmra.mrb[8].mxu1 %v1363_v4  ;;  %v2396_v10 = vld [vmem:[%s2976_s8 + $0x30] sm:$0xff]  }
 0x263   : > { %vm1309_vm14 = vcmp.gt.f32.partialorder %v1293_v13, 0.0  ;;  %v1325_v17 = vmul.f32 0.01, %v1293_v13  ;;  %v1340_v18 = vsel %vm1308_vm12, %v1292_v5, %v1324_v12  ;;  %2197 = vmatpush3.bf16.msra.mxu1 %v2394_v0 }
 0x264   : > { %vm1307_vm15 = vcmp.gt.f32.partialorder %v1291_v16, 0.0  ;;  %v1323_v19 = vmul.f32 0.01, %v1291_v16  ;;  %v1338_v20 = vsel %vm1306_vm13, %v1290_v8, %v1322_v15  ;;  %1356 = vst [vmem:[%s2716_s28 + $0x70] sm:$0xff] %v1340_v18  ;;  %2198 = vmatprep.subr.bf16.mxu1 %v2395_v11 }
 0x265   : > { %1354 = vst [vmem:[%s2716_s28 + $0x60] sm:$0xff] %v1338_v20  ;;  %v1341_v21 = vsel %vm1309_vm14, %v1293_v13, %v1325_v17 }
 0x266   : > { %v1339_v22 = vsel %vm1307_vm15, %v1291_v16, %v1323_v19  ;;  %1357 = vst [vmem:[%s2716_s28 + $0x78] sm:$0xff] %v1341_v21  ;;  %v1365_v23 = vpack.c.bf16 %v1341_v21, %v1340_v18 }
 0x267   : > { %1355 = vst [vmem:[%s2716_s28 + $0x68] sm:$0xff] %v1339_v22  ;;  %v1364_v24 = vpack.c.bf16 %v1339_v22, %v1338_v20  ;;  %2199 = vmatpush3.bf16.msra.mxu1 %v2395_v11  ;;  %v1964_v20 = vld [vmem:[%s3007_s10] ss:$0 sm:$0xff] }
 0x268   : > { %2200 = vmatprep.subr.bf16.mxu1 %v2396_v10 }
 0x269   : > { %2184 = vmatprep.mubr.bf16.mxu1 %v1364_v24 }
 0x26a   : > { %2185 = vmatmul.mubr.bf16.gmra.mrb[12].mxu1 %v1365_v23 }
 0x26b   : > { %2201 = vmatpush3.bf16.msra.mxu1 %v2396_v10 }
 0x26c   : > { %2202 = vmatprep.subr.bf16.mxu1 %v2397_v25 }
 0x26f   : > { %2203 = vmatpush3.bf16.msra.mxu1 %v2397_v25 }
 0x325   : > { %v2174_v27 = vpop.f32.mrb[0].mxu1 }
 0x326   : > { %v1480_v28 = vadd.f32 %v2174_v27, %v1955_v26  ;;  %v1471_v29 = vpop.f32.mrb[1].mxu1 }
 0x327   : > { %v1472_v30 = vadd.f32 %v1955_v26, %v1471_v29  ;;  %v2175_v31 = vpop.f32.mrb[2].mxu1 }
 0x328   : > { %v1483_v32 = vadd.f32 %v2175_v31, %v1955_v26  ;;  %v1474_v33 = vpop.f32.mrb[3].mxu1  ;;  %v1536_v35 = vmax.f32 %v1480_v28, 0.0 }
 0x329   : > { %v1475_v34 = vadd.f32 %v1955_v26, %v1474_v33  ;;  %v1534_v37 = vmax.f32 %v1472_v30, 0.0 }
 0x32a   : > { %v1537_v36 = vmax.f32 %v1483_v32, 0.0 }
 0x32b   : > { %v1535_v38 = vmax.f32 %v1475_v34, 0.0 }
 0x32c   : > { %v1551_v39 = vpack.c.bf16 %v1537_v36, %v1536_v35 }
 0x32d   : > { %v1550_v40 = vpack.c.bf16 %v1535_v38, %v1534_v37  ;;  %v2178_v41 = vpop.f32.mrb[4].mxu1 }
 0x32e   : > { %v1496_v42 = vadd.f32 %v2178_v41, %v1955_v26  ;;  %v1487_v43 = vpop.f32.mrb[5].mxu1 }
 0x32f   : > { %v1488_v44 = vadd.f32 %v1955_v26, %v1487_v43  ;;  %v2179_v45 = vpop.f32.mrb[6].mxu1  ;;  %2204 = vmatprep.mubr.bf16.mxu1 %v1550_v40 }
 0x330   : > { %v1499_v46 = vadd.f32 %v2179_v45, %v1955_v26  ;;  %v1490_v47 = vpop.f32.mrb[7].mxu1  ;;  %2205 = vmatmul.mubr.bf16.vlgmr.msra.gmra.mrb[16].mxu1 %v1551_v39  ;;  %v1540_v49 = vmax.f32 %v1496_v42, 0.0 }
 0x331   : > { %v1491_v48 = vadd.f32 %v1955_v26, %v1490_v47  ;;  %v1538_v51 = vmax.f32 %v1488_v44, 0.0 }
 0x332   : > { %v1541_v50 = vmax.f32 %v1499_v46, 0.0 }
 0x333   : > { %v1539_v52 = vmax.f32 %v1491_v48, 0.0 }
 0x334   : > { %v1553_v53 = vpack.c.bf16 %v1541_v50, %v1540_v49 }
 0x335   : > { %v1552_v54 = vpack.c.bf16 %v1539_v52, %v1538_v51  ;;  %v2182_v55 = vpop.f32.mrb[8].mxu1 }
 0x336   : > { %v1512_v56 = vadd.f32 %v2182_v55, %v1955_v26  ;;  %v1503_v57 = vpop.f32.mrb[9].mxu1 }
 0x337   : > { %v1504_v58 = vadd.f32 %v1955_v26, %v1503_v57  ;;  %v2183_v59 = vpop.f32.mrb[10].mxu1  ;;  %2208 = vmatprep.mubr.bf16.mxu1 %v1552_v54 }
 0x338   : > { %v1515_v60 = vadd.f32 %v2183_v59, %v1955_v26  ;;  %v1506_v61 = vpop.f32.mrb[11].mxu1  ;;  %2209 = vmatmul.mubr.bf16.gmra.mrb[20].mxu1 %v1553_v53  ;;  %v1544_v63 = vmax.f32 %v1512_v56, 0.0 }
 0x339   : > { %v1507_v62 = vadd.f32 %v1955_v26, %v1506_v61  ;;  %v1542_v1 = vmax.f32 %v1504_v58, 0.0 }
 0x33a   : > { %v1545_v0 = vmax.f32 %v1515_v60, 0.0 }
 0x33b   : > { %v1543_v2 = vmax.f32 %v1507_v62, 0.0 }
 0x33c   : > { %v1555_v3 = vpack.c.bf16 %v1545_v0, %v1544_v63 }
 0x33d   : > { %v1554_v4 = vpack.c.bf16 %v1543_v2, %v1542_v1  ;;  %v2186_v5 = vpop.f32.mrb[12].mxu1 }
 0x33e   : > { %v1528_v6 = vadd.f32 %v2186_v5, %v1955_v26  ;;  %v1519_v7 = vpop.f32.mrb[13].mxu1 }
 0x33f   : > { %v1520_v8 = vadd.f32 %v1955_v26, %v1519_v7  ;;  %v2187_v9 = vpop.f32.mrb[14].mxu1  ;;  %2212 = vmatprep.mubr.bf16.mxu1 %v1554_v4 }
 0x340   : > { %v1531_v11 = vadd.f32 %v2187_v9, %v1955_v26  ;;  %v1522_v12 = vpop.f32.mrb[15].mxu1  ;;  %2213 = vmatmul.mubr.bf16.gmra.mrb[24].mxu1 %v1555_v3  ;;  %v1548_v14 = vmax.f32 %v1528_v6, 0.0 }
 0x341   : > { %v1523_v13 = vadd.f32 %v1955_v26, %v1522_v12  ;;  %v1546_v16 = vmax.f32 %v1520_v8, 0.0 }
 0x342   : > { %v1549_v15 = vmax.f32 %v1531_v11, 0.0 }
 0x343   : > { %v1547_v17 = vmax.f32 %v1523_v13, 0.0 }
 0x344   : > { %v1557_v18 = vpack.c.bf16 %v1549_v15, %v1548_v14 }
 0x345   : > { %v1556_v19 = vpack.c.bf16 %v1547_v17, %v1546_v16 }
 0x347   : > { %2216 = vmatprep.mubr.bf16.mxu1 %v1556_v19 }
 0x348   : > { %2217 = vmatmul.mubr.bf16.gmra.mrb[28].mxu1 %v1557_v18 }
 0x403   : > { %v2206_v21 = vpop.f32.mrb[16].mxu1 }
 0x404   : > { %v1672_v22 = vadd.f32 %v2206_v21, %v1964_v20  ;;  %v1663_v23 = vpop.f32.mrb[17].mxu1 }
 0x405   : > { %v1664_v24 = vadd.f32 %v1964_v20, %v1663_v23  ;;  %v2207_v10 = vpop.f32.mrb[18].mxu1 }
 0x406   : > { %1728 = vst [vmem:[%s2712_s21 + $0x10] sm:$0xff] %v1672_v22  ;;  %v1675_v25 = vadd.f32 %v2207_v10, %v1964_v20  ;;  %v1666_v26 = vpop.f32.mrb[19].mxu1 }
 0x407   : > { %1726 = vst [vmem:[%s2712_s21] sm:$0xff] %v1664_v24  ;;  %v1667_v27 = vadd.f32 %v1964_v20, %v1666_v26 }
 0x408   : > { %1729 = vst [vmem:[%s2712_s21 + $0x18] sm:$0xff] %v1675_v25 }
 0x409   : > { %1727 = vst [vmem:[%s2712_s21 + $0x8] sm:$0xff] %v1667_v27 }
 0x40b   : > { %v2210_v28 = vpop.f32.mrb[20].mxu1 }
 0x40c   : > { %v1688_v29 = vadd.f32 %v2210_v28, %v1964_v20  ;;  %v1679_v30 = vpop.f32.mrb[21].mxu1 }
 0x40d   : > { %v1680_v31 = vadd.f32 %v1964_v20, %v1679_v30  ;;  %v2211_v32 = vpop.f32.mrb[22].mxu1 }
 0x40e   : > { %1732 = vst [vmem:[%s2712_s21 + $0x30] sm:$0xff] %v1688_v29  ;;  %v1691_v33 = vadd.f32 %v2211_v32, %v1964_v20  ;;  %v1682_v34 = vpop.f32.mrb[23].mxu1 }
 0x40f   : > { %1730 = vst [vmem:[%s2712_s21 + $0x20] sm:$0xff] %v1680_v31  ;;  %v1683_v35 = vadd.f32 %v1964_v20, %v1682_v34 }
 0x410   : > { %1733 = vst [vmem:[%s2712_s21 + $0x38] sm:$0xff] %v1691_v33 }
 0x411   : > { %1731 = vst [vmem:[%s2712_s21 + $0x28] sm:$0xff] %v1683_v35 }
 0x413   : > { %v2214_v36 = vpop.f32.mrb[24].mxu1 }
 0x414   : > { %v1704_v37 = vadd.f32 %v2214_v36, %v1964_v20  ;;  %v1695_v38 = vpop.f32.mrb[25].mxu1 }
 0x415   : > { %v1696_v39 = vadd.f32 %v1964_v20, %v1695_v38  ;;  %v2215_v40 = vpop.f32.mrb[26].mxu1 }
 0x416   : > { %1736 = vst [vmem:[%s2712_s21 + $0x50] sm:$0xff] %v1704_v37  ;;  %v1707_v41 = vadd.f32 %v2215_v40, %v1964_v20  ;;  %v1698_v42 = vpop.f32.mrb[27].mxu1 }
 0x417   : > { %1734 = vst [vmem:[%s2712_s21 + $0x40] sm:$0xff] %v1696_v39  ;;  %v1699_v43 = vadd.f32 %v1964_v20, %v1698_v42 }
 0x418   : > { %1737 = vst [vmem:[%s2712_s21 + $0x58] sm:$0xff] %v1707_v41 }
 0x419   : > { %1735 = vst [vmem:[%s2712_s21 + $0x48] sm:$0xff] %v1699_v43 }
 0x41b   : > { %v2218_v44 = vpop.f32.mrb[28].mxu1 }
 0x41c   : > { %v1720_v45 = vadd.f32 %v2218_v44, %v1964_v20  ;;  %v1711_v46 = vpop.f32.mrb[29].mxu1 }
 0x41d   : > { %v1712_v47 = vadd.f32 %v1964_v20, %v1711_v46  ;;  %v2219_v48 = vpop.f32.mrb[30].mxu1 }
 0x41e   : > { %1740 = vst [vmem:[%s2712_s21 + $0x70] sm:$0xff] %v1720_v45  ;;  %v1723_v49 = vadd.f32 %v2219_v48, %v1964_v20  ;;  %v1714_v50 = vpop.f32.mrb[31].mxu1 }
 0x41f   : > { %1738 = vst [vmem:[%s2712_s21 + $0x60] sm:$0xff] %v1712_v47  ;;  %v1715_v51 = vadd.f32 %v1964_v20, %v1714_v50 }
 0x420   : > { %1741 = vst [vmem:[%s2712_s21 + $0x78] sm:$0xff] %v1723_v49 }
 0x421   : > { %1739 = vst [vmem:[%s2712_s21 + $0x68] sm:$0xff] %v1715_v51 }
 0x422 PF: > { %s1979_s29 = sshll.u32 %s2496_s23, 11  ;;  %s3008_s12 = sld [smem:[#allocation19_spill]] }
 0x423   : > { %s1761_s0 = sshll.u32 %s2716_s28, 4  ;;  %s3009_s7 = sand.u32 1, %s2476_s18   ;;  %s2906_s0 = int_to_ptr.vmem [resolvable:$true] %s1761_s0 }
 0x424   : > { %s2910_s24 = scalar_lea.sflag [#allocation5], %s3009_s7  ;;  %s2398_s21 = scalar_lea.vmem %s2906_s0, 2048 }
 0x425   : > { %p2399_p8 = scmp.ne.s32.totalorder %s2906_s0, %s2398_s21  ;;  %s2511_s23 = smov [#allocation4]  }
 0x426   : > { %s2402_s20 = sshll.u32 %s2511_s23, 4  ;;  %s2403_s20 = int_to_ptr.vmem [resolvable:$false] %s2402_s20 }
 0x427   : > { %p2400_p9 = pnand %p2399_p8, %p2646_p7  ;;  %s2404_s25 = scalar_lea.vmem %s2403_s20, 4096 }
 0x428   : > { %s2903_s9 = scalar_lea.hbm %s3008_s12, %s1979_s29  ;;  %p2405_p11 = scmp.lt.s32.totalorder %s2906_s0, %s2403_s20 }
 0x429   : > { %p2401_p10 = pneg %p2400_p9  ;;  %p2406_p13 = scmp.lt.s32.totalorder %s2404_s25, %s2398_s21 }
 0x42b   : > { %p2407_p0 = por %p2406_p13, %p2405_p11 }
 0x42d   : > { %p2408_p1 = pnand %p2407_p0, %p2401_p10 }
 0x42f   : > { %2411 = shalt.err (!%p2408_p1)
}
 0x430   : > { %s2412_s28 = scalar_lea.hbm %s2903_s9, 2048  ;;  %s2416_s30 = scalar_lea.hbm %s3008_s12, 4096 }
 0x431   : > { %p2413_p2 = scmp.ne.s32.totalorder %s2903_s9, %s2412_s28  ;;  %p2417_p5 = scmp.lt.u32.totalorder %s2903_s9, %s3008_s12 }
 0x432   : > { %p2418_p6 = scmp.lt.u32.totalorder %s2416_s30, %s2412_s28  ;;  %p2420_p9 = scmp.lt.u32.totalorder %s2412_s28, %s2903_s9 }
 0x433   : > { %p2414_p3 = pnand %p2413_p2, %p2646_p7 }
 0x434   : > { %p2419_p8 = por %p2418_p6, %p2417_p5 }
 0x435   : > { %p2415_p4 = pneg %p2414_p3 }
 0x436   : > { %p2421_p10 = por %p2420_p9, %p2419_p8 }
 0x438   : > { %p2422_p11 = pnand %p2421_p10, %p2415_p4 }
 0x43a   : > { %2425 = shalt.err (!%p2422_p11)
}
 0x43b   : > { %s2512_s10 = smov 128   ;;  %s2513_s29 = smov 8  }
 0x43c   : > { %2252 = dma.vmem_to_hbm [thread:$0]  (%p2646_p7), %s2906_s0, 2048, %s2903_s9, %s2910_s24, %s2512_s10, %s2512_s10, %s2513_s29  }
 0x43d PF: > { %s3010_s13 = sld [smem:[#allocation7_spill]]  ;;  %p2258_p13 = scmp.ge.s32.totalorder %s2508_s26, 2 }
 0x43f   : > { %p2255_p0 = pnand %p2258_p13, %p2654_p12 }
 0x443   : > { %s1780_s7 = sand.u32 1, %s3010_s13  }
 0x444   : > { %s1781_s21 = scalar_lea.sflag [#allocation5], %s1780_s7 }
 0x445   : > { %2467 = dma.done.wait (!%p2255_p0), %s1781_s21, 2048  }
 0x446   : > { %2469 = vsyncadd (!%p2255_p0), %s1781_s21, 4294965248  ;;  %s25_s26 = sadd.s32 1, %s2508_s26   ;;  %s3012_s23 = sld [smem:[#allocation14_spill]] }
 0x447   : > { %p22_p1 = scmp.ge.s32.totalorder %s25_s26, 6   ;;  %s3013_s20 = sld [smem:[#allocation8_spill]] }
 0x448   : > { %s3014_s21 = sld [smem:[#allocation15_spill]]  ;;  %s3015_s22 = sld [smem:[#allocation9_spill]] }
 0x449   : > { %s3016_s16 = sld [smem:[#allocation10_spill]]  ;;  %s3017_s24 = sld [smem:[#allocation11_spill]] }
 0x44a   : > { %s3018_s25 = sld [smem:[#allocation12_spill]]  ;;  %s3019_s17 = smov %s2476_s18 }
 0x44b   : > { %s3020_s18 = smov %s2480_s19  ;;  %24 = sbr.rel (!%p22_p1) target bundleno = 11 (0xb), region = 167 }
 0x44c   : > { %s3021_s19 = smov %s3012_s23 }
 0x44f   : > { %s3022_s23 = smov %s3016_s16 }
 0x452   :  { %1794 = vsyncpa [#allocation5], 1 }
 0x453   :  { %1796 = vsyncpa [#allocation5 + $0x1], 1 }

</bundles_post_ra>
